<compile_context>
chip_gen: v7x
topology: tpu7x:2x2x1
jax: 0.10.0
libtpu: 0.0.40
codegen_flags: <defaults>
</compile_context>

<pallas_src>
import numpy as np

import jax
import jax.numpy as jnp
from jax.experimental import pallas as pl
from jax.experimental.pallas import tpu as pltpu


_TB = 8            # images per grid step (one batch tile)
_ROWS = 32         # input rows per image (H = 32)
_VMEM_LIMIT = 32 * 1024 * 1024


# ----------------------------------------------------------------------------
# Fused kernel: conv1 -> pool -> conv2 -> pool -> fc1 -> fc2 -> fc3
# ----------------------------------------------------------------------------
def _lenet_fused_kernel(x_ref, w1_ref, b1_ref, sce1_ref, sco1_ref,
                        w2_ref, b2_ref, sce2_ref, sco2_ref,
                        wf1_ref, bf1_ref, wf2_ref, bf2_ref, wf3_ref, bf3_ref,
                        o_ref, fc_buf):
    """Whole LeNet forward for one tile of TB images stacked along rows.

    x_ref    : (TB*32, 96)   bf16  input rows, lane = w*3 + c (channel-minor)
    w1_ref   : (5, 96, 168)  bf16  conv1 lowered taps;  b1: (1, 168) f32
    sce1/sco1: (168, 128)    bf16  even/odd width-pool selectors (84 valid cols)
    w2_ref   : (5, 128, 160) bf16  conv2 lowered taps;  b2: (1, 160) f32
    sce2/sco2: (160, 128)    bf16  (80 valid cols)
    wf1_ref  : (5, 128, 128) bf16  fc1 split per pooled row (NCHW flatten folded in)
    wf2/wf3  : (128, 128)    bf16  fc2 / fc3 zero-padded;  bf1/bf2/bf3: (1, 128) f32
    o_ref    : (TB, 128)     f32   logits (first 10 lanes valid)
    fc_buf   : (TB, 128)     f32   scratch: one fc1 pre-activation row per image
    """
    G = x_ref.shape[0]
    TB = o_ref.shape[0]
    R = G // TB                       # 32 rows per image in the stacked layout
    KH = w1_ref.shape[0]              # conv kernel height (5)
    PH = wf1_ref.shape[0]             # pooled rows feeding fc1 (5)

    # --- conv1 + bias + ReLU: one batched matmul per tap ki -------------------
    # valid rows: b*R + h for h < 28; rows 28..31 per image are cross-image
    # garbage that is computed but never read.
    L1 = G - (KH - 1)
    acc1 = jnp.dot(x_ref[0:L1, :], w1_ref[0], preferred_element_type=jnp.float32)
    for ki in range(1, KH):
        acc1 += jnp.dot(x_ref[ki:ki + L1, :], w1_ref[ki],
                        preferred_element_type=jnp.float32)
    y1 = jnp.maximum(acc1 + b1_ref[...], 0.0).astype(jnp.bfloat16)

    # --- 2x2 max-pool #1: width via 0/1 selector matmuls (bf16, 128 lanes),
    #     height via a shifted VPU max.  Pooled row p of image b = m1[b*R + 2p].
    a1 = jnp.maximum(
        jnp.dot(y1, sce1_ref[...], preferred_element_type=jnp.float32),
        jnp.dot(y1, sco1_ref[...], preferred_element_type=jnp.float32))
    m1 = jnp.maximum(a1[:-1, :], a1[1:, :]).astype(jnp.bfloat16)     # (G-5, 128)

    # --- conv2 + bias + ReLU: pool-1 row stride (2) folded into tap shifts ----
    # valid rows: b*R + 2h for h < 10.
    L2 = G - 13
    acc2 = jnp.dot(m1[0:L2, :], w2_ref[0], preferred_element_type=jnp.float32)
    for ki in range(1, KH):
        acc2 += jnp.dot(m1[2 * ki:2 * ki + L2, :], w2_ref[ki],
                        preferred_element_type=jnp.float32)
    y2 = jnp.maximum(acc2 + b2_ref[...], 0.0).astype(jnp.bfloat16)

    # --- 2x2 max-pool #2 (row pairs are 2 apart in the stacked layout) --------
    a2 = jnp.maximum(
        jnp.dot(y2, sce2_ref[...], preferred_element_type=jnp.float32),
        jnp.dot(y2, sco2_ref[...], preferred_element_type=jnp.float32))
    m2 = jnp.maximum(a2[:-2, :], a2[2:, :]).astype(jnp.bfloat16)     # (G-15, 128)
    # pooled row p of image b = m2[b*R + 4p], p < 5

    # --- fc1: contraction over the 5 pooled rows folded into shifts of 4p -----
    # row b*R of h1 is image b's fc1 pre-activation (before bias).
    L3 = G - 31
    h1 = jnp.dot(m2[0:L3, :], wf1_ref[0], preferred_element_type=jnp.float32)
    for p in range(1, PH):
        h1 += jnp.dot(m2[4 * p:4 * p + L3, :], wf1_ref[p],
                      preferred_element_type=jnp.float32)

    # gather one valid row per image into scratch, then fc1-bias/ReLU -> fc2 -> fc3
    for b in range(TB):
        fc_buf[pl.ds(b, 1), :] = h1[b * R:b * R + 1, :]
    z1 = jnp.maximum(fc_buf[...] + bf1_ref[...], 0.0).astype(jnp.bfloat16)
    z2 = jnp.maximum(
        jnp.dot(z1, wf2_ref[...], preferred_element_type=jnp.float32)
        + bf2_ref[...], 0.0).astype(jnp.bfloat16)
    o_ref[...] = (jnp.dot(z2, wf3_ref[...], preferred_element_type=jnp.float32)
                  + bf3_ref[...])


# ----------------------------------------------------------------------------
# Wrapper
# ----------------------------------------------------------------------------
def lenet_forward(prep, x_nchw):
    """x_nchw: (N, 3, 32, 32) f32 -> logits (N, 10) f32."""
    n = x_nchw.shape[0]
    x = jnp.transpose(x_nchw, (0, 2, 3, 1)).reshape(n, _ROWS, 96).astype(jnp.bfloat16)
    npad = ((n + _TB - 1) // _TB) * _TB
    if npad != n:
        x = jnp.pad(x, ((0, npad - n), (0, 0), (0, 0)))
    x2 = x.reshape(npad * _ROWS, 96)

    c1, c2, fc = prep["conv1"], prep["conv2"], prep["fc"]
    weights = (c1["w"], c1["b"], c1["sce"], c1["sco"],
               c2["w"], c2["b"], c2["sce"], c2["sco"],
               fc["w1"], fc["b1"], fc["w2"], fc["b2"], fc["w3"], fc["b3"])

    G = _TB * _ROWS
    n_tiles = npad // _TB
    kh = 5
    L1, L2, L3 = G - 4, G - 13, G - 31
    flops = n_tiles * 2 * (kh * L1 * 96 * 168 + 2 * L1 * 168 * 128
                           + kh * L2 * 128 * 160 + 2 * L2 * 160 * 128
                           + kh * L3 * 128 * 128 + 2 * _TB * 128 * 128)
    w_bytes = sum(int(np.prod(w.shape)) * w.dtype.itemsize for w in weights)
    bytes_accessed = n_tiles * (2 * G * 96 + 4 * _TB * 128) + w_bytes

    def full(a):
        zeros = (0,) * a.ndim
        return pl.BlockSpec(a.shape, lambda i: zeros)

    out = pl.pallas_call(
        _lenet_fused_kernel,
        out_shape=jax.ShapeDtypeStruct((npad, 128), jnp.float32),
        grid=(n_tiles,),
        in_specs=[pl.BlockSpec((G, 96), lambda i: (i, 0))]
                 + [full(w) for w in weights],
        out_specs=pl.BlockSpec((_TB, 128), lambda i: (i, 0)),
        scratch_shapes=[pltpu.VMEM((_TB, 128), jnp.float32)],
        compiler_params=pltpu.CompilerParams(
            dimension_semantics=("parallel",),
            vmem_limit_bytes=_VMEM_LIMIT),
        cost_estimate=pl.CostEstimate(
            flops=int(flops), transcendentals=0,
            bytes_accessed=int(bytes_accessed)),
    )(x2, *weights)
    return out[:n, :10]


# ----------------------------------------------------------------------------
# Parameters: PyTorch-layout init + one-time lowering to kernel-ready form
# ----------------------------------------------------------------------------
def init_params(key):
    """PyTorch layouts: conv (O, I, KH, KW), linear (out, in); U(-1/sqrt(fan_in), +)."""
    def u(k, shape, fan_in):
        bound = 1.0 / float(np.sqrt(fan_in))
        return jax.random.uniform(k, shape, jnp.float32, -bound, bound)

    ks = jax.random.split(key, 10)
    return {
        "conv1_w": u(ks[0], (6, 3, 5, 5), 3 * 5 * 5),
        "conv1_b": u(ks[1], (6,), 3 * 5 * 5),
        "conv2_w": u(ks[2], (16, 6, 5, 5), 6 * 5 * 5),
        "conv2_b": u(ks[3], (16,), 6 * 5 * 5),
        "fc1_w": u(ks[4], (120, 400), 400),
        "fc1_b": u(ks[5], (120,), 400),
        "fc2_w": u(ks[6], (84, 120), 120),
        "fc2_b": u(ks[7], (84,), 120),
        "fc3_w": u(ks[8], (10, 84), 84),
        "fc3_b": u(ks[9], (10,), 84),
    }


def _lower_conv(w_oihw, bias, w_in, lin_pad, lane_pad):
    """Pre-lower one conv layer (runs once at init, off the hot path)."""
    w_np = np.asarray(w_oihw, np.float32)
    b_np = np.asarray(bias, np.float32)
    cout, cin, kh, kw = w_np.shape
    wo = w_in - kw + 1
    wp = wo // 2
    lout = wo * cout

    # rhs[ki, w*cin+ci, ow*cout+co] = W[co, ci, ki, w-ow]   (0 <= w-ow < kw)
    rhs = np.zeros((kh, lin_pad, lout), np.float32)
    for ki in range(kh):
        for ow in range(wo):
            for kj in range(kw):
                w = ow + kj
                rhs[ki, w * cin:(w + 1) * cin,
                    ow * cout:(ow + 1) * cout] = w_np[:, :, ki, kj].T
    b_row = np.tile(b_np, wo).reshape(1, lout)

    # 0/1 selectors for the width half of the 2x2 max-pool, padded to 128 lanes
    sce = np.zeros((lout, lane_pad), np.float32)
    sco = np.zeros((lout, lane_pad), np.float32)
    for q in range(wp):
        for co in range(cout):
            sce[(2 * q) * cout + co, q * cout + co] = 1.0
            sco[(2 * q + 1) * cout + co, q * cout + co] = 1.0

    return {"w": jnp.asarray(rhs, jnp.bfloat16),
            "b": jnp.asarray(b_row, jnp.float32),
            "sce": jnp.asarray(sce, jnp.bfloat16),
            "sco": jnp.asarray(sco, jnp.bfloat16)}


def _lower_fc(params):
    """fc1 split per pooled row with torch's NCHW flatten folded in; fc2/fc3 padded."""
    fc1_w = np.asarray(params["fc1_w"], np.float32)        # (120, 400)
    w1 = np.zeros((5, 128, 128), np.float32)
    for p in range(5):            # pooled row   (torch h)
        for q in range(5):        # pooled col   (torch w)
            for c in range(16):   # channel      (torch c)
                w1[p, q * 16 + c, :120] = fc1_w[:, c * 25 + p * 5 + q]
    b1 = np.zeros((1, 128), np.float32); b1[0, :120] = np.asarray(params["fc1_b"])
    w2 = np.zeros((128, 128), np.float32)
    w2[:120, :84] = np.asarray(params["fc2_w"], np.float32).T
    b2 = np.zeros((1, 128), np.float32); b2[0, :84] = np.asarray(params["fc2_b"])
    w3 = np.zeros((128, 128), np.float32)
    w3[:84, :10] = np.asarray(params["fc3_w"], np.float32).T
    b3 = np.zeros((1, 128), np.float32); b3[0, :10] = np.asarray(params["fc3_b"])
    return {"w1": jnp.asarray(w1, jnp.bfloat16), "b1": jnp.asarray(b1),
            "w2": jnp.asarray(w2, jnp.bfloat16), "b2": jnp.asarray(b2),
            "w3": jnp.asarray(w3, jnp.bfloat16), "b3": jnp.asarray(b3)}


def prepare_params(params):
    return {
        "conv1": _lower_conv(params["conv1_w"], params["conv1_b"],
                             w_in=32, lin_pad=96, lane_pad=128),
        "conv2": _lower_conv(params["conv2_w"], params["conv2_b"],
                             w_in=14, lin_pad=128, lane_pad=128),
        "fc": _lower_fc(params),
    }


# ----------------------------------------------------------------------------
# Pure-XLA f32 reference with exact PyTorch semantics (for self-check)
# ----------------------------------------------------------------------------
def reference_forward(params, x):
    dn = ("NCHW", "OIHW", "NCHW")
    y = jax.lax.conv_general_dilated(x, params["conv1_w"], (1, 1), "VALID",
                                     dimension_numbers=dn)
    y = jax.nn.relu(y + params["conv1_b"][None, :, None, None])
    y = jax.lax.reduce_window(y, -jnp.inf, jax.lax.max,
                              (1, 1, 2, 2), (1, 1, 2, 2), "VALID")
    y = jax.lax.conv_general_dilated(y, params["conv2_w"], (1, 1), "VALID",
                                     dimension_numbers=dn)
    y = jax.nn.relu(y + params["conv2_b"][None, :, None, None])
    y = jax.lax.reduce_window(y, -jnp.inf, jax.lax.max,
                              (1, 1, 2, 2), (1, 1, 2, 2), "VALID")
    y = y.reshape(y.shape[0], -1)
    y = jax.nn.relu(y @ params["fc1_w"].T + params["fc1_b"])
    y = jax.nn.relu(y @ params["fc2_w"].T + params["fc2_b"])
    return y @ params["fc3_w"].T + params["fc3_b"]


if __name__ == "__main__":
    key = jax.random.PRNGKey(0)
    k_params, k_x = jax.random.split(key)
    params = init_params(k_params)
    prep = prepare_params(params)

    batch = 2
    x = jax.random.normal(k_x, (batch, 3, 32, 32), jnp.float32)

    logits = jax.jit(lenet_forward)(prep, x)
    jax.block_until_ready(logits)
    assert logits.shape == (batch, 10)

    # Loose self-check vs f32 XLA reference (bf16 matmul operands -> ~1e-2 scale).
    ref = reference_forward(params, x)
    err = float(jnp.max(jnp.abs(logits - ref)))
    scale = float(jnp.max(jnp.abs(ref)))
    assert err <= 0.08 * scale + 0.04, (err, scale)

    print("KERNEL_OK")
</pallas_src>

<mosaic_0001>
module attributes {stable_mosaic.version = 11 : i64} {
  func.func @_lenet_fused_kernel(%arg0: i32, %arg1: memref<256x96xbf16, #tpu.memory_space<vmem>>, %arg2: memref<5x96x168xbf16, #tpu.memory_space<vmem>>, %arg3: memref<1x168xf32, #tpu.memory_space<vmem>>, %arg4: memref<168x128xbf16, #tpu.memory_space<vmem>>, %arg5: memref<168x128xbf16, #tpu.memory_space<vmem>>, %arg6: memref<5x128x160xbf16, #tpu.memory_space<vmem>>, %arg7: memref<1x160xf32, #tpu.memory_space<vmem>>, %arg8: memref<160x128xbf16, #tpu.memory_space<vmem>>, %arg9: memref<160x128xbf16, #tpu.memory_space<vmem>>, %arg10: memref<5x128x128xbf16, #tpu.memory_space<vmem>>, %arg11: memref<1x128xf32, #tpu.memory_space<vmem>>, %arg12: memref<128x128xbf16, #tpu.memory_space<vmem>>, %arg13: memref<1x128xf32, #tpu.memory_space<vmem>>, %arg14: memref<128x128xbf16, #tpu.memory_space<vmem>>, %arg15: memref<1x128xf32, #tpu.memory_space<vmem>>, %arg16: memref<8x128xf32, #tpu.memory_space<vmem>>, %arg17: memref<8x128xf32, #tpu.memory_space<vmem>>) attributes {dimension_semantics = [#tpu.dimension_semantics<parallel>], iteration_bounds = array<i64: 1>, scalar_prefetch = 0 : i64, scratch_operands = 1 : i64, tpu.core_type = #tpu.core_type<tc>, window_params = [{transform_indices = @transform_0, window_bounds = array<i64: 256, 96>}, {pipeline_mode = #tpu.pipeline_mode<synchronous>, transform_indices = @transform_1, window_bounds = array<i64: 5, 96, 168>}, {pipeline_mode = #tpu.pipeline_mode<synchronous>, transform_indices = @transform_2, window_bounds = array<i64: 1, 168>}, {pipeline_mode = #tpu.pipeline_mode<synchronous>, transform_indices = @transform_3, window_bounds = array<i64: 168, 128>}, {pipeline_mode = #tpu.pipeline_mode<synchronous>, transform_indices = @transform_4, window_bounds = array<i64: 168, 128>}, {pipeline_mode = #tpu.pipeline_mode<synchronous>, transform_indices = @transform_5, window_bounds = array<i64: 5, 128, 160>}, {pipeline_mode = #tpu.pipeline_mode<synchronous>, transform_indices = @transform_6, window_bounds = array<i64: 1, 160>}, {pipeline_mode = #tpu.pipeline_mode<synchronous>, transform_indices = @transform_7, window_bounds = array<i64: 160, 128>}, {pipeline_mode = #tpu.pipeline_mode<synchronous>, transform_indices = @transform_8, window_bounds = array<i64: 160, 128>}, {pipeline_mode = #tpu.pipeline_mode<synchronous>, transform_indices = @transform_9, window_bounds = array<i64: 5, 128, 128>}, {pipeline_mode = #tpu.pipeline_mode<synchronous>, transform_indices = @transform_10, window_bounds = array<i64: 1, 128>}, {pipeline_mode = #tpu.pipeline_mode<synchronous>, transform_indices = @transform_11, window_bounds = array<i64: 128, 128>}, {pipeline_mode = #tpu.pipeline_mode<synchronous>, transform_indices = @transform_12, window_bounds = array<i64: 1, 128>}, {pipeline_mode = #tpu.pipeline_mode<synchronous>, transform_indices = @transform_13, window_bounds = array<i64: 128, 128>}, {pipeline_mode = #tpu.pipeline_mode<synchronous>, transform_indices = @transform_14, window_bounds = array<i64: 1, 128>}, {transform_indices = @transform_15, window_bounds = array<i64: 8, 128>}]} {
    %c0 = arith.constant 0 : index
    %c0_0 = arith.constant 0 : index
    %0 = vector.load %arg1[%c0, %c0_0] : memref<256x96xbf16, #tpu.memory_space<vmem>>, vector<252x96xbf16>
    %c0_1 = arith.constant 0 : index
    %c0_2 = arith.constant 0 : index
    %c0_3 = arith.constant 0 : index
    %1 = vector.load %arg2[%c0_1, %c0_2, %c0_3] : memref<5x96x168xbf16, #tpu.memory_space<vmem>>, vector<1x96x168xbf16>
    %2 = vector.shape_cast %1 : vector<1x96x168xbf16> to vector<96x168xbf16>
    %cst = arith.constant dense<0.000000e+00> : vector<252x168xf32>
    %3 = tpu.matmul %0, %2, %cst {dimension_numbers = #tpu.dot_dimension_numbers<[1], [0], [0], [1], [0, 0, 1, 1], [], []>} : vector<252x96xbf16>, vector<96x168xbf16>, vector<252x168xf32> -> vector<252x168xf32>
    %c1 = arith.constant 1 : index
    %c0_4 = arith.constant 0 : index
    %4 = vector.load %arg1[%c1, %c0_4] : memref<256x96xbf16, #tpu.memory_space<vmem>>, vector<252x96xbf16>
    %c1_5 = arith.constant 1 : index
    %c0_6 = arith.constant 0 : index
    %c0_7 = arith.constant 0 : index
    %5 = vector.load %arg2[%c1_5, %c0_6, %c0_7] : memref<5x96x168xbf16, #tpu.memory_space<vmem>>, vector<1x96x168xbf16>
    %6 = vector.shape_cast %5 : vector<1x96x168xbf16> to vector<96x168xbf16>
    %cst_8 = arith.constant dense<0.000000e+00> : vector<252x168xf32>
    %7 = tpu.matmul %4, %6, %cst_8 {dimension_numbers = #tpu.dot_dimension_numbers<[1], [0], [0], [1], [0, 0, 1, 1], [], []>} : vector<252x96xbf16>, vector<96x168xbf16>, vector<252x168xf32> -> vector<252x168xf32>
    %8 = arith.addf %3, %7 : vector<252x168xf32>
    %c2 = arith.constant 2 : index
    %c0_9 = arith.constant 0 : index
    %9 = vector.load %arg1[%c2, %c0_9] : memref<256x96xbf16, #tpu.memory_space<vmem>>, vector<252x96xbf16>
    %c2_10 = arith.constant 2 : index
    %c0_11 = arith.constant 0 : index
    %c0_12 = arith.constant 0 : index
    %10 = vector.load %arg2[%c2_10, %c0_11, %c0_12] : memref<5x96x168xbf16, #tpu.memory_space<vmem>>, vector<1x96x168xbf16>
    %11 = vector.shape_cast %10 : vector<1x96x168xbf16> to vector<96x168xbf16>
    %cst_13 = arith.constant dense<0.000000e+00> : vector<252x168xf32>
    %12 = tpu.matmul %9, %11, %cst_13 {dimension_numbers = #tpu.dot_dimension_numbers<[1], [0], [0], [1], [0, 0, 1, 1], [], []>} : vector<252x96xbf16>, vector<96x168xbf16>, vector<252x168xf32> -> vector<252x168xf32>
    %13 = arith.addf %8, %12 : vector<252x168xf32>
    %c3 = arith.constant 3 : index
    %c0_14 = arith.constant 0 : index
    %14 = vector.load %arg1[%c3, %c0_14] : memref<256x96xbf16, #tpu.memory_space<vmem>>, vector<252x96xbf16>
    %c3_15 = arith.constant 3 : index
    %c0_16 = arith.constant 0 : index
    %c0_17 = arith.constant 0 : index
    %15 = vector.load %arg2[%c3_15, %c0_16, %c0_17] : memref<5x96x168xbf16, #tpu.memory_space<vmem>>, vector<1x96x168xbf16>
    %16 = vector.shape_cast %15 : vector<1x96x168xbf16> to vector<96x168xbf16>
    %cst_18 = arith.constant dense<0.000000e+00> : vector<252x168xf32>
    %17 = tpu.matmul %14, %16, %cst_18 {dimension_numbers = #tpu.dot_dimension_numbers<[1], [0], [0], [1], [0, 0, 1, 1], [], []>} : vector<252x96xbf16>, vector<96x168xbf16>, vector<252x168xf32> -> vector<252x168xf32>
    %18 = arith.addf %13, %17 : vector<252x168xf32>
    %c4 = arith.constant 4 : index
    %c0_19 = arith.constant 0 : index
    %19 = vector.load %arg1[%c4, %c0_19] : memref<256x96xbf16, #tpu.memory_space<vmem>>, vector<252x96xbf16>
    %c4_20 = arith.constant 4 : index
    %c0_21 = arith.constant 0 : index
    %c0_22 = arith.constant 0 : index
    %20 = vector.load %arg2[%c4_20, %c0_21, %c0_22] : memref<5x96x168xbf16, #tpu.memory_space<vmem>>, vector<1x96x168xbf16>
    %21 = vector.shape_cast %20 : vector<1x96x168xbf16> to vector<96x168xbf16>
    %cst_23 = arith.constant dense<0.000000e+00> : vector<252x168xf32>
    %22 = tpu.matmul %19, %21, %cst_23 {dimension_numbers = #tpu.dot_dimension_numbers<[1], [0], [0], [1], [0, 0, 1, 1], [], []>} : vector<252x96xbf16>, vector<96x168xbf16>, vector<252x168xf32> -> vector<252x168xf32>
    %23 = arith.addf %18, %22 : vector<252x168xf32>
    %c0_24 = arith.constant 0 : index
    %c0_25 = arith.constant 0 : index
    %24 = vector.load %arg3[%c0_24, %c0_25] : memref<1x168xf32, #tpu.memory_space<vmem>>, vector<1x168xf32>
    %25 = vector.broadcast %24 : vector<1x168xf32> to vector<252x168xf32>
    %26 = arith.addf %23, %25 : vector<252x168xf32>
    %cst_26 = arith.constant 0.000000e+00 : f32
    %27 = vector.broadcast %cst_26 : f32 to vector<252x168xf32>
    %28 = arith.maximumf %26, %27 : vector<252x168xf32>
    %29 = arith.truncf %28 : vector<252x168xf32> to vector<252x168xbf16>
    %c0_27 = arith.constant 0 : index
    %c0_28 = arith.constant 0 : index
    %30 = vector.load %arg4[%c0_27, %c0_28] : memref<168x128xbf16, #tpu.memory_space<vmem>>, vector<168x128xbf16>
    %cst_29 = arith.constant dense<0.000000e+00> : vector<252x128xf32>
    %31 = tpu.matmul %29, %30, %cst_29 {dimension_numbers = #tpu.dot_dimension_numbers<[1], [0], [0], [1], [0, 0, 1, 1], [], []>} : vector<252x168xbf16>, vector<168x128xbf16>, vector<252x128xf32> -> vector<252x128xf32>
    %c0_30 = arith.constant 0 : index
    %c0_31 = arith.constant 0 : index
    %32 = vector.load %arg5[%c0_30, %c0_31] : memref<168x128xbf16, #tpu.memory_space<vmem>>, vector<168x128xbf16>
    %cst_32 = arith.constant dense<0.000000e+00> : vector<252x128xf32>
    %33 = tpu.matmul %29, %32, %cst_32 {dimension_numbers = #tpu.dot_dimension_numbers<[1], [0], [0], [1], [0, 0, 1, 1], [], []>} : vector<252x168xbf16>, vector<168x128xbf16>, vector<252x128xf32> -> vector<252x128xf32>
    %34 = arith.maximumf %31, %33 : vector<252x128xf32>
    %35 = vector.extract_strided_slice %34 {offsets = [0, 0], sizes = [251, 128], strides = [1, 1]} : vector<252x128xf32> to vector<251x128xf32>
    %36 = vector.extract_strided_slice %34 {offsets = [1, 0], sizes = [251, 128], strides = [1, 1]} : vector<252x128xf32> to vector<251x128xf32>
    %37 = arith.maximumf %35, %36 : vector<251x128xf32>
    %38 = arith.truncf %37 : vector<251x128xf32> to vector<251x128xbf16>
    %39 = vector.extract_strided_slice %38 {offsets = [0, 0], sizes = [243, 128], strides = [1, 1]} : vector<251x128xbf16> to vector<243x128xbf16>
    %c0_33 = arith.constant 0 : index
    %c0_34 = arith.constant 0 : index
    %c0_35 = arith.constant 0 : index
    %40 = vector.load %arg6[%c0_33, %c0_34, %c0_35] : memref<5x128x160xbf16, #tpu.memory_space<vmem>>, vector<1x128x160xbf16>
    %41 = vector.shape_cast %40 : vector<1x128x160xbf16> to vector<128x160xbf16>
    %cst_36 = arith.constant dense<0.000000e+00> : vector<243x160xf32>
    %42 = tpu.matmul %39, %41, %cst_36 {dimension_numbers = #tpu.dot_dimension_numbers<[1], [0], [0], [1], [0, 0, 1, 1], [], []>} : vector<243x128xbf16>, vector<128x160xbf16>, vector<243x160xf32> -> vector<243x160xf32>
    %43 = vector.extract_strided_slice %38 {offsets = [2, 0], sizes = [243, 128], strides = [1, 1]} : vector<251x128xbf16> to vector<243x128xbf16>
    %c1_37 = arith.constant 1 : index
    %c0_38 = arith.constant 0 : index
    %c0_39 = arith.constant 0 : index
    %44 = vector.load %arg6[%c1_37, %c0_38, %c0_39] : memref<5x128x160xbf16, #tpu.memory_space<vmem>>, vector<1x128x160xbf16>
    %45 = vector.shape_cast %44 : vector<1x128x160xbf16> to vector<128x160xbf16>
    %cst_40 = arith.constant dense<0.000000e+00> : vector<243x160xf32>
    %46 = tpu.matmul %43, %45, %cst_40 {dimension_numbers = #tpu.dot_dimension_numbers<[1], [0], [0], [1], [0, 0, 1, 1], [], []>} : vector<243x128xbf16>, vector<128x160xbf16>, vector<243x160xf32> -> vector<243x160xf32>
    %47 = arith.addf %42, %46 : vector<243x160xf32>
    %48 = vector.extract_strided_slice %38 {offsets = [4, 0], sizes = [243, 128], strides = [1, 1]} : vector<251x128xbf16> to vector<243x128xbf16>
    %c2_41 = arith.constant 2 : index
    %c0_42 = arith.constant 0 : index
    %c0_43 = arith.constant 0 : index
    %49 = vector.load %arg6[%c2_41, %c0_42, %c0_43] : memref<5x128x160xbf16, #tpu.memory_space<vmem>>, vector<1x128x160xbf16>
    %50 = vector.shape_cast %49 : vector<1x128x160xbf16> to vector<128x160xbf16>
    %cst_44 = arith.constant dense<0.000000e+00> : vector<243x160xf32>
    %51 = tpu.matmul %48, %50, %cst_44 {dimension_numbers = #tpu.dot_dimension_numbers<[1], [0], [0], [1], [0, 0, 1, 1], [], []>} : vector<243x128xbf16>, vector<128x160xbf16>, vector<243x160xf32> -> vector<243x160xf32>
    %52 = arith.addf %47, %51 : vector<243x160xf32>
    %53 = vector.extract_strided_slice %38 {offsets = [6, 0], sizes = [243, 128], strides = [1, 1]} : vector<251x128xbf16> to vector<243x128xbf16>
    %c3_45 = arith.constant 3 : index
    %c0_46 = arith.constant 0 : index
    %c0_47 = arith.constant 0 : index
    %54 = vector.load %arg6[%c3_45, %c0_46, %c0_47] : memref<5x128x160xbf16, #tpu.memory_space<vmem>>, vector<1x128x160xbf16>
    %55 = vector.shape_cast %54 : vector<1x128x160xbf16> to vector<128x160xbf16>
    %cst_48 = arith.constant dense<0.000000e+00> : vector<243x160xf32>
    %56 = tpu.matmul %53, %55, %cst_48 {dimension_numbers = #tpu.dot_dimension_numbers<[1], [0], [0], [1], [0, 0, 1, 1], [], []>} : vector<243x128xbf16>, vector<128x160xbf16>, vector<243x160xf32> -> vector<243x160xf32>
    %57 = arith.addf %52, %56 : vector<243x160xf32>
    %58 = vector.extract_strided_slice %38 {offsets = [8, 0], sizes = [243, 128], strides = [1, 1]} : vector<251x128xbf16> to vector<243x128xbf16>
    %c4_49 = arith.constant 4 : index
    %c0_50 = arith.constant 0 : index
    %c0_51 = arith.constant 0 : index
    %59 = vector.load %arg6[%c4_49, %c0_50, %c0_51] : memref<5x128x160xbf16, #tpu.memory_space<vmem>>, vector<1x128x160xbf16>
    %60 = vector.shape_cast %59 : vector<1x128x160xbf16> to vector<128x160xbf16>
    %cst_52 = arith.constant dense<0.000000e+00> : vector<243x160xf32>
    %61 = tpu.matmul %58, %60, %cst_52 {dimension_numbers = #tpu.dot_dimension_numbers<[1], [0], [0], [1], [0, 0, 1, 1], [], []>} : vector<243x128xbf16>, vector<128x160xbf16>, vector<243x160xf32> -> vector<243x160xf32>
    %62 = arith.addf %57, %61 : vector<243x160xf32>
    %c0_53 = arith.constant 0 : index
    %c0_54 = arith.constant 0 : index
    %63 = vector.load %arg7[%c0_53, %c0_54] : memref<1x160xf32, #tpu.memory_space<vmem>>, vector<1x160xf32>
    %64 = vector.broadcast %63 : vector<1x160xf32> to vector<243x160xf32>
    %65 = arith.addf %62, %64 : vector<243x160xf32>
    %cst_55 = arith.constant 0.000000e+00 : f32
    %66 = vector.broadcast %cst_55 : f32 to vector<243x160xf32>
    %67 = arith.maximumf %65, %66 : vector<243x160xf32>
    %68 = arith.truncf %67 : vector<243x160xf32> to vector<243x160xbf16>
    %c0_56 = arith.constant 0 : index
    %c0_57 = arith.constant 0 : index
    %69 = vector.load %arg8[%c0_56, %c0_57] : memref<160x128xbf16, #tpu.memory_space<vmem>>, vector<160x128xbf16>
    %cst_58 = arith.constant dense<0.000000e+00> : vector<243x128xf32>
    %70 = tpu.matmul %68, %69, %cst_58 {dimension_numbers = #tpu.dot_dimension_numbers<[1], [0], [0], [1], [0, 0, 1, 1], [], []>} : vector<243x160xbf16>, vector<160x128xbf16>, vector<243x128xf32> -> vector<243x128xf32>
    %c0_59 = arith.constant 0 : index
    %c0_60 = arith.constant 0 : index
    %71 = vector.load %arg9[%c0_59, %c0_60] : memref<160x128xbf16, #tpu.memory_space<vmem>>, vector<160x128xbf16>
    %cst_61 = arith.constant dense<0.000000e+00> : vector<243x128xf32>
    %72 = tpu.matmul %68, %71, %cst_61 {dimension_numbers = #tpu.dot_dimension_numbers<[1], [0], [0], [1], [0, 0, 1, 1], [], []>} : vector<243x160xbf16>, vector<160x128xbf16>, vector<243x128xf32> -> vector<243x128xf32>
    %73 = arith.maximumf %70, %72 : vector<243x128xf32>
    %74 = vector.extract_strided_slice %73 {offsets = [0, 0], sizes = [241, 128], strides = [1, 1]} : vector<243x128xf32> to vector<241x128xf32>
    %75 = vector.extract_strided_slice %73 {offsets = [2, 0], sizes = [241, 128], strides = [1, 1]} : vector<243x128xf32> to vector<241x128xf32>
    %76 = arith.maximumf %74, %75 : vector<241x128xf32>
    %77 = arith.truncf %76 : vector<241x128xf32> to vector<241x128xbf16>
    %78 = vector.extract_strided_slice %77 {offsets = [0, 0], sizes = [225, 128], strides = [1, 1]} : vector<241x128xbf16> to vector<225x128xbf16>
    %c0_62 = arith.constant 0 : index
    %c0_63 = arith.constant 0 : index
    %c0_64 = arith.constant 0 : index
    %79 = vector.load %arg10[%c0_62, %c0_63, %c0_64] : memref<5x128x128xbf16, #tpu.memory_space<vmem>>, vector<1x128x128xbf16>
    %80 = vector.shape_cast %79 : vector<1x128x128xbf16> to vector<128x128xbf16>
    %cst_65 = arith.constant dense<0.000000e+00> : vector<225x128xf32>
    %81 = tpu.matmul %78, %80, %cst_65 {dimension_numbers = #tpu.dot_dimension_numbers<[1], [0], [0], [1], [0, 0, 1, 1], [], []>} : vector<225x128xbf16>, vector<128x128xbf16>, vector<225x128xf32> -> vector<225x128xf32>
    %82 = vector.extract_strided_slice %77 {offsets = [4, 0], sizes = [225, 128], strides = [1, 1]} : vector<241x128xbf16> to vector<225x128xbf16>
    %c1_66 = arith.constant 1 : index
    %c0_67 = arith.constant 0 : index
    %c0_68 = arith.constant 0 : index
    %83 = vector.load %arg10[%c1_66, %c0_67, %c0_68] : memref<5x128x128xbf16, #tpu.memory_space<vmem>>, vector<1x128x128xbf16>
    %84 = vector.shape_cast %83 : vector<1x128x128xbf16> to vector<128x128xbf16>
    %cst_69 = arith.constant dense<0.000000e+00> : vector<225x128xf32>
    %85 = tpu.matmul %82, %84, %cst_69 {dimension_numbers = #tpu.dot_dimension_numbers<[1], [0], [0], [1], [0, 0, 1, 1], [], []>} : vector<225x128xbf16>, vector<128x128xbf16>, vector<225x128xf32> -> vector<225x128xf32>
    %86 = arith.addf %81, %85 : vector<225x128xf32>
    %87 = vector.extract_strided_slice %77 {offsets = [8, 0], sizes = [225, 128], strides = [1, 1]} : vector<241x128xbf16> to vector<225x128xbf16>
    %c2_70 = arith.constant 2 : index
    %c0_71 = arith.constant 0 : index
    %c0_72 = arith.constant 0 : index
    %88 = vector.load %arg10[%c2_70, %c0_71, %c0_72] : memref<5x128x128xbf16, #tpu.memory_space<vmem>>, vector<1x128x128xbf16>
    %89 = vector.shape_cast %88 : vector<1x128x128xbf16> to vector<128x128xbf16>
    %cst_73 = arith.constant dense<0.000000e+00> : vector<225x128xf32>
    %90 = tpu.matmul %87, %89, %cst_73 {dimension_numbers = #tpu.dot_dimension_numbers<[1], [0], [0], [1], [0, 0, 1, 1], [], []>} : vector<225x128xbf16>, vector<128x128xbf16>, vector<225x128xf32> -> vector<225x128xf32>
    %91 = arith.addf %86, %90 : vector<225x128xf32>
    %92 = vector.extract_strided_slice %77 {offsets = [12, 0], sizes = [225, 128], strides = [1, 1]} : vector<241x128xbf16> to vector<225x128xbf16>
    %c3_74 = arith.constant 3 : index
    %c0_75 = arith.constant 0 : index
    %c0_76 = arith.constant 0 : index
    %93 = vector.load %arg10[%c3_74, %c0_75, %c0_76] : memref<5x128x128xbf16, #tpu.memory_space<vmem>>, vector<1x128x128xbf16>
    %94 = vector.shape_cast %93 : vector<1x128x128xbf16> to vector<128x128xbf16>
    %cst_77 = arith.constant dense<0.000000e+00> : vector<225x128xf32>
    %95 = tpu.matmul %92, %94, %cst_77 {dimension_numbers = #tpu.dot_dimension_numbers<[1], [0], [0], [1], [0, 0, 1, 1], [], []>} : vector<225x128xbf16>, vector<128x128xbf16>, vector<225x128xf32> -> vector<225x128xf32>
    %96 = arith.addf %91, %95 : vector<225x128xf32>
    %97 = vector.extract_strided_slice %77 {offsets = [16, 0], sizes = [225, 128], strides = [1, 1]} : vector<241x128xbf16> to vector<225x128xbf16>
    %c4_78 = arith.constant 4 : index
    %c0_79 = arith.constant 0 : index
    %c0_80 = arith.constant 0 : index
    %98 = vector.load %arg10[%c4_78, %c0_79, %c0_80] : memref<5x128x128xbf16, #tpu.memory_space<vmem>>, vector<1x128x128xbf16>
    %99 = vector.shape_cast %98 : vector<1x128x128xbf16> to vector<128x128xbf16>
    %cst_81 = arith.constant dense<0.000000e+00> : vector<225x128xf32>
    %100 = tpu.matmul %97, %99, %cst_81 {dimension_numbers = #tpu.dot_dimension_numbers<[1], [0], [0], [1], [0, 0, 1, 1], [], []>} : vector<225x128xbf16>, vector<128x128xbf16>, vector<225x128xf32> -> vector<225x128xf32>
    %101 = arith.addf %96, %100 : vector<225x128xf32>
    %102 = vector.extract_strided_slice %101 {offsets = [0, 0], sizes = [1, 128], strides = [1, 1]} : vector<225x128xf32> to vector<1x128xf32>
    %c0_82 = arith.constant 0 : index
    %c0_83 = arith.constant 0 : index
    %103 = vector.load %arg17[%c0_82, %c0_83] : memref<8x128xf32, #tpu.memory_space<vmem>>, vector<1x128xf32>
    tpu.vector_store %arg17[%c0_82, %c0_83], %102 {strides = array<i32>} : memref<8x128xf32, #tpu.memory_space<vmem>>, vector<1x128xf32>,
    %104 = vector.extract_strided_slice %101 {offsets = [32, 0], sizes = [1, 128], strides = [1, 1]} : vector<225x128xf32> to vector<1x128xf32>
    %c1_84 = arith.constant 1 : index
    %c0_85 = arith.constant 0 : index
    %105 = vector.load %arg17[%c1_84, %c0_85] : memref<8x128xf32, #tpu.memory_space<vmem>>, vector<1x128xf32>
    tpu.vector_store %arg17[%c1_84, %c0_85], %104 {strides = array<i32>} : memref<8x128xf32, #tpu.memory_space<vmem>>, vector<1x128xf32>,
    %106 = vector.extract_strided_slice %101 {offsets = [64, 0], sizes = [1, 128], strides = [1, 1]} : vector<225x128xf32> to vector<1x128xf32>
    %c2_86 = arith.constant 2 : index
    %c0_87 = arith.constant 0 : index
    %107 = vector.load %arg17[%c2_86, %c0_87] : memref<8x128xf32, #tpu.memory_space<vmem>>, vector<1x128xf32>
    tpu.vector_store %arg17[%c2_86, %c0_87], %106 {strides = array<i32>} : memref<8x128xf32, #tpu.memory_space<vmem>>, vector<1x128xf32>,
    %108 = vector.extract_strided_slice %101 {offsets = [96, 0], sizes = [1, 128], strides = [1, 1]} : vector<225x128xf32> to vector<1x128xf32>
    %c3_88 = arith.constant 3 : index
    %c0_89 = arith.constant 0 : index
    %109 = vector.load %arg17[%c3_88, %c0_89] : memref<8x128xf32, #tpu.memory_space<vmem>>, vector<1x128xf32>
    tpu.vector_store %arg17[%c3_88, %c0_89], %108 {strides = array<i32>} : memref<8x128xf32, #tpu.memory_space<vmem>>, vector<1x128xf32>,
    %110 = vector.extract_strided_slice %101 {offsets = [128, 0], sizes = [1, 128], strides = [1, 1]} : vector<225x128xf32> to vector<1x128xf32>
    %c4_90 = arith.constant 4 : index
    %c0_91 = arith.constant 0 : index
    %111 = vector.load %arg17[%c4_90, %c0_91] : memref<8x128xf32, #tpu.memory_space<vmem>>, vector<1x128xf32>
    tpu.vector_store %arg17[%c4_90, %c0_91], %110 {strides = array<i32>} : memref<8x128xf32, #tpu.memory_space<vmem>>, vector<1x128xf32>,
    %112 = vector.extract_strided_slice %101 {offsets = [160, 0], sizes = [1, 128], strides = [1, 1]} : vector<225x128xf32> to vector<1x128xf32>
    %c5 = arith.constant 5 : index
    %c0_92 = arith.constant 0 : index
    %113 = vector.load %arg17[%c5, %c0_92] : memref<8x128xf32, #tpu.memory_space<vmem>>, vector<1x128xf32>
    tpu.vector_store %arg17[%c5, %c0_92], %112 {strides = array<i32>} : memref<8x128xf32, #tpu.memory_space<vmem>>, vector<1x128xf32>,
    %114 = vector.extract_strided_slice %101 {offsets = [192, 0], sizes = [1, 128], strides = [1, 1]} : vector<225x128xf32> to vector<1x128xf32>
    %c6 = arith.constant 6 : index
    %c0_93 = arith.constant 0 : index
    %115 = vector.load %arg17[%c6, %c0_93] : memref<8x128xf32, #tpu.memory_space<vmem>>, vector<1x128xf32>
    tpu.vector_store %arg17[%c6, %c0_93], %114 {strides = array<i32>} : memref<8x128xf32, #tpu.memory_space<vmem>>, vector<1x128xf32>,
    %116 = vector.extract_strided_slice %101 {offsets = [224, 0], sizes = [1, 128], strides = [1, 1]} : vector<225x128xf32> to vector<1x128xf32>
    %c7 = arith.constant 7 : index
    %c0_94 = arith.constant 0 : index
    %117 = vector.load %arg17[%c7, %c0_94] : memref<8x128xf32, #tpu.memory_space<vmem>>, vector<1x128xf32>
    tpu.vector_store %arg17[%c7, %c0_94], %116 {strides = array<i32>} : memref<8x128xf32, #tpu.memory_space<vmem>>, vector<1x128xf32>,
    %c0_95 = arith.constant 0 : index
    %c0_96 = arith.constant 0 : index
    %118 = vector.load %arg17[%c0_95, %c0_96] : memref<8x128xf32, #tpu.memory_space<vmem>>, vector<8x128xf32>
    %c0_97 = arith.constant 0 : index
    %c0_98 = arith.constant 0 : index
    %119 = vector.load %arg11[%c0_97, %c0_98] : memref<1x128xf32, #tpu.memory_space<vmem>>, vector<1x128xf32>
    %120 = vector.broadcast %119 : vector<1x128xf32> to vector<8x128xf32>
    %121 = arith.addf %118, %120 : vector<8x128xf32>
    %cst_99 = arith.constant 0.000000e+00 : f32
    %122 = vector.broadcast %cst_99 : f32 to vector<8x128xf32>
    %123 = arith.maximumf %121, %122 : vector<8x128xf32>
    %124 = arith.truncf %123 : vector<8x128xf32> to vector<8x128xbf16>
    %c0_100 = arith.constant 0 : index
    %c0_101 = arith.constant 0 : index
    %125 = vector.load %arg12[%c0_100, %c0_101] : memref<128x128xbf16, #tpu.memory_space<vmem>>, vector<128x128xbf16>
    %cst_102 = arith.constant dense<0.000000e+00> : vector<8x128xf32>
    %126 = tpu.matmul %124, %125, %cst_102 {dimension_numbers = #tpu.dot_dimension_numbers<[1], [0], [0], [1], [0, 0, 1, 1], [], []>} : vector<8x128xbf16>, vector<128x128xbf16>, vector<8x128xf32> -> vector<8x128xf32>
    %c0_103 = arith.constant 0 : index
    %c0_104 = arith.constant 0 : index
    %127 = vector.load %arg13[%c0_103, %c0_104] : memref<1x128xf32, #tpu.memory_space<vmem>>, vector<1x128xf32>
    %128 = vector.broadcast %127 : vector<1x128xf32> to vector<8x128xf32>
    %129 = arith.addf %126, %128 : vector<8x128xf32>
    %cst_105 = arith.constant 0.000000e+00 : f32
    %130 = vector.broadcast %cst_105 : f32 to vector<8x128xf32>
    %131 = arith.maximumf %129, %130 : vector<8x128xf32>
    %132 = arith.truncf %131 : vector<8x128xf32> to vector<8x128xbf16>
    %c0_106 = arith.constant 0 : index
    %c0_107 = arith.constant 0 : index
    %133 = vector.load %arg14[%c0_106, %c0_107] : memref<128x128xbf16, #tpu.memory_space<vmem>>, vector<128x128xbf16>
    %cst_108 = arith.constant dense<0.000000e+00> : vector<8x128xf32>
    %134 = tpu.matmul %132, %133, %cst_108 {dimension_numbers = #tpu.dot_dimension_numbers<[1], [0], [0], [1], [0, 0, 1, 1], [], []>} : vector<8x128xbf16>, vector<128x128xbf16>, vector<8x128xf32> -> vector<8x128xf32>
    %c0_109 = arith.constant 0 : index
    %c0_110 = arith.constant 0 : index
    %135 = vector.load %arg15[%c0_109, %c0_110] : memref<1x128xf32, #tpu.memory_space<vmem>>, vector<1x128xf32>
    %136 = vector.broadcast %135 : vector<1x128xf32> to vector<8x128xf32>
    %137 = arith.addf %134, %136 : vector<8x128xf32>
    %c0_111 = arith.constant 0 : index
    %c0_112 = arith.constant 0 : index
    %138 = vector.load %arg16[%c0_111, %c0_112] : memref<8x128xf32, #tpu.memory_space<vmem>>, vector<8x128xf32>
    tpu.vector_store %arg16[%c0_111, %c0_112], %137 {strides = array<i32>} : memref<8x128xf32, #tpu.memory_space<vmem>>, vector<8x128xf32>,
    return
  }
  func.func @transform_0(%arg0: i32) -> (i32, i32) {
    %c0_i32 = arith.constant 0 : i32
    %c0_i32_0 = arith.constant 0 : i32
    return %arg0, %c0_i32 : i32, i32
  }
  func.func @transform_1(%arg0: i32) -> (i32, i32, i32) {
    %c0_i32 = arith.constant 0 : i32
    %c0_i32_0 = arith.constant 0 : i32
    %c0_i32_1 = arith.constant 0 : i32
    %c0_i32_2 = arith.constant 0 : i32
    return %c0_i32, %c0_i32_0, %c0_i32_1 : i32, i32, i32
  }
  func.func @transform_2(%arg0: i32) -> (i32, i32) {
    %c0_i32 = arith.constant 0 : i32
    %c0_i32_0 = arith.constant 0 : i32
    %c0_i32_1 = arith.constant 0 : i32
    return %c0_i32, %c0_i32_0 : i32, i32
  }
  func.func @transform_3(%arg0: i32) -> (i32, i32) {
    %c0_i32 = arith.constant 0 : i32
    %c0_i32_0 = arith.constant 0 : i32
    %c0_i32_1 = arith.constant 0 : i32
    return %c0_i32, %c0_i32_0 : i32, i32
  }
  func.func @transform_4(%arg0: i32) -> (i32, i32) {
    %c0_i32 = arith.constant 0 : i32
    %c0_i32_0 = arith.constant 0 : i32
    %c0_i32_1 = arith.constant 0 : i32
    return %c0_i32, %c0_i32_0 : i32, i32
  }
  func.func @transform_5(%arg0: i32) -> (i32, i32, i32) {
    %c0_i32 = arith.constant 0 : i32
    %c0_i32_0 = arith.constant 0 : i32
    %c0_i32_1 = arith.constant 0 : i32
    %c0_i32_2 = arith.constant 0 : i32
    return %c0_i32, %c0_i32_0, %c0_i32_1 : i32, i32, i32
  }
  func.func @transform_6(%arg0: i32) -> (i32, i32) {
    %c0_i32 = arith.constant 0 : i32
    %c0_i32_0 = arith.constant 0 : i32
    %c0_i32_1 = arith.constant 0 : i32
    return %c0_i32, %c0_i32_0 : i32, i32
  }
  func.func @transform_7(%arg0: i32) -> (i32, i32) {
    %c0_i32 = arith.constant 0 : i32
    %c0_i32_0 = arith.constant 0 : i32
    %c0_i32_1 = arith.constant 0 : i32
    return %c0_i32, %c0_i32_0 : i32, i32
  }
  func.func @transform_8(%arg0: i32) -> (i32, i32) {
    %c0_i32 = arith.constant 0 : i32
    %c0_i32_0 = arith.constant 0 : i32
    %c0_i32_1 = arith.constant 0 : i32
    return %c0_i32, %c0_i32_0 : i32, i32
  }
  func.func @transform_9(%arg0: i32) -> (i32, i32, i32) {
    %c0_i32 = arith.constant 0 : i32
    %c0_i32_0 = arith.constant 0 : i32
    %c0_i32_1 = arith.constant 0 : i32
    %c0_i32_2 = arith.constant 0 : i32
    return %c0_i32, %c0_i32_0, %c0_i32_1 : i32, i32, i32
  }
  func.func @transform_10(%arg0: i32) -> (i32, i32) {
    %c0_i32 = arith.constant 0 : i32
    %c0_i32_0 = arith.constant 0 : i32
    %c0_i32_1 = arith.constant 0 : i32
    return %c0_i32, %c0_i32_0 : i32, i32
  }
  func.func @transform_11(%arg0: i32) -> (i32, i32) {
    %c0_i32 = arith.constant 0 : i32
    %c0_i32_0 = arith.constant 0 : i32
    %c0_i32_1 = arith.constant 0 : i32
    return %c0_i32, %c0_i32_0 : i32, i32
  }
  func.func @transform_12(%arg0: i32) -> (i32, i32) {
    %c0_i32 = arith.constant 0 : i32
    %c0_i32_0 = arith.constant 0 : i32
    %c0_i32_1 = arith.constant 0 : i32
    return %c0_i32, %c0_i32_0 : i32, i32
  }
  func.func @transform_13(%arg0: i32) -> (i32, i32) {
    %c0_i32 = arith.constant 0 : i32
    %c0_i32_0 = arith.constant 0 : i32
    %c0_i32_1 = arith.constant 0 : i32
    return %c0_i32, %c0_i32_0 : i32, i32
  }
  func.func @transform_14(%arg0: i32) -> (i32, i32) {
    %c0_i32 = arith.constant 0 : i32
    %c0_i32_0 = arith.constant 0 : i32
    %c0_i32_1 = arith.constant 0 : i32
    return %c0_i32, %c0_i32_0 : i32, i32
  }
  func.func @transform_15(%arg0: i32) -> (i32, i32) {
    %c0_i32 = arith.constant 0 : i32
    %c0_i32_0 = arith.constant 0 : i32
    return %arg0, %c0_i32 : i32, i32
  }
}

</mosaic_0001>

<bundles_post_ra>
// kernel: lenet_forward.1
= control target key start
LH: loop header
LB: loop body
LE: loop exit
PB: predicated region body
PF: predicated region fallthrough
CT: control target
= control target key end

     0   :  { %v12235_v1 = vmov 0   ;;  %vm925_vm0 = vcmask 1046528   ;;  %vm189_vm1 = vsmask.f32 7424  ;;  %vm377_vm2 = vcmask 785408   ;;  %s12219_s1 = inlined_call_operand.vmem [shape: bf16[5,96,168], index: 1, kind: input, shape index: {}]   ;;  %s12220_s0 = inlined_call_operand.vmem [shape: bf16[256,96], index: 0, kind: input, shape index: {}]   ;;  %s12221_s3 = inlined_call_operand.vmem [shape: bf16[168,128], index: 3, kind: input, shape index: {}]   ;;  %s12222_s4 = inlined_call_operand.vmem [shape: bf16[168,128], index: 4, kind: input, shape index: {}]   ;;  %s12223_s2 = inlined_call_operand.vmem [shape: f32[1,168], index: 2, kind: input, shape index: {}]   ;;  %s12224_s5 = inlined_call_operand.vmem [shape: bf16[5,128,160], index: 5, kind: input, shape index: {}]   ;;  %s12225_s7 = inlined_call_operand.vmem [shape: bf16[160,128], index: 7, kind: input, shape index: {}]   ;;  %s12226_s8 = inlined_call_operand.vmem [shape: bf16[160,128], index: 8, kind: input, shape index: {}]   ;;  %s12227_s6 = inlined_call_operand.vmem [shape: f32[1,160], index: 6, kind: input, shape index: {}]   ;;  %s12228_s9 = inlined_call_operand.vmem [shape: bf16[5,128,128], index: 9, kind: input, shape index: {}]   ;;  %s12229_s11 = inlined_call_operand.vmem [shape: bf16[128,128], index: 11, kind: input, shape index: {}]   ;;  %s12230_s13 = inlined_call_operand.vmem [shape: bf16[128,128], index: 13, kind: input, shape index: {}]   ;;  %s12231_s10 = inlined_call_operand.vmem [shape: f32[1,128], index: 10, kind: input, shape index: {}]   ;;  %s12232_s12 = inlined_call_operand.vmem [shape: f32[1,128], index: 12, kind: input, shape index: {}]   ;;  %s12233_s14 = inlined_call_operand.vmem [shape: f32[1,128], index: 14, kind: input, shape index: {}]   ;;  %s12234_s15 = inlined_call_operand.vmem [shape: f32[8,128], index: 15, kind: output, shape index: {}]  }
   0x1   :  { %v9008_v0 = vld [vmem:[%s12219_s1 + $0x64] ss:$8 sps:$4 sm:$0xff]   ;;  %458 = vmatprep.mubr.bf16.mxu1 %v12235_v1  ;;  %1097 = vmatprep.mubr.bf16.mxu0 %v12235_v1  ;;  %v9012_v3 = vld [vmem:[%s12219_s1 + $0x60] ss:$8 sps:$4 sm:$0xff]   ;;  %v9014_v5 = vld [vmem:[%s12219_s1 + $0x74] ss:$8 sps:$4 sm:$0xff]  }
   0x2   :  { %v9010_v2 = vld [vmem:[%s12219_s1 + $0xc4] ss:$8 sps:$4 sm:$0xff]   ;;  %426 = vmatprep.subr.bf16.mxu1 %v9008_v0  ;;  %v9013_v4 = vld [vmem:[%s12219_s1 + $0xc0] ss:$8 sps:$4 sm:$0xff]   ;;  %v9016_v6 = vld [vmem:[%s12219_s1 + $0xd4] ss:$8 sps:$4 sm:$0xff]  }
   0x3   :  { %1065 = vmatprep.subr.bf16.mxu0 %v9010_v2  ;;  %427 = vmatpush1.bf16.msra.mxu1 %v9012_v3  ;;  %v9018_v7 = vld [vmem:[%s12219_s1 + $0x70] ss:$8 sps:$4 sm:$0xff]   ;;  %v9020_v9 = vld [vmem:[%s12219_s1 + $0x84] ss:$8 sps:$4 sm:$0xff]   ;;  %v9024_v11 = vld [vmem:[%s12219_s1 + $0x80] ss:$8 sps:$4 sm:$0xff]  }
   0x4   :  { %1066 = vmatpush1.bf16.msra.mxu0 %v9013_v4  ;;  %428 = vmatprep.subr.bf16.mxu1 %v9014_v5  ;;  %v9019_v8 = vld [vmem:[%s12219_s1 + $0xd0] ss:$8 sps:$4 sm:$0xff]   ;;  %v9022_v10 = vld [vmem:[%s12219_s1 + $0xe4] ss:$8 sps:$4 sm:$0xff]   ;;  %v9025_v12 = vld [vmem:[%s12219_s1 + $0xe0] ss:$8 sps:$4 sm:$0xff]  }
   0x5   :  { %1067 = vmatprep.subr.bf16.mxu0 %v9016_v6  ;;  %v9026_v13 = vld [vmem:[%s12219_s1 + $0x94] ss:$8 sps:$4 sm:$0xff]   ;;  %v9030_v15 = vld [vmem:[%s12219_s1 + $0x90] ss:$8 sps:$4 sm:$0xff]   ;;  %v9032_v17 = vld [vmem:[%s12219_s1 + $0xa4] ss:$8 sps:$4 sm:$0xff]  }
   0x6   :  { %v9028_v14 = vld [vmem:[%s12219_s1 + $0xf4] ss:$8 sps:$4 sm:$0xff]   ;;  %v9031_v16 = vld [vmem:[%s12219_s1 + $0xf0] ss:$8 sps:$4 sm:$0xff]   ;;  %v9034_v18 = vld [vmem:[%s12219_s1 + $0x104] ss:$8 sps:$4 sm:$0xff]  }
   0x7   :  { %429 = vmatpush1.bf16.msra.mxu1 %v9018_v7  ;;  %v9036_v19 = vld [vmem:[%s12219_s1 + $0xa0] ss:$8 sps:$4 sm:$0xff]   ;;  %v9038_v21 = vld [vmem:[%s12219_s1 + $0xb4] ss:$8 sps:$4 sm:$0xff]   ;;  %v9493_v24 = vld [vmem:[%s12220_s0 + $0x4] sm:$0xf] }
   0x8   :  { %1068 = vmatpush1.bf16.msra.mxu0 %v9019_v8  ;;  %430 = vmatprep.subr.bf16.mxu1 %v9020_v9  ;;  %v9037_v20 = vld [vmem:[%s12219_s1 + $0x100] ss:$8 sps:$4 sm:$0xff]   ;;  %v9040_v22 = vld [vmem:[%s12219_s1 + $0x114] ss:$8 sps:$4 sm:$0xff]   ;;  %v9042_v28 = vld [vmem:[%s12219_s1 + $0xb0] ss:$8 sps:$4 sm:$0xff]  }
   0x9   :  { %1069 = vmatprep.subr.bf16.mxu0 %v9022_v10  ;;  %v51_v23 = vld [vmem:[%s12220_s0] sm:$0xf]  ;;  %v9501_v26 = vld [vmem:[%s12220_s0 + $0x8] sm:$0xff]   ;;  %v9043_v29 = vld [vmem:[%s12219_s1 + $0x110] ss:$8 sps:$4 sm:$0xff]   ;;  %vm1795_vm4 = vcmask 1045504  }
   0xa   :  { %v9496_v25 = vcombine.low %v51_v23, %v9493_v24  ;;  %v908_v27 = vld [vmem:[%s12220_s0] sm:$0xe]  ;;  %v198_v33 = vshll.u32 %v9501_v26, 16  ;;  %v927_v34 = vrot.slane %v9501_v26, 1  ;;  %v9049_v35 = vld [vmem:[%s12219_s1 + $0x124] ss:$8 sps:$4 sm:$0xff]  }
   0xb   :  { %431 = vmatpush1.bf16.msra.mxu1 %v9024_v11  ;;  %v9513_v30 = vcombine.low %v908_v27, %v9493_v24  ;;  %v9526_v37 = vld [vmem:[%s12220_s0 + $0x10] sm:$0xff]   ;;  %v202_v41 = vshrl.u32 %v9501_v26, 16  ;;  %v9047_v45 = vld [vmem:[%s12219_s1 + $0x120] ss:$8 sps:$4 sm:$0xff]   ;;  %v9545_v50 = vld [vmem:[%s12220_s0 + $0x18] sm:$0xff]   ;;  %vm2497_vm5 = vcmask 1043456  }
   0xc   :  { %1070 = vmatpush1.bf16.msra.mxu0 %v9025_v12  ;;  %432 = vmatprep.subr.bf16.mxu1 %v9026_v13  ;;  %v191_v31 = vshrl.u32 %v9496_v25, 16  ;;  %v193_v32 = vshll.u32 %v9496_v25, 16  ;;  %v200_v39 = vrot.slane %v198_v33, 1  ;;  %v1349_v40 = vrot.slane %v198_v33, 2  ;;  %v9054_v48 = vld [vmem:[%s12219_s1 + $0x134] ss:$8 sps:$4 sm:$0xff]  }
   0xd   :  { %1071 = vmatprep.subr.bf16.mxu0 %v9028_v14  ;;  %v926_v36 = vrot.slane %v9513_v30, 1  ;;  %v1348_v43 = vrot.slane %v202_v41, 1  ;;  %v206_v46 = vshll.u32 %v9526_v37, 16  ;;  %v9052_v51 = vld [vmem:[%s12219_s1 + $0x130] ss:$8 sps:$4 sm:$0xff]   ;;  %v929_v54 = vrot.slane %v9526_v37, 1 }
   0xe   :  { %v195_v38 = vrot.slane %v193_v32, 1  ;;  %v204_v52 = vor.u32 %v202_v41, %v200_v39  ;;  %v9060_v55 = vld [vmem:[%s12219_s1 + $0x144] ss:$8 sps:$4 sm:$0xff]   ;;  %v210_v58 = vshrl.u32 %v9526_v37, 16  ;;  %v214_v59 = vshll.u32 %v9545_v50, 16  ;;  %v9627_v23 = vld [vmem:[%s12220_s0 + $0x30] sm:$0xff]  }
   0xf   :  { %433 = vmatpush1.bf16.msra.mxu1 %v9030_v15  ;;  %v928_v44 = vsel %vm925_vm0, %v926_v36, %v927_v34  ;;  %v9538_v49 = vor.u32 %v1349_v40, %v1348_v43  ;;  %v208_v53 = vrot.slane %v206_v46, 1  ;;  %v930_v57 = vsel %vm925_vm0, %v927_v34, %v929_v54  ;;  %v9058_v60 = vld [vmem:[%s12219_s1 + $0x140] ss:$8 sps:$4 sm:$0xff]   ;;  %v9066_v62 = vld [vmem:[%s12219_s1 + $0x154] ss:$8 sps:$4 sm:$0xff]  }
  0x10   :  { %1072 = vmatpush1.bf16.msra.mxu0 %v9031_v16  ;;  %434 = vmatprep.subr.bf16.mxu1 %v9032_v17  ;;  %v196_v42 = vor.u32 %v195_v38, %v191_v31  ;;  %v931_v61 = vrot.slane %v9545_v50, 1  ;;  %v216_v0 = vrot.slane %v214_v59, 1  ;;  %v9580_v2 = vld [vmem:[%s12220_s0 + $0x20] sm:$0xff]   ;;  %v9064_v3 = vld [vmem:[%s12219_s1 + $0x150] ss:$8 sps:$4 sm:$0xff]   ;;  %v218_v7 = vshrl.u32 %v9545_v50, 16 }
  0x11   :  { %1073 = vmatprep.subr.bf16.mxu0 %v9034_v18  ;;  %v209_v56 = vsel %vm189_vm1, %v204_v52, %v208_v53  ;;  %v212_v63 = vor.u32 %v210_v58, %v208_v53  ;;  %v9071_v4 = vld [vmem:[%s12219_s1 + $0x164] ss:$8 sps:$4 sm:$0xff]   ;;  %v222_v8 = vshll.u32 %v9580_v2, 16  ;;  %v9069_v9 = vld [vmem:[%s12219_s1 + $0x160] ss:$8 sps:$4 sm:$0xff]   ;;  %v933_v10 = vrot.slane %v9580_v2, 1 }
  0x12   :  { %v201_v47 = vsel %vm189_vm1, %v196_v42, %v200_v39  ;;  %v932_v6 = vsel %vm925_vm0, %v929_v54, %v931_v61  ;;  %v9601_v11 = vld [vmem:[%s12220_s0 + $0x28] sm:$0xff]   ;;  %v220_v12 = vor.u32 %v218_v7, %v216_v0  ;;  %v9078_v16 = vld [vmem:[%s12219_s1 + $0x170] ss:$8 sps:$4 sm:$0xff]   ;;  %v9080_v17 = vld [vmem:[%s12219_s1 + $0x174] ss:$8 sps:$4 sm:$0xff]   ;;  %v1341_v27 = vshrl.u32 %v9513_v30, 16 }
  0x13   :  { %435 = vmatpush1.bf16.msra.mxu1 %v9036_v19  ;;  %v217_v5 = vsel %vm189_vm1, %v212_v63, %v216_v0  ;;  %v224_v13 = vrot.slane %v222_v8, 1  ;;  %v9075_v14 = vld [vmem:[%s12219_s1] ss:$8 sps:$4 sm:$0xff]   ;;  %v9077_v15 = vld [vmem:[%s12219_s1 + $0x4] ss:$8 sps:$4 sm:$0xff]   ;;  %v230_v18 = vshll.u32 %v9601_v11, 16 }
  0x14   :  { %1074 = vmatpush1.bf16.msra.mxu0 %v9037_v20  ;;  %436 = vmatprep.subr.bf16.mxu1 %v9038_v21  ;;  %v9083_v19 = vld [vmem:[%s12219_s1 + $0x14] ss:$8 sps:$4 sm:$0xff]   ;;  %v934_v21 = vsel %vm925_vm0, %v931_v61, %v933_v10  ;;  %v9087_v31 = vld [vmem:[%s12219_s1 + $0x24] ss:$8 sps:$4 sm:$0xff]   ;;  %v234_v33 = vshrl.u32 %v9601_v11, 16  ;;  %v1343_v36 = vrot.slane %v1341_v27, 1 }
  0x15   :  { %1075 = vmatprep.subr.bf16.mxu0 %v9040_v22  ;;  %v225_v20 = vsel %vm189_vm1, %v220_v12, %v224_v13  ;;  %v226_v22 = vshrl.u32 %v9580_v2, 16  ;;  %v232_v32 = vrot.slane %v230_v18, 1  ;;  %v1344_v38 = vshll.u32 %v9513_v30, 16  ;;  %v9085_v39 = vld [vmem:[%s12219_s1 + $0x20] ss:$8 sps:$4 sm:$0xff]  }
  0x16   :  { %vm1339_vm3 = vsmask.f32 6400  ;;  %v1352_v40 = vrot.slane %v210_v58, 1  ;;  %v9090_v42 = vld [vmem:[%s12219_s1 + $0x34] ss:$8 sps:$4 sm:$0xff]   ;;  %v1365_v58 = vrot.slane %v230_v18, 2 }
  0x17   :  { %437 = vmatpush1.bf16.msra.mxu1 %v9042_v28  ;;  %v9081_v28 = vld [vmem:[%s12219_s1 + $0x10] ss:$8 sps:$4 sm:$0xff]   ;;  %v228_v34 = vor.u32 %v226_v22, %v224_v13  ;;  %v1346_v43 = vrot.slane %v1344_v38, 2  ;;  %v9099_v30 = vld [vmem:[%s12219_s1 + $0x184] ss:$8 sps:$4 sm:$0xff]   ;;  %v937_v61 = vrot.slane %v9627_v23, 1 }
  0x18   :  { %1076 = vmatpush1.bf16.msra.mxu0 %v9043_v29  ;;  %715 = vmatprep.subr.bf16.mxu1 %v9077_v15  ;;  %v935_v29 = vrot.slane %v9601_v11, 1  ;;  %v9088_v52 = vld [vmem:[%s12219_s1 + $0x30] ss:$8 sps:$4 sm:$0xff]   ;;  %v9093_v53 = vld [vmem:[%s12219_s1 + $0x44] ss:$8 sps:$4 sm:$0xff]   ;;  %vm2448_vm6 = vcmask 326656  }
  0x19   :  { %1521 = vmatprep.subr.bf16.mxu0 %v9049_v35  ;;  %v238_v35 = vshll.u32 %v9627_v23, 16  ;;  %v1347_v54 = vor.u32 %v1346_v43, %v1343_v36  ;;  %vm4170_vm7 = vcmask 1044480   ;;  %vm5197_vm8 = vcmask 261120  }
  0x1a   :  { %7287 = vmatmul.mubr.msk.bf16.vlgmr.msra.gmra.mrb[0].mxu1 %vm377_vm2, %v201_v47  ;;  %v936_v41 = vsel %vm925_vm0, %v933_v10, %v935_v29  ;;  %v1357_v47 = vrot.slane %v214_v59, 2  ;;  %vm9338_vm9 = vmmov 0   ;;  %vm6563_vm10 = vcmask 1041408  }
  0x1b   :  { %7357 = vmatmul.mubr.msk.bf16.vlgmr.msra.gmra.mrb[0].mxu0 %vm377_vm2, %v928_v44  ;;  %468 = vmatprep.mubr.bf16.mxu1 %v12235_v1  ;;  %v1353_v44 = vrot.slane %v206_v46, 2  ;;  %v9669_v59 = vsel %vm1339_vm3, %v1347_v54, %v9538_v49  ;;  %v1369_v12 = vrot.slane %v238_v35, 2  ;;  %v9753_v54 = vld [vmem:[%s12220_s0 + $0x50] sm:$0xff]  }
  0x1c   :  { %1522 = vmatpush1.bf16.msra.mxu0 %v9047_v45  ;;  %1107 = vmatprep.mubr.bf16.mxu0 %v12235_v1  ;;  %v1356_v45 = vrot.slane %v218_v7, 1  ;;  %v9091_v7 = vld [vmem:[%s12219_s1 + $0x40] ss:$8 sps:$4 sm:$0xff]  }
  0x1d   :  { %1523 = vmatprep.subr.bf16.mxu0 %v9054_v48  ;;  %716 = vmatpush1.bf16.msra.mxu1 %v9075_v14  ;;  %v1360_v48 = vrot.slane %v226_v22, 1  ;;  %v1354_v46 = vor.u32 %v1353_v44, %v1352_v40  ;;  %v938_v14 = vsel %vm925_vm0, %v935_v29, %v937_v61  ;;  %v9718_v22 = vld [vmem:[%s12220_s0 + $0x40] sm:$0xff]   ;;  %v9736_v40 = vld [vmem:[%s12220_s0 + $0x48] sm:$0xff]  }
  0x1e   :  { %717 = vmatprep.subr.bf16.mxu1 %v9083_v19 }
  0x20   :  { %1524 = vmatpush1.bf16.msra.mxu0 %v9052_v51  ;;  %v233_v51 = vsel %vm189_vm1, %v228_v34, %v232_v32 }
  0x21   :  { %1525 = vmatprep.subr.bf16.mxu0 %v9060_v55  ;;  %718 = vmatpush1.bf16.msra.mxu1 %v9081_v28  ;;  %v1361_v55 = vrot.slane %v222_v8, 2 }
  0x22   :  { %7288 = vmatmul.mubr.msk.bf16.gmra.mrb[4].mxu1 %vm377_vm2, %v209_v56  ;;  %719 = vmatprep.subr.bf16.mxu1 %v9087_v31  ;;  %v1364_v56 = vrot.slane %v234_v33, 1 }
  0x23   :  { %7358 = vmatmul.mubr.msk.bf16.gmra.mrb[4].mxu0 %vm377_vm2, %v930_v57  ;;  %478 = vmatprep.mubr.bf16.mxu1 %v12235_v1  ;;  %v1358_v57 = vor.u32 %v1357_v47, %v1356_v45  ;;  %v262_v45 = vshll.u32 %v9736_v40, 16 }
  0x24   :  { %1117 = vmatprep.mubr.bf16.mxu0 %v12235_v1  ;;  %1526 = vmatpush1.bf16.msra.mxu0 %v9058_v60  ;;  %v1362_v60 = vor.u32 %v1361_v55, %v1360_v48  ;;  %v1366_v0 = vor.u32 %v1365_v58, %v1364_v56  ;;  %v266_v55 = vshrl.u32 %v9736_v40, 16 }
  0x25   :  { %1527 = vmatprep.subr.bf16.mxu0 %v9066_v62  ;;  %720 = vmatpush1.bf16.msra.mxu1 %v9085_v39  ;;  %v9676_v62 = vsel %vm1339_vm3, %v9538_v49, %v1354_v46  ;;  %v9679_v63 = vsel %vm1339_vm3, %v1354_v46, %v1358_v57  ;;  %v941_v39 = vrot.slane %v9718_v22, 1  ;;  %v1381_v46 = vrot.slane %v262_v45, 2 }
  0x26   :  { %721 = vmatprep.subr.bf16.mxu1 %v9090_v42  ;;  %v9690_v49 = vsel %vm1339_vm3, %v1358_v57, %v1362_v60  ;;  %v9696_v8 = vsel %vm1339_vm3, %v1362_v60, %v1366_v0  ;;  %v1380_v56 = vrot.slane %v266_v55, 1  ;;  %v270_v60 = vshll.u32 %v9753_v54, 16 }
  0x28   :  { %1528 = vmatpush1.bf16.msra.mxu0 %v9064_v3  ;;  %v236_v3 = vor.u32 %v234_v33, %v232_v32  ;;  %v254_v33 = vshll.u32 %v9718_v22, 16 }
  0x29   :  { %1529 = vmatprep.subr.bf16.mxu0 %v9071_v4  ;;  %v240_v4 = vrot.slane %v238_v35, 1  ;;  %722 = vmatpush1.bf16.msra.mxu1 %v9088_v52  ;;  %v264_v52 = vrot.slane %v262_v45, 1 }
  0x2a   :  { %7289 = vmatmul.mubr.msk.bf16.gmra.mrb[8].mxu1 %vm377_vm2, %v217_v5  ;;  %v9686_v5 = vld [vmem:[%s12220_s0 + $0x38] sm:$0xff]   ;;  %723 = vmatprep.subr.bf16.mxu1 %v9093_v53  ;;  %v256_v38 = vrot.slane %v254_v33, 1  ;;  %v1377_v43 = vrot.slane %v254_v33, 2  ;;  %v943_v53 = vrot.slane %v9736_v40, 1 }
  0x2b   :  { %7359 = vmatmul.mubr.msk.bf16.gmra.mrb[8].mxu0 %vm377_vm2, %v932_v6  ;;  %488 = vmatprep.mubr.bf16.mxu1 %v12235_v1  ;;  %v242_v6 = vshrl.u32 %v9627_v23, 16  ;;  %v241_v13 = vsel %vm189_vm1, %v236_v3, %v240_v4  ;;  %v246_v15 = vshll.u32 %v9686_v5, 16  ;;  %v250_v27 = vshrl.u32 %v9686_v5, 16 }
  0x2c   :  { %1127 = vmatprep.mubr.bf16.mxu0 %v12235_v1  ;;  %1530 = vmatpush1.bf16.msra.mxu0 %v9069_v9  ;;  %v9096_v9 = vld [vmem:[%s12219_s1 + $0x54] ss:$8 sps:$4 sm:$0xff]   ;;  %v944_v58 = vsel %vm925_vm0, %v941_v39, %v943_v53  ;;  %v268_v3 = vor.u32 %v266_v55, %v264_v52 }
  0x2d   :  { %1531 = vmatprep.subr.bf16.mxu0 %v9080_v17  ;;  %v1368_v10 = vrot.slane %v242_v6, 1  ;;  %724 = vmatpush1.bf16.msra.mxu1 %v9091_v7  ;;  %v9094_v17 = vld [vmem:[%s12219_s1 + $0x50] ss:$8 sps:$4 sm:$0xff]   ;;  %v244_v19 = vor.u32 %v242_v6, %v240_v4  ;;  %v1372_v28 = vrot.slane %v250_v27, 1  ;;  %v1373_v29 = vrot.slane %v246_v15, 2 }
  0x2e   :  { %725 = vmatprep.subr.bf16.mxu1 %v9096_v9  ;;  %v272_v4 = vrot.slane %v270_v60, 1  ;;  %v945_v6 = vrot.slane %v9753_v54, 1  ;;  %v9770_v7 = vld [vmem:[%s12220_s0 + $0x58] sm:$0xff]   ;;  %v274_v9 = vshrl.u32 %v9753_v54, 16  ;;  %v9827_v55 = vld [vmem:[%s12220_s0 + $0x70] sm:$0xff]  }
  0x2f   :  { %v1374_v34 = vor.u32 %v1373_v29, %v1372_v28  ;;  %v282_v28 = vshrl.u32 %v9770_v7, 16 }
  0x30   :  { %1532 = vmatpush1.bf16.msra.mxu0 %v9078_v16  ;;  %v1370_v16 = vor.u32 %v1369_v12, %v1368_v10  ;;  %v1384_v10 = vrot.slane %v274_v9, 1  ;;  %v1385_v12 = vrot.slane %v270_v60, 2  ;;  %v9836_v60 = vld [vmem:[%s12220_s0 + $0x78] sm:$0xf] }
  0x31   :  { %1935 = vmatprep.subr.bf16.mxu0 %v9099_v30  ;;  %726 = vmatpush1.bf16.msra.mxu1 %v9094_v17  ;;  %v1388_v29 = vrot.slane %v282_v28, 1 }
  0x32   :  { %7290 = vmatmul.mubr.msk.bf16.gmra.mrb[12].mxu1 %vm377_vm2, %v225_v20  ;;  %v9708_v18 = vsel %vm1339_vm3, %v1366_v0, %v1370_v16  ;;  %v248_v20 = vrot.slane %v246_v15, 1  ;;  %2501 = vmatprep.subr.bf16.mxu1 %v12235_v1  ;;  %v9726_v35 = vsel %vm1339_vm3, %v1370_v16, %v1374_v34  ;;  %v278_v15 = vshll.u32 %v9770_v7, 16 }
  0x33   :  { %7360 = vmatmul.mubr.msk.bf16.gmra.mrb[12].mxu0 %vm377_vm2, %v934_v21  ;;  %498 = vmatprep.mubr.bf16.mxu1 %v12235_v1  ;;  %v939_v21 = vrot.slane %v9686_v5, 1  ;;  %v1386_v16 = vor.u32 %v1385_v12, %v1384_v10 }
  0x34   :  { %1137 = vmatprep.mubr.bf16.mxu0 %v12235_v1  ;;  %v249_v31 = vsel %vm189_vm1, %v244_v19, %v248_v20  ;;  %v252_v36 = vor.u32 %v250_v27, %v248_v20  ;;  %v276_v19 = vor.u32 %v274_v9, %v272_v4  ;;  %v280_v20 = vrot.slane %v278_v15, 1  ;;  %v9787_v27 = vld [vmem:[%s12220_s0 + $0x60] sm:$0xff]  }
  0x35   :  { %v940_v32 = vsel %vm925_vm0, %v937_v61, %v939_v21  ;;  %v942_v44 = vsel %vm925_vm0, %v939_v21, %v941_v39  ;;  %v1382_v61 = vor.u32 %v1381_v46, %v1380_v56  ;;  %v947_v21 = vrot.slane %v9770_v7, 1 }
  0x36   :  { %v257_v30 = vsel %vm189_vm1, %v252_v36, %v256_v38  ;;  %v284_v39 = vor.u32 %v282_v28, %v280_v20  ;;  %v290_v45 = vshrl.u32 %v9787_v27, 16 }
  0x37   :  { %v9777_v17 = vsel %vm1339_vm3, %v1382_v61, %v1386_v16  ;;  %v948_v33 = vsel %vm925_vm0, %v945_v6, %v947_v21 }
  0x3a   :  { %7291 = vmatmul.mubr.msk.bf16.gmra.mrb[16].mxu1 %vm377_vm2, %v233_v51 }
  0x3b   :  { %7361 = vmatmul.mubr.msk.bf16.gmra.mrb[16].mxu0 %vm377_vm2, %v936_v41  ;;  %508 = vmatprep.mubr.bf16.mxu1 %v12235_v1  ;;  %v258_v41 = vshrl.u32 %v9718_v22, 16 }
  0x3c   :  { %1147 = vmatprep.mubr.bf16.mxu0 %v12235_v1 }
  0x3d   :  { %v1376_v42 = vrot.slane %v258_v41, 1  ;;  %v260_v51 = vor.u32 %v258_v41, %v256_v38 }
  0x3f   :  { %v1378_v47 = vor.u32 %v1377_v43, %v1376_v42  ;;  %v265_v57 = vsel %vm189_vm1, %v260_v51, %v264_v52  ;;  %v949_v42 = vrot.slane %v9787_v27, 1  ;;  %v9809_v43 = vld [vmem:[%s12220_s0 + $0x68] sm:$0xff]  }
  0x41   :  { %v9743_v48 = vsel %vm1339_vm3, %v1374_v34, %v1378_v47  ;;  %v9760_v0 = vsel %vm1339_vm3, %v1378_v47, %v1382_v61  ;;  %v286_v34 = vshll.u32 %v9787_v27, 16  ;;  %v294_v47 = vshll.u32 %v9809_v43, 16  ;;  %v95_v61 = vld [vmem:[%s12220_s0 + $0x7c] sm:$0x7] }
  0x42   :  { %7292 = vmatmul.mubr.msk.bf16.gmra.mrb[20].mxu1 %vm377_vm2, %v241_v13  ;;  %v273_v13 = vsel %vm189_vm1, %v268_v3, %v272_v4  ;;  %v7274_v9 = vcombine.low %v9836_v60, %v95_v61 }
  0x43   :  { %7362 = vmatmul.mubr.msk.bf16.gmra.mrb[20].mxu0 %vm377_vm2, %v938_v14  ;;  %518 = vmatprep.mubr.bf16.mxu1 %v12235_v1  ;;  %v946_v14 = vsel %vm925_vm0, %v943_v53, %v945_v6  ;;  %v288_v41 = vrot.slane %v286_v34, 1  ;;  %v296_v52 = vrot.slane %v294_v47, 1  ;;  %v951_v53 = vrot.slane %v9809_v43, 1 }
  0x44   :  { %1157 = vmatprep.mubr.bf16.mxu0 %v12235_v1  ;;  %v953_v6 = vrot.slane %v9827_v55, 1  ;;  %v314_v28 = vshrl.u32 %v7274_v9, 16 }
  0x45   :  { %v292_v51 = vor.u32 %v290_v45, %v288_v41  ;;  %v952_v46 = vsel %vm925_vm0, %v949_v42, %v951_v53 }
  0x46   :  { %v954_v12 = vsel %vm925_vm0, %v951_v53, %v953_v6  ;;  %v9118_v53 = vld [vmem:[%s12221_s3] sm:$0xff]  }
  0x47   :  { %v297_v56 = vsel %vm189_vm1, %v292_v51, %v296_v52 }
  0x4a   :  { %7293 = vmatmul.mubr.msk.bf16.gmra.mrb[24].mxu1 %vm377_vm2, %v249_v31  ;;  %v1389_v31 = vrot.slane %v278_v15, 2 }
  0x4b   :  { %7363 = vmatmul.mubr.msk.bf16.gmra.mrb[24].mxu0 %vm377_vm2, %v940_v32  ;;  %528 = vmatprep.mubr.bf16.mxu1 %v12235_v1  ;;  %v281_v32 = vsel %vm189_vm1, %v276_v19, %v280_v20  ;;  %v955_v19 = vrot.slane %v7274_v9, 1 }
  0x4c   :  { %1167 = vmatprep.mubr.bf16.mxu0 %v12235_v1  ;;  %v9793_v36 = vor.u32 %v1389_v31, %v1388_v29  ;;  %v9097_v31 = vld [vmem:[%s12219_s1 + $0x180] ss:$8 sps:$4 sm:$0xff]  }
  0x4e   :  { %v9797_v38 = vsel %vm1339_vm3, %v1386_v16, %v9793_v36 }
  0x52   :  { %7294 = vmatmul.mubr.msk.bf16.gmra.mrb[28].mxu1 %vm377_vm2, %v257_v30  ;;  %v289_v30 = vsel %vm189_vm1, %v284_v39, %v288_v41  ;;  %v9105_v39 = vld [vmem:[%s12219_s1 + $0x1a4] ss:$8 sps:$4 sm:$0xff]   ;;  %v9106_v41 = vld [vmem:[%s12219_s1 + $0x1b0] ss:$8 sps:$4 sm:$0xff]  }
  0x53   :  { %7364 = vmatmul.mubr.msk.bf16.gmra.mrb[28].mxu0 %vm377_vm2, %v942_v44  ;;  %538 = vmatprep.mubr.bf16.mxu1 %v12235_v1  ;;  %v950_v44 = vsel %vm925_vm0, %v947_v21, %v949_v42  ;;  %v956_v21 = vsel %vm925_vm0, %v953_v6, %v955_v19  ;;  %v9111_v42 = vld [vmem:[%s12219_s1 + $0x1c4] ss:$8 sps:$4 sm:$0xff]   ;;  %v1778_v6 = vld [vmem:[%s12220_s0] sm:$0xc] }
  0x54   :  { %1177 = vmatprep.mubr.bf16.mxu0 %v12235_v1 }
  0x5a   :  { %7295 = vmatmul.mubr.msk.bf16.gmra.mrb[32].mxu1 %vm377_vm2, %v265_v57  ;;  %v298_v57 = vshrl.u32 %v9809_v43, 16 }
  0x5b   :  { %7365 = vmatmul.mubr.msk.bf16.gmra.mrb[32].mxu0 %vm377_vm2, %v944_v58  ;;  %548 = vmatprep.mubr.bf16.mxu1 %v12235_v1  ;;  %v302_v58 = vshll.u32 %v9827_v55, 16 }
  0x5c   :  { %1187 = vmatprep.mubr.bf16.mxu0 %v12235_v1  ;;  %v300_v3 = vor.u32 %v298_v57, %v296_v52 }
  0x5d   :  { %v304_v4 = vrot.slane %v302_v58, 1 }
  0x5f   :  { %v305_v10 = vsel %vm189_vm1, %v300_v3, %v304_v4  ;;  %v9119_v3 = vld [vmem:[%s12221_s3 + $0x8] sm:$0xff]  }
  0x62   :  { %7296 = vmatmul.mubr.msk.bf16.gmra.mrb[36].mxu1 %vm377_vm2, %v273_v13  ;;  %v306_v13 = vshrl.u32 %v9827_v55, 16 }
  0x63   :  { %7366 = vmatmul.mubr.msk.bf16.gmra.mrb[36].mxu0 %vm377_vm2, %v946_v14  ;;  %558 = vmatprep.mubr.bf16.mxu1 %v12235_v1  ;;  %v310_v14 = vshll.u32 %v7274_v9, 16 }
  0x64   :  { %1197 = vmatprep.mubr.bf16.mxu0 %v12235_v1  ;;  %v308_v15 = vor.u32 %v306_v13, %v304_v4  ;;  %v82_v4 = vld [vmem:[%s12220_s0 + $0x7c] sm:$0x3] }
  0x65   :  { %v312_v16 = vrot.slane %v310_v14, 1  ;;  %v7303_v9 = vcombine.low %v9836_v60, %v82_v4  ;;  %v1797_v14 = vrot.slane %v9501_v26, 2 }
  0x67   :  { %v313_v20 = vsel %vm189_vm1, %v308_v15, %v312_v16  ;;  %v316_v29 = vor.u32 %v314_v28, %v312_v16  ;;  %v9121_v15 = vld [vmem:[%s12221_s3 + $0x18] sm:$0xff]   ;;  %v9123_v28 = vld [vmem:[%s12221_s3 + $0x28] sm:$0xff]  }
  0x6a   :  { %7297 = vmatmul.mubr.msk.bf16.gmra.mrb[40].mxu1 %vm377_vm2, %v281_v32  ;;  %v9102_v32 = vld [vmem:[%s12219_s1 + $0x194] ss:$8 sps:$4 sm:$0xff]  }
  0x6b   :  { %7367 = vmatmul.mubr.msk.bf16.gmra.mrb[40].mxu0 %vm377_vm2, %v948_v33  ;;  %568 = vmatprep.mubr.bf16.mxu1 %v12235_v1  ;;  %v9100_v33 = vld [vmem:[%s12219_s1 + $0x190] ss:$8 sps:$4 sm:$0xff]  }
  0x6c   :  { %1207 = vmatprep.mubr.bf16.mxu0 %v12235_v1 }
  0x72   :  { %7298 = vmatmul.mubr.msk.bf16.gmra.mrb[44].mxu1 %vm377_vm2, %v289_v30  ;;  %v9109_v30 = vld [vmem:[%s12219_s1 + $0x1c0] ss:$8 sps:$4 sm:$0xff]  }
  0x73   :  { %7368 = vmatmul.mubr.msk.bf16.gmra.mrb[44].mxu0 %vm377_vm2, %v950_v44  ;;  %578 = vmatprep.mubr.bf16.mxu1 %v12235_v1  ;;  %v9112_v44 = vld [vmem:[%s12219_s1 + $0x1d0] ss:$8 sps:$4 sm:$0xff]  }
  0x74   :  { %1217 = vmatprep.mubr.bf16.mxu0 %v12235_v1 }
  0x7a   :  { %7299 = vmatmul.mubr.msk.bf16.gmra.mrb[48].mxu1 %vm377_vm2, %v297_v56 }
  0x7b   :  { %7369 = vmatmul.mubr.msk.bf16.gmra.mrb[48].mxu0 %vm377_vm2, %v952_v46  ;;  %588 = vmatprep.mubr.bf16.mxu1 %v12235_v1 }
  0x7c   :  { %1227 = vmatprep.mubr.bf16.mxu0 %v12235_v1 }
  0x82   :  { %7300 = vmatmul.mubr.msk.bf16.gmra.mrb[52].mxu1 %vm377_vm2, %v305_v10  ;;  %v7426_v10 = vcombine.low %v1778_v6, %v9493_v24  ;;  %v1799_v24 = vrot.slane %v9526_v37, 2 }
  0x83   :  { %7370 = vmatmul.mubr.msk.bf16.gmra.mrb[52].mxu0 %vm377_vm2, %v954_v12  ;;  %598 = vmatprep.mubr.bf16.mxu1 %v12235_v1  ;;  %v9120_v12 = vld [vmem:[%s12221_s3 + $0x10] sm:$0xff]  }
  0x84   :  { %1237 = vmatprep.mubr.bf16.mxu0 %v12235_v1  ;;  %v1800_v16 = vsel %vm1795_vm4, %v1797_v14, %v1799_v24 }
  0x8a   :  { %7301 = vmatmul.mubr.msk.bf16.gmra.mrb[56].mxu1 %vm377_vm2, %v313_v20  ;;  %v1803_v20 = vrot.slane %v9580_v2, 2 }
  0x8b   :  { %7371 = vmatmul.mubr.msk.bf16.gmra.mrb[56].mxu0 %vm377_vm2, %v956_v21  ;;  %608 = vmatprep.mubr.bf16.mxu1 %v12235_v1 }
  0x8c   :  { %1247 = vmatprep.mubr.bf16.mxu0 %v12235_v1 }
  0x92   :  { %7302 = vmatmul.mubr.msk.bf16.gmra.mrb[60].mxu1 %vm377_vm2, %v316_v29 }
  0x93   :  { %7372 = vmatmul.mubr.msk.bf16.gmra.mrb[60].mxu0 %vm377_vm2, %v955_v19  ;;  %747 = vmatprep.mubr.bf16.mxu1 %v12235_v1 }
  0x94   :  { %1553 = vmatprep.mubr.bf16.mxu0 %v12235_v1 }
  0x9a   :  { %7316 = vmatmul.mubr.msk.bf16.vlgmr.msra.gmra.mrb[0].mxu1 %vm377_vm2, %v9496_v25  ;;  %v9103_v25 = vld [vmem:[%s12219_s1 + $0x1a0] ss:$8 sps:$4 sm:$0xff]  }
  0x9b   :  { %7398 = vmatmul.mubr.msk.bf16.vlgmr.msra.gmra.mrb[0].mxu0 %vm377_vm2, %v9669_v59  ;;  %757 = vmatprep.mubr.bf16.mxu1 %v12235_v1  ;;  %v9108_v59 = vld [vmem:[%s12219_s1 + $0x1b4] ss:$8 sps:$4 sm:$0xff]  }
  0x9c   :  { %1936 = vmatpush1.bf16.msra.mxu0 %v9097_v31  ;;  %1563 = vmatprep.mubr.bf16.mxu0 %v12235_v1 }
  0x9d   :  { %1937 = vmatprep.subr.bf16.mxu0 %v9102_v32  ;;  %2502 = vmatpush1.bf16.msra.mxu1 %v9118_v53  ;;  %v1809_v32 = vrot.slane %v9686_v5, 2 }
  0x9e   :  { %2503 = vmatprep.subr.bf16.mxu1 %v12235_v1 }
  0xa0   :  { %1938 = vmatpush1.bf16.msra.mxu0 %v9100_v33 }
  0xa1   :  { %1939 = vmatprep.subr.bf16.mxu0 %v9105_v39  ;;  %2504 = vmatpush1.bf16.msra.mxu1 %v9119_v3  ;;  %v9125_v39 = vld [vmem:[%s12221_s3 + $0x38] sm:$0xff]  }
  0xa2   :  { %7317 = vmatmul.mubr.msk.bf16.gmra.mrb[4].mxu1 %vm377_vm2, %v9501_v26  ;;  %2505 = vmatprep.subr.bf16.mxu1 %v12235_v1  ;;  %v1801_v26 = vrot.slane %v9545_v50, 2 }
  0xa3   :  { %7399 = vmatmul.mubr.msk.bf16.gmra.mrb[4].mxu0 %vm377_vm2, %v9676_v62  ;;  %767 = vmatprep.mubr.bf16.mxu1 %v12235_v1  ;;  %v9114_v62 = vld [vmem:[%s12219_s1 + $0x1d4] ss:$8 sps:$4 sm:$0xff]  }
  0xa4   :  { %1573 = vmatprep.mubr.bf16.mxu0 %v12235_v1  ;;  %1940 = vmatpush1.bf16.msra.mxu0 %v9103_v25  ;;  %v1802_v19 = vsel %vm1795_vm4, %v1799_v24, %v1801_v26  ;;  %v1804_v21 = vsel %vm1795_vm4, %v1801_v26, %v1803_v20 }
  0xa5   :  { %1941 = vmatprep.subr.bf16.mxu0 %v9108_v59  ;;  %2506 = vmatpush1.bf16.msra.mxu1 %v9120_v12 }
  0xa6   :  { %2507 = vmatprep.subr.bf16.mxu1 %v12235_v1 }
  0xa8   :  { %1942 = vmatpush1.bf16.msra.mxu0 %v9106_v41  ;;  %v1815_v41 = vrot.slane %v9753_v54, 2 }
  0xa9   :  { %1943 = vmatprep.subr.bf16.mxu0 %v9111_v42  ;;  %2508 = vmatpush1.bf16.msra.mxu1 %v9121_v15 }
  0xaa   :  { %7318 = vmatmul.mubr.msk.bf16.gmra.mrb[8].mxu1 %vm377_vm2, %v9526_v37  ;;  %2509 = vmatprep.subr.bf16.mxu1 %v12235_v1  ;;  %v9122_v37 = vld [vmem:[%s12221_s3 + $0x20] sm:$0xff]  }
  0xab   :  { %7400 = vmatmul.mubr.msk.bf16.gmra.mrb[8].mxu0 %vm377_vm2, %v9679_v63  ;;  %777 = vmatprep.mubr.bf16.mxu1 %v12235_v1  ;;  %v1392_v63 = vrot.slane %v290_v45, 1  ;;  %v1401_v45 = vrot.slane %v302_v58, 2 }
  0xac   :  { %1583 = vmatprep.mubr.bf16.mxu0 %v12235_v1  ;;  %1944 = vmatpush1.bf16.msra.mxu0 %v9109_v30  ;;  %v1817_v30 = vrot.slane %v9770_v7, 2 }
  0xad   :  { %1945 = vmatprep.subr.bf16.mxu0 %v9114_v62  ;;  %2510 = vmatpush1.bf16.msra.mxu1 %v9122_v37 }
  0xae   :  { %2511 = vmatprep.subr.bf16.mxu1 %v12235_v1  ;;  %v1818_v62 = vsel %vm1795_vm4, %v1815_v41, %v1817_v30 }
  0xb0   :  { %1946 = vmatpush1.bf16.msra.mxu0 %v9112_v44 }
  0xb1   :  { %5246 = vmatprep.subr.bf16.mxu0 %v12235_v1  ;;  %2512 = vmatpush1.bf16.msra.mxu1 %v9123_v28 }
  0xb2   :  { %7319 = vmatmul.mubr.msk.bf16.gmra.mrb[12].mxu1 %vm377_vm2, %v9545_v50  ;;  %v1805_v50 = vrot.slane %v9601_v11, 2  ;;  %2513 = vmatprep.subr.bf16.mxu1 %v12235_v1 }
  0xb3   :  { %7401 = vmatmul.mubr.msk.bf16.gmra.mrb[12].mxu0 %vm377_vm2, %v9690_v49  ;;  %787 = vmatprep.mubr.bf16.mxu1 %v12235_v1  ;;  %v1393_v49 = vrot.slane %v286_v34, 2 }
  0xb4   :  { %1593 = vmatprep.mubr.bf16.mxu0 %v12235_v1  ;;  %v1806_v29 = vsel %vm1795_vm4, %v1803_v20, %v1805_v50 }
  0xba   :  { %7320 = vmatmul.mubr.msk.bf16.gmra.mrb[16].mxu1 %vm377_vm2, %v9580_v2  ;;  %v1807_v2 = vrot.slane %v9627_v23, 2 }
  0xbb   :  { %7402 = vmatmul.mubr.msk.bf16.gmra.mrb[16].mxu0 %vm377_vm2, %v9696_v8  ;;  %797 = vmatprep.mubr.bf16.mxu1 %v12235_v1  ;;  %v1394_v8 = vor.u32 %v1393_v49, %v1392_v63 }
  0xbc   :  { %1603 = vmatprep.mubr.bf16.mxu0 %v12235_v1  ;;  %v1808_v31 = vsel %vm1795_vm4, %v1805_v50, %v1807_v2  ;;  %v1810_v33 = vsel %vm1795_vm4, %v1807_v2, %v1809_v32 }
  0xc2   :  { %7321 = vmatmul.mubr.msk.bf16.gmra.mrb[20].mxu1 %vm377_vm2, %v9601_v11  ;;  %v9124_v11 = vld [vmem:[%s12221_s3 + $0x30] sm:$0xff]  }
  0xc3   :  { %7403 = vmatmul.mubr.msk.bf16.gmra.mrb[20].mxu0 %vm377_vm2, %v9708_v18  ;;  %807 = vmatprep.mubr.bf16.mxu1 %v12235_v1  ;;  %v1395_v18 = vsel %vm1339_vm3, %v9793_v36, %v1394_v8 }
  0xc4   :  { %1613 = vmatprep.mubr.bf16.mxu0 %v12235_v1  ;;  %2514 = vmatpush1.bf16.msra.mxu1 %v9124_v11 }
  0xc5   :  { %2515 = vmatprep.subr.bf16.mxu1 %v12235_v1 }
  0xc8   :  { %2516 = vmatpush1.bf16.msra.mxu1 %v9125_v39 }
  0xc9   :  { %2517 = vmatprep.subr.bf16.mxu1 %v12235_v1 }
  0xca   :  { %7322 = vmatmul.mubr.msk.bf16.gmra.mrb[24].mxu1 %vm377_vm2, %v9627_v23  ;;  %v1811_v23 = vrot.slane %v9718_v22, 2 }
  0xcb   :  { %7404 = vmatmul.mubr.msk.bf16.gmra.mrb[24].mxu0 %vm377_vm2, %v9726_v35  ;;  %817 = vmatprep.mubr.bf16.mxu1 %v12235_v1  ;;  %v1396_v35 = vrot.slane %v298_v57, 1 }
  0xcc   :  { %1623 = vmatprep.mubr.bf16.mxu0 %v12235_v1  ;;  %v1812_v25 = vsel %vm1795_vm4, %v1809_v32, %v1811_v23 }
  0xd2   :  { %7323 = vmatmul.mubr.msk.bf16.gmra.mrb[28].mxu1 %vm377_vm2, %v9686_v5  ;;  %v1813_v5 = vrot.slane %v9736_v40, 2 }
  0xd3   :  { %7405 = vmatmul.mubr.msk.bf16.gmra.mrb[28].mxu0 %vm377_vm2, %v9743_v48  ;;  %827 = vmatprep.mubr.bf16.mxu1 %v12235_v1  ;;  %v1397_v48 = vrot.slane %v294_v47, 2 }
  0xd4   :  { %1633 = vmatprep.mubr.bf16.mxu0 %v12235_v1  ;;  %v1814_v59 = vsel %vm1795_vm4, %v1811_v23, %v1813_v5  ;;  %v1816_v42 = vsel %vm1795_vm4, %v1813_v5, %v1815_v41 }
  0xda   :  { %7324 = vmatmul.mubr.msk.bf16.gmra.mrb[32].mxu1 %vm377_vm2, %v9718_v22  ;;  %v9126_v22 = vld [vmem:[%s12221_s3 + $0x40] sm:$0xff]  }
  0xdb   :  { %7406 = vmatmul.mubr.msk.bf16.gmra.mrb[32].mxu0 %vm377_vm2, %v9760_v0  ;;  %837 = vmatprep.mubr.bf16.mxu1 %v12235_v1  ;;  %v1398_v0 = vor.u32 %v1397_v48, %v1396_v35 }
  0xdc   :  { %1643 = vmatprep.mubr.bf16.mxu0 %v12235_v1  ;;  %2518 = vmatpush1.bf16.msra.mxu1 %v9126_v22 }
  0xdd   :  { %v1399_v36 = vsel %vm1339_vm3, %v1394_v8, %v1398_v0  ;;  %2519 = vmatprep.subr.bf16.mxu1 %v12235_v1 }
  0xe2   :  { %7325 = vmatmul.mubr.msk.bf16.gmra.mrb[36].mxu1 %vm377_vm2, %v9736_v40  ;;  %v9127_v40 = vld [vmem:[%s12221_s3 + $0x48] sm:$0xff]  }
  0xe3   :  { %7407 = vmatmul.mubr.msk.bf16.gmra.mrb[36].mxu0 %vm377_vm2, %v9777_v17  ;;  %847 = vmatprep.mubr.bf16.mxu1 %v12235_v1  ;;  %v1322_v17 = vld [vmem:[%s12220_s0 + $0x7c] sm:$0xf] }
  0xe4   :  { %1653 = vmatprep.mubr.bf16.mxu0 %v12235_v1  ;;  %v9989_v34 = vcombine.low %v9836_v60, %v1322_v17  ;;  %2520 = vmatpush1.bf16.msra.mxu1 %v9127_v40 }
  0xe5   :  { %2521 = vmatprep.subr.bf16.mxu1 %v12235_v1 }
  0xe6   :  { %v1405_v47 = vshrl.u32 %v9989_v34, 16  ;;  %v1408_v52 = vshll.u32 %v9989_v34, 16 }
  0xe8   :  { %v1407_v46 = vrot.slane %v1405_v47, 1  ;;  %v1410_v57 = vrot.slane %v1408_v52, 2 }
  0xea   :  { %7326 = vmatmul.mubr.msk.bf16.gmra.mrb[40].mxu1 %vm377_vm2, %v9753_v54  ;;  %v1411_v58 = vor.u32 %v1410_v57, %v1407_v46  ;;  %v1819_v54 = vrot.slane %v9787_v27, 2 }
  0xeb   :  { %7408 = vmatmul.mubr.msk.bf16.gmra.mrb[40].mxu0 %vm377_vm2, %v9797_v38  ;;  %857 = vmatprep.mubr.bf16.mxu1 %v12235_v1  ;;  %v1400_v38 = vrot.slane %v306_v13, 1  ;;  %v1796_v13 = vrot.slane %v7426_v10, 2 }
  0xec   :  { %1663 = vmatprep.mubr.bf16.mxu0 %v12235_v1  ;;  %v1820_v8 = vsel %vm1795_vm4, %v1817_v30, %v1819_v54 }
  0xed   :  { %v1402_v51 = vor.u32 %v1401_v45, %v1400_v38  ;;  %v1798_v60 = vsel %vm1795_vm4, %v1796_v13, %v1797_v14 }
  0xef   :  { %v1403_v56 = vsel %vm1339_vm3, %v1398_v0, %v1402_v51  ;;  %v1412_v61 = vsel %vm1339_vm3, %v1402_v51, %v1411_v58 }
  0xf2   :  { %7327 = vmatmul.mubr.msk.bf16.gmra.mrb[44].mxu1 %vm377_vm2, %v9770_v7  ;;  %v1821_v7 = vrot.slane %v9809_v43, 2 }
  0xf3   :  { %7409 = vmatmul.mubr.msk.bf16.gmra.mrb[44].mxu0 %vm377_vm2, %v1395_v18  ;;  %867 = vmatprep.mubr.bf16.mxu1 %v12235_v1 }
  0xf4   :  { %1673 = vmatprep.mubr.bf16.mxu0 %v12235_v1 }
  0xfa   :  { %7328 = vmatmul.mubr.msk.bf16.gmra.mrb[48].mxu1 %vm377_vm2, %v9787_v27  ;;  %v9128_v27 = vld [vmem:[%s12221_s3 + $0x50] ss:$0 sps:$4 sm:$0xff]  }
  0xfb   :  { %7410 = vmatmul.mubr.msk.bf16.gmra.mrb[48].mxu0 %vm377_vm2, %v1399_v36  ;;  %877 = vmatprep.mubr.bf16.mxu1 %v12235_v1  ;;  %v2499_v0 = vsel %vm2497_vm5, %v9128_v27, 0  ;;  %v1822_v36 = vsel %vm1795_vm4, %v1819_v54, %v1821_v7 }
  0xfc   :  { %1683 = vmatprep.mubr.bf16.mxu0 %v12235_v1  ;;  %2522 = vmatpush1.bf16.msra.mxu1 %v2499_v0 }
  0xfd   :  { %2749 = vmatprep.subr.bf16.mxu1 %v12235_v1 }
 0x102   :  { %7329 = vmatmul.mubr.msk.bf16.gmra.mrb[52].mxu1 %vm377_vm2, %v9809_v43  ;;  %v1823_v43 = vrot.slane %v9827_v55, 2 }
 0x103   :  { %7411 = vmatmul.mubr.msk.bf16.gmra.mrb[52].mxu0 %vm377_vm2, %v1403_v56  ;;  %887 = vmatprep.mubr.bf16.mxu1 %v12235_v1  ;;  %v1825_v56 = vrot.slane %v9989_v34, 2 }
 0x104   :  { %1693 = vmatprep.mubr.bf16.mxu0 %v12235_v1  ;;  %v1824_v52 = vsel %vm1795_vm4, %v1821_v7, %v1823_v43 }
 0x10a   :  { %7330 = vmatmul.mubr.msk.bf16.gmra.mrb[56].mxu1 %vm377_vm2, %v9827_v55 }
 0x10b   :  { %7412 = vmatmul.mubr.msk.bf16.gmra.mrb[56].mxu0 %vm377_vm2, %v1412_v61  ;;  %897 = vmatprep.mubr.bf16.mxu1 %v12235_v1 }
 0x10c   :  { %1703 = vmatprep.mubr.bf16.mxu0 %v12235_v1 }
 0x112   :  { %7331 = vmatmul.mubr.msk.bf16.gmra.mrb[60].mxu1 %vm377_vm2, %v7303_v9 }
 0x113   :  { %7413 = vmatmul.mubr.msk.bf16.gmra.mrb[60].mxu0 %vm377_vm2, %v1411_v58  ;;  %v1826_v58 = vsel %vm1795_vm4, %v1823_v43, %v1825_v56 }
 0x114   :  { %1967 = vmatprep.mubr.bf16.mxu0 %v12235_v1 }
 0x11b   :  { %7439 = vmatmul.mubr.msk.bf16.vlgmr.msra.gmra.mrb[0].mxu0 %vm377_vm2, %v1798_v60 }
 0x11c   :  { %1977 = vmatprep.mubr.bf16.mxu0 %v12235_v1 }
 0x123   :  { %7440 = vmatmul.mubr.msk.bf16.gmra.mrb[4].mxu0 %vm377_vm2, %v1800_v16 }
 0x124   :  { %1987 = vmatprep.mubr.bf16.mxu0 %v12235_v1 }
 0x12b   :  { %7441 = vmatmul.mubr.msk.bf16.gmra.mrb[8].mxu0 %vm377_vm2, %v1802_v19 }
 0x12c   :  { %1997 = vmatprep.mubr.bf16.mxu0 %v12235_v1 }
 0x133   :  { %7442 = vmatmul.mubr.msk.bf16.gmra.mrb[12].mxu0 %vm377_vm2, %v1804_v21 }
 0x134   :  { %2007 = vmatprep.mubr.bf16.mxu0 %v12235_v1 }
 0x13b   :  { %7443 = vmatmul.mubr.msk.bf16.gmra.mrb[16].mxu0 %vm377_vm2, %v1806_v29 }
 0x13c   :  { %2017 = vmatprep.mubr.bf16.mxu0 %v12235_v1 }
 0x143   :  { %7444 = vmatmul.mubr.msk.bf16.gmra.mrb[20].mxu0 %vm377_vm2, %v1808_v31 }
 0x144   :  { %2027 = vmatprep.mubr.bf16.mxu0 %v12235_v1 }
 0x14b   :  { %7445 = vmatmul.mubr.msk.bf16.gmra.mrb[24].mxu0 %vm377_vm2, %v1810_v33 }
 0x14c   :  { %2037 = vmatprep.mubr.bf16.mxu0 %v12235_v1 }
 0x153   :  { %7446 = vmatmul.mubr.msk.bf16.gmra.mrb[28].mxu0 %vm377_vm2, %v1812_v25 }
 0x154   :  { %2047 = vmatprep.mubr.bf16.mxu0 %v12235_v1 }
 0x15b   :  { %7447 = vmatmul.mubr.msk.bf16.gmra.mrb[32].mxu0 %vm377_vm2, %v1814_v59 }
 0x15c   :  { %2057 = vmatprep.mubr.bf16.mxu0 %v12235_v1 }
 0x163   :  { %7448 = vmatmul.mubr.msk.bf16.gmra.mrb[36].mxu0 %vm377_vm2, %v1816_v42 }
 0x164   :  { %2067 = vmatprep.mubr.bf16.mxu0 %v12235_v1 }
 0x16b   :  { %7449 = vmatmul.mubr.msk.bf16.gmra.mrb[40].mxu0 %vm377_vm2, %v1818_v62 }
 0x16c   :  { %2077 = vmatprep.mubr.bf16.mxu0 %v12235_v1 }
 0x16d   :  { %v10111_v44 = vpop.f32.mrb[0].mxu1 }
 0x16e   :  { %v10113_v63 = vpop.f32.mrb[1].mxu1 }
 0x16f   :  { %v10115_v49 = vpop.f32.mrb[2].mxu1 }
 0x170   :  { %v10118_v18 = vpop.f32.mrb[3].mxu1 }
 0x173   :  { %7450 = vmatmul.mubr.msk.bf16.gmra.mrb[44].mxu0 %vm377_vm2, %v1820_v8 }
 0x174   :  { %2087 = vmatprep.mubr.bf16.mxu0 %v12235_v1 }
 0x175   :  { %v10126_v35 = vpop.f32.mrb[4].mxu1 }
 0x176   :  { %v10128_v48 = vpop.f32.mrb[5].mxu1 }
 0x177   :  { %v10131_v17 = vpop.f32.mrb[6].mxu1 }
 0x178   :  { %v10134_v38 = vpop.f32.mrb[7].mxu1 }
 0x17b   :  { %7451 = vmatmul.mubr.msk.bf16.gmra.mrb[48].mxu0 %vm377_vm2, %v1822_v36 }
 0x17c   :  { %2097 = vmatprep.mubr.bf16.mxu0 %v12235_v1 }
 0x17d   :  { %v10140_v45 = vpop.f32.mrb[8].mxu1 }
 0x17e   :  { %v10142_v47 = vpop.f32.mrb[9].mxu1 }
 0x17f   :  { %v10144_v51 = vpop.f32.mrb[10].mxu1 }
 0x180   :  { %v10147_v53 = vpop.f32.mrb[11].mxu1 }
 0x183   :  { %7452 = vmatmul.mubr.msk.bf16.gmra.mrb[52].mxu0 %vm377_vm2, %v1824_v52  ;;  %v2194_v52 = vlaneseq }
 0x184   :  { %2107 = vmatprep.mubr.bf16.mxu0 %v12235_v1 }
 0x185   :  { %v10152_v46 = vpop.f32.mrb[12].mxu1 }
 0x186   :  { %v10154_v57 = vpop.f32.mrb[13].mxu1 }
 0x187   :  { %v10156_v55 = vpop.f32.mrb[14].mxu1 }
 0x188   :  { %v10159_v61 = vpop.f32.mrb[15].mxu1 }
 0x18b   :  { %7453 = vmatmul.mubr.msk.bf16.gmra.mrb[56].mxu0 %vm377_vm2, %v1826_v58 }
 0x18c   :  { %2117 = vmatprep.mubr.bf16.mxu0 %v12235_v1 }
 0x18d   :  { %v10163_v3 = vpop.f32.mrb[16].mxu1 }
 0x18e   :  { %v10165_v34 = vpop.f32.mrb[17].mxu1 }
 0x18f   :  { %v10167_v4 = vpop.f32.mrb[18].mxu1 }
 0x190   :  { %v10169_v6 = vpop.f32.mrb[19].mxu1 }
 0x193   :  { %7454 = vmatmul.mubr.msk.bf16.gmra.mrb[60].mxu0 %vm377_vm2, %v1825_v56  ;;  %v10252_v56 = vshrl.u32 %v2194_v52, 7 }
 0x195   :  { %v10172_v9 = vpop.f32.mrb[20].mxu1  ;;  %12254 = vst [vmem:[#allocation16_spill] sm:$0xff] %v10252_v56 }
 0x196   :  { %v10174_v10 = vpop.f32.mrb[21].mxu1 }
 0x197   :  { %v10176_v12 = vpop.f32.mrb[22].mxu1 }
 0x198   :  { %v10178_v13 = vpop.f32.mrb[23].mxu1 }
 0x19d   :  { %v10180_v14 = vpop.f32.mrb[24].mxu1 }
 0x19e   :  { %v10182_v60 = vpop.f32.mrb[25].mxu1 }
 0x19f   :  { %v10184_v24 = vpop.f32.mrb[26].mxu1 }
 0x1a0   :  { %v10186_v15 = vpop.f32.mrb[27].mxu1 }
 0x1a5   :  { %v10188_v16 = vpop.f32.mrb[28].mxu1 }
 0x1a6   :  { %v10190_v26 = vpop.f32.mrb[29].mxu1 }
 0x1a7   :  { %v10192_v19 = vpop.f32.mrb[30].mxu1 }
 0x1a8   :  { %v10194_v37 = vpop.f32.mrb[31].mxu1 }
 0x1ad   :  { %v10196_v20 = vpop.f32.mrb[32].mxu1 }
 0x1ae   :  { %v10198_v21 = vpop.f32.mrb[33].mxu1 }
 0x1af   :  { %v10200_v50 = vpop.f32.mrb[34].mxu1 }
 0x1b0   :  { %v10202_v28 = vpop.f32.mrb[35].mxu1 }
 0x1b5   :  { %v10204_v29 = vpop.f32.mrb[36].mxu1 }
 0x1b6   :  { %v10206_v2 = vpop.f32.mrb[37].mxu1 }
 0x1b7   :  { %v10208_v31 = vpop.f32.mrb[38].mxu1 }
 0x1b8   :  { %v10210_v11 = vpop.f32.mrb[39].mxu1 }
 0x1bd   :  { %v10212_v32 = vpop.f32.mrb[40].mxu1 }
 0x1be   :  { %v10214_v33 = vpop.f32.mrb[41].mxu1 }
 0x1bf   :  { %v10216_v23 = vpop.f32.mrb[42].mxu1 }
 0x1c0   :  { %v10218_v39 = vpop.f32.mrb[43].mxu1 }
 0x1c5   :  { %v10220_v25 = vpop.f32.mrb[44].mxu1 }
 0x1c6   :  { %v10222_v5 = vpop.f32.mrb[45].mxu1 }
 0x1c7   :  { %v10224_v59 = vpop.f32.mrb[46].mxu1 }
 0x1c8   :  { %v10226_v22 = vpop.f32.mrb[47].mxu1 }
 0x1c9   :  { %12241 = vst [vmem:[#allocation3_spill] sm:$0xff] %v10226_v22 }
 0x1cd   :  { %v10228_v41 = vpop.f32.mrb[48].mxu1 }
 0x1ce   :  { %12242 = vst [vmem:[#allocation4_spill] sm:$0xff] %v10228_v41  ;;  %v10230_v42 = vpop.f32.mrb[49].mxu1 }
 0x1cf   :  { %12243 = vst [vmem:[#allocation5_spill] sm:$0xff] %v10230_v42  ;;  %v10232_v40 = vpop.f32.mrb[50].mxu1 }
 0x1d0   :  { %12244 = vst [vmem:[#allocation6_spill] sm:$0xff] %v10232_v40  ;;  %v10234_v30 = vpop.f32.mrb[51].mxu1 }
 0x1d1   :  { %12245 = vst [vmem:[#allocation7_spill] sm:$0xff] %v10234_v30 }
 0x1d5   :  { %v10236_v62 = vpop.f32.mrb[52].mxu1 }
 0x1d6   :  { %12246 = vst [vmem:[#allocation8_spill] sm:$0xff] %v10236_v62  ;;  %v10238_v54 = vpop.f32.mrb[53].mxu1 }
 0x1d7   :  { %12247 = vst [vmem:[#allocation9_spill] sm:$0xff] %v10238_v54  ;;  %v10240_v8 = vpop.f32.mrb[54].mxu1 }
 0x1d8   :  { %12248 = vst [vmem:[#allocation10_spill] sm:$0xff] %v10240_v8  ;;  %v10242_v7 = vpop.f32.mrb[55].mxu1 }
 0x1d9   :  { %12249 = vst [vmem:[#allocation11_spill] sm:$0xff] %v10242_v7  ;;  %v12237_v7 = vsub.s32 0, %v10252_v56 }
 0x1dd   :  { %v10244_v27 = vpop.f32.mrb[56].mxu1 }
 0x1de   :  { %12250 = vst [vmem:[#allocation12_spill] sm:$0xff] %v10244_v27  ;;  %v10246_v0 = vpop.f32.mrb[57].mxu1 }
 0x1df   :  { %12251 = vst [vmem:[#allocation13_spill] sm:$0xff] %v10246_v0  ;;  %v10248_v36 = vpop.f32.mrb[58].mxu1  ;;  %v2192_v0 = vld [vmem:[%s12223_s2] sm:$0x3] }
 0x1e0   :  { %12252 = vst [vmem:[#allocation14_spill] sm:$0xff] %v10248_v36  ;;  %v10250_v43 = vpop.f32.mrb[59].mxu1  ;;  %v12238_v36 = vsub.s32 1, %v10252_v56  ;;  %v10269_v52 = vrot.slane %v2192_v0, %v12237_v7 }
 0x1e1   :  { %12253 = vst [vmem:[#allocation15_spill] sm:$0xff] %v10250_v43 }
 0x1e5   :  { %v10254_v58 = vpop.f32.mrb[60].mxu1 }
 0x1e6   :  { %12255 = vst [vmem:[#allocation17_spill] sm:$0xff] %v10254_v58  ;;  %v10256_v1 = vpop.f32.mrb[61].mxu1 }
 0x1e7   :  { %12256 = vst [vmem:[#allocation18_spill] sm:$0xff] %v10256_v1  ;;  %v10258_v54 = vpop.f32.mrb[62].mxu1  ;;  %v10273_v1 = vrot.slane %v2192_v0, %v12238_v36 }
 0x1e8   :  { %12257 = vst [vmem:[#allocation19_spill] sm:$0xff] %v10258_v54  ;;  %v10260_v8 = vpop.f32.mrb[63].mxu1 }
 0x1e9   :  { %12258 = vst [vmem:[#allocation20_spill] sm:$0xff] %v10260_v8 }
 0x1ee   :  { %v1969_v43 = vpop.f32.mrb[0].mxu0 }
 0x1ef   :  { %v8381_v54 = vadd.f32 %v1969_v43, %v10111_v44  ;;  %v1971_v8 = vpop.f32.mrb[1].mxu0 }
 0x1f0   :  { %v8382_v58 = vadd.f32 %v1971_v8, %v10113_v63  ;;  %v1973_v27 = vpop.f32.mrb[2].mxu0 }
 0x1f1   :  { %v2204_v62 = vadd.f32 %v8381_v54, %v10269_v52  ;;  %v8383_v30 = vadd.f32 %v1973_v27, %v10115_v49  ;;  %v1975_v40 = vpop.f32.mrb[3].mxu0 }
 0x1f2   :  { %v2205_v42 = vadd.f32 %v8382_v58, %v10273_v1  ;;  %v8384_v7 = vadd.f32 %v1975_v40, %v10118_v18  ;;  %v9129_v18 = vld [vmem:[%s12222_s4] sm:$0xff]  }
 0x1f3   :  { %v2206_v41 = vadd.f32 %v8383_v30, %v10269_v52  ;;  %v2268_v36 = vmax.f32 %v2204_v62, 0.0  ;;  %v9130_v62 = vld [vmem:[%s12222_s4 + $0x8] sm:$0xff]  }
 0x1f4   :  { %v2207_v0 = vadd.f32 %v8384_v7, %v10273_v1  ;;  %v2269_v44 = vmax.f32 %v2205_v42, 0.0 }
 0x1f5   :  { %v2270_v56 = vmax.f32 %v2206_v41, 0.0 }
 0x1f6   :  { %v2271_v43 = vmax.f32 %v2207_v0, 0.0  ;;  %v1979_v22 = vpop.f32.mrb[4].mxu0 }
 0x1f7   :  { %v10283_v63 = vpack.c.bf16 %v2270_v56, %v2268_v36  ;;  %v8385_v54 = vadd.f32 %v1979_v22, %v10126_v35  ;;  %v1981_v8 = vpop.f32.mrb[5].mxu0  ;;  %v12259_v36 = vmov 0  }
 0x1f8   :  { %v8386_v49 = vadd.f32 %v1981_v8, %v10128_v48  ;;  %v1983_v27 = vpop.f32.mrb[6].mxu0  ;;  %v10287_v58 = vpack.c.bf16 %v2271_v43, %v2269_v44 }
 0x1f9   :  { %v2208_v41 = vadd.f32 %v8385_v54, %v10269_v52  ;;  %v8387_v42 = vadd.f32 %v1983_v27, %v10131_v17  ;;  %v1985_v40 = vpop.f32.mrb[7].mxu0 }
 0x1fa   :  { %v2209_v30 = vadd.f32 %v8386_v49, %v10273_v1  ;;  %v8388_v35 = vadd.f32 %v1985_v40, %v10134_v38  ;;  %7466 = vmatprep.mubr.msk.bf16.mxu1 %vm2448_vm6, %v10287_v58 }
 0x1fb   :  { %v2210_v48 = vadd.f32 %v8387_v42, %v10269_v52  ;;  %2534 = vmatmul.mubr.bf16.vlgmr.msra.gmra.mrb[64].mxu1 %v10283_v63  ;;  %v2272_v17 = vmax.f32 %v2208_v41, 0.0 }
 0x1fc   :  { %v2211_v22 = vadd.f32 %v8388_v35, %v10273_v1  ;;  %2750 = vmatpush1.bf16.msra.mxu1 %v9129_v18  ;;  %v2273_v56 = vmax.f32 %v2209_v30, 0.0  ;;  %v9131_v18 = vld [vmem:[%s12222_s4 + $0x10] sm:$0xff]  }
 0x1fd   :  { %v2274_v7 = vmax.f32 %v2210_v48, 0.0  ;;  %2751 = vmatprep.subr.bf16.mxu1 %v12259_v36 }
 0x1fe   :  { %v2275_v38 = vmax.f32 %v2211_v22, 0.0  ;;  %v1989_v0 = vpop.f32.mrb[8].mxu0 }
 0x1ff   :  { %v8389_v44 = vadd.f32 %v1989_v0, %v10140_v45  ;;  %v1991_v43 = vpop.f32.mrb[9].mxu0  ;;  %v10306_v54 = vpack.c.bf16 %v2274_v7, %v2272_v17 }
 0x200   :  { %v8390_v8 = vadd.f32 %v1991_v43, %v10142_v47  ;;  %v1993_v49 = vpop.f32.mrb[10].mxu0  ;;  %v10309_v27 = vpack.c.bf16 %v2275_v38, %v2273_v56  ;;  %2752 = vmatpush1.bf16.msra.mxu1 %v9130_v62 }
 0x201   :  { %v2212_v41 = vadd.f32 %v8389_v44, %v10269_v52  ;;  %v8391_v42 = vadd.f32 %v1993_v49, %v10144_v51  ;;  %v1995_v40 = vpop.f32.mrb[11].mxu0  ;;  %2753 = vmatprep.subr.bf16.mxu1 %v12259_v36  ;;  %v9132_v51 = vld [vmem:[%s12222_s4 + $0x18] sm:$0xff]  }
 0x202   :  { %v2213_v45 = vadd.f32 %v8390_v8, %v10273_v1  ;;  %v8392_v30 = vadd.f32 %v1995_v40, %v10147_v53  ;;  %7467 = vmatprep.mubr.msk.bf16.mxu1 %vm2448_vm6, %v10309_v27  ;;  %v9133_v8 = vld [vmem:[%s12222_s4 + $0x20] sm:$0xff]  }
 0x203   :  { %v2214_v47 = vadd.f32 %v8391_v42, %v10269_v52  ;;  %2542 = vmatmul.mubr.bf16.gmra.mrb[68].mxu1 %v10306_v54  ;;  %v2276_v48 = vmax.f32 %v2212_v41, 0.0 }
 0x204   :  { %v2215_v35 = vadd.f32 %v8392_v30, %v10273_v1  ;;  %2754 = vmatpush1.bf16.msra.mxu1 %v9131_v18  ;;  %v2277_v62 = vmax.f32 %v2213_v45, 0.0 }
 0x205   :  { %v2278_v22 = vmax.f32 %v2214_v47, 0.0  ;;  %2755 = vmatprep.subr.bf16.mxu1 %v12259_v36 }
 0x206   :  { %v2279_v53 = vmax.f32 %v2215_v35, 0.0  ;;  %v1999_v17 = vpop.f32.mrb[12].mxu0 }
 0x207   :  { %v8393_v7 = vadd.f32 %v1999_v17, %v10152_v46  ;;  %v2001_v56 = vpop.f32.mrb[13].mxu0  ;;  %v10329_v38 = vpack.c.bf16 %v2278_v22, %v2276_v48 }
 0x208   :  { %v8394_v0 = vadd.f32 %v2001_v56, %v10154_v57  ;;  %v2003_v44 = vpop.f32.mrb[14].mxu0  ;;  %v10332_v43 = vpack.c.bf16 %v2279_v53, %v2277_v62  ;;  %2756 = vmatpush1.bf16.msra.mxu1 %v9132_v51 }
 0x209   :  { %v2216_v49 = vadd.f32 %v8393_v7, %v10269_v52  ;;  %v8395_v18 = vadd.f32 %v2003_v44, %v10156_v55  ;;  %v2005_v41 = vpop.f32.mrb[15].mxu0  ;;  %2757 = vmatprep.subr.bf16.mxu1 %v12259_v36  ;;  %v9134_v55 = vld [vmem:[%s12222_s4 + $0x28] sm:$0xff]   ;;  %v9135_v7 = vld [vmem:[%s12222_s4 + $0x30] sm:$0xff]  }
 0x20a   :  { %v2217_v46 = vadd.f32 %v8394_v0, %v10273_v1  ;;  %v8396_v42 = vadd.f32 %v2005_v41, %v10159_v61  ;;  %7468 = vmatprep.mubr.msk.bf16.mxu1 %vm2448_vm6, %v10332_v43 }
 0x20b   :  { %v2218_v57 = vadd.f32 %v8395_v18, %v10269_v52  ;;  %2550 = vmatmul.mubr.bf16.gmra.mrb[72].mxu1 %v10329_v38  ;;  %v2280_v45 = vmax.f32 %v2216_v49, 0.0 }
 0x20c   :  { %v2219_v40 = vadd.f32 %v8396_v42, %v10273_v1  ;;  %2758 = vmatpush1.bf16.msra.mxu1 %v9133_v8  ;;  %v2281_v47 = vmax.f32 %v2217_v46, 0.0 }
 0x20d   :  { %v2282_v30 = vmax.f32 %v2218_v57, 0.0  ;;  %2759 = vmatprep.subr.bf16.mxu1 %v12259_v36 }
 0x20e   :  { %v2283_v61 = vmax.f32 %v2219_v40, 0.0  ;;  %v2009_v35 = vpop.f32.mrb[16].mxu0 }
 0x20f   :  { %v8397_v51 = vadd.f32 %v2009_v35, %v10163_v3  ;;  %v2011_v48 = vpop.f32.mrb[17].mxu0  ;;  %v10352_v22 = vpack.c.bf16 %v2282_v30, %v2280_v45 }
 0x210   :  { %v8398_v62 = vadd.f32 %v2011_v48, %v10165_v34  ;;  %v2013_v53 = vpop.f32.mrb[18].mxu0  ;;  %v10355_v17 = vpack.c.bf16 %v2283_v61, %v2281_v47  ;;  %2760 = vmatpush1.bf16.msra.mxu1 %v9134_v55  ;;  %v9137_v61 = vld [vmem:[%s12222_s4 + $0x40] sm:$0xff]  }
 0x211   :  { %v2220_v56 = vadd.f32 %v8397_v51, %v10269_v52  ;;  %v8399_v0 = vadd.f32 %v2013_v53, %v10167_v4  ;;  %v2015_v44 = vpop.f32.mrb[19].mxu0  ;;  %2761 = vmatprep.subr.bf16.mxu1 %v12259_v36  ;;  %v9136_v4 = vld [vmem:[%s12222_s4 + $0x38] sm:$0xff]  }
 0x212   :  { %v2221_v3 = vadd.f32 %v8398_v62, %v10273_v1  ;;  %v8400_v8 = vadd.f32 %v2015_v44, %v10169_v6  ;;  %7469 = vmatprep.mubr.msk.bf16.mxu1 %vm2448_vm6, %v10355_v17 }
 0x213   :  { %v2222_v34 = vadd.f32 %v8399_v0, %v10269_v52  ;;  %2558 = vmatmul.mubr.bf16.gmra.mrb[76].mxu1 %v10352_v22  ;;  %v2284_v18 = vmax.f32 %v2220_v56, 0.0 }
 0x214   :  { %v2223_v49 = vadd.f32 %v8400_v8, %v10273_v1  ;;  %2762 = vmatpush1.bf16.msra.mxu1 %v9135_v7  ;;  %v2285_v46 = vmax.f32 %v2221_v3, 0.0 }
 0x215   :  { %v2286_v41 = vmax.f32 %v2222_v34, 0.0  ;;  %2763 = vmatprep.subr.bf16.mxu1 %v12259_v36 }
 0x216   :  { %v2287_v6 = vmax.f32 %v2223_v49, 0.0  ;;  %v2019_v42 = vpop.f32.mrb[20].mxu0 }
 0x217   :  { %v8401_v57 = vadd.f32 %v2019_v42, %v10172_v9  ;;  %v2021_v40 = vpop.f32.mrb[21].mxu0  ;;  %v10375_v55 = vpack.c.bf16 %v2286_v41, %v2284_v18 }
 0x218   :  { %v8402_v45 = vadd.f32 %v2021_v40, %v10174_v10  ;;  %v2023_v30 = vpop.f32.mrb[22].mxu0  ;;  %v10378_v47 = vpack.c.bf16 %v2287_v6, %v2285_v46  ;;  %2764 = vmatpush1.bf16.msra.mxu1 %v9136_v4 }
 0x219   :  { %v2224_v35 = vadd.f32 %v8401_v57, %v10269_v52  ;;  %v8403_v51 = vadd.f32 %v2023_v30, %v10176_v12  ;;  %v2025_v48 = vpop.f32.mrb[23].mxu0  ;;  %2765 = vmatprep.subr.bf16.mxu1 %v12259_v36  ;;  %v9138_v12 = vld [vmem:[%s12222_s4 + $0x48] sm:$0xff]  }
 0x21a   :  { %v2225_v9 = vadd.f32 %v8402_v45, %v10273_v1  ;;  %v8404_v62 = vadd.f32 %v2025_v48, %v10178_v13  ;;  %7470 = vmatprep.mubr.msk.bf16.mxu1 %vm2448_vm6, %v10378_v47  ;;  %v9139_v13 = vld [vmem:[%s12222_s4 + $0x50] ss:$0 sps:$4 sm:$0xff]  }
 0x21b   :  { %v2226_v10 = vadd.f32 %v8403_v51, %v10269_v52  ;;  %2566 = vmatmul.mubr.bf16.gmra.mrb[80].mxu1 %v10375_v55  ;;  %v2288_v7 = vmax.f32 %v2224_v35, 0.0  ;;  %v2747_v57 = vsel %vm2497_vm5, %v9139_v13, 0 }
 0x21c   :  { %v2227_v53 = vadd.f32 %v8404_v62, %v10273_v1  ;;  %2766 = vmatpush1.bf16.msra.mxu1 %v9137_v61  ;;  %v2289_v0 = vmax.f32 %v2225_v9, 0.0 }
 0x21d   :  { %v2290_v56 = vmax.f32 %v2226_v10, 0.0  ;;  %2767 = vmatprep.subr.bf16.mxu1 %v12259_v36 }
 0x21e   :  { %v2291_v44 = vmax.f32 %v2227_v53, 0.0  ;;  %v2029_v3 = vpop.f32.mrb[24].mxu0 }
 0x21f   :  { %v8405_v8 = vadd.f32 %v2029_v3, %v10180_v14  ;;  %v2031_v34 = vpop.f32.mrb[25].mxu0  ;;  %v10401_v49 = vpack.c.bf16 %v2290_v56, %v2288_v7 }
 0x220   :  { %v8406_v4 = vadd.f32 %v2031_v34, %v10182_v60  ;;  %v2033_v18 = vpop.f32.mrb[26].mxu0  ;;  %v10404_v41 = vpack.c.bf16 %v2291_v44, %v2289_v0  ;;  %2768 = vmatpush1.bf16.msra.mxu1 %v9138_v12 }
 0x221   :  { %v2228_v46 = vadd.f32 %v8405_v8, %v10269_v52  ;;  %v8407_v6 = vadd.f32 %v2033_v18, %v10184_v24  ;;  %v2035_v42 = vpop.f32.mrb[27].mxu0  ;;  %2769 = vmatprep.subr.bf16.mxu1 %v12259_v36 }
 0x222   :  { %v2229_v14 = vadd.f32 %v8406_v4, %v10273_v1  ;;  %v8408_v40 = vadd.f32 %v2035_v42, %v10186_v15  ;;  %7471 = vmatprep.mubr.msk.bf16.mxu1 %vm2448_vm6, %v10404_v41 }
 0x223   :  { %v2230_v60 = vadd.f32 %v8407_v6, %v10269_v52  ;;  %2574 = vmatmul.mubr.bf16.gmra.mrb[84].mxu1 %v10401_v49  ;;  %v2292_v24 = vmax.f32 %v2228_v46, 0.0 }
 0x224   :  { %v2231_v45 = vadd.f32 %v8408_v40, %v10273_v1  ;;  %2770 = vmatpush1.bf16.msra.mxu1 %v2747_v57  ;;  %v2293_v61 = vmax.f32 %v2229_v14, 0.0 }
 0x225   :  { %v2294_v30 = vmax.f32 %v2230_v60, 0.0 }
 0x226   :  { %v2295_v35 = vmax.f32 %v2231_v45, 0.0  ;;  %v2039_v51 = vpop.f32.mrb[28].mxu0 }
 0x227   :  { %v8409_v48 = vadd.f32 %v2039_v51, %v10188_v16  ;;  %v2041_v9 = vpop.f32.mrb[29].mxu0  ;;  %v10418_v62 = vpack.c.bf16 %v2294_v30, %v2292_v24 }
 0x228   :  { %v8410_v15 = vadd.f32 %v2041_v9, %v10190_v26  ;;  %v2043_v10 = vpop.f32.mrb[30].mxu0  ;;  %v10421_v53 = vpack.c.bf16 %v2295_v35, %v2293_v61 }
 0x229   :  { %v2232_v12 = vadd.f32 %v8409_v48, %v10269_v52  ;;  %v8411_v7 = vadd.f32 %v2043_v10, %v10192_v19  ;;  %v2045_v56 = vpop.f32.mrb[31].mxu0 }
 0x22a   :  { %v2233_v13 = vadd.f32 %v8410_v15, %v10273_v1  ;;  %v8412_v0 = vadd.f32 %v2045_v56, %v10194_v37  ;;  %7472 = vmatprep.mubr.msk.bf16.mxu1 %vm2448_vm6, %v10421_v53 }
 0x22b   :  { %v2234_v16 = vadd.f32 %v8411_v7, %v10269_v52  ;;  %2582 = vmatmul.mubr.bf16.gmra.mrb[88].mxu1 %v10418_v62  ;;  %v2296_v44 = vmax.f32 %v2232_v12, 0.0 }
 0x22c   :  { %v2235_v26 = vadd.f32 %v8412_v0, %v10273_v1  ;;  %v2297_v8 = vmax.f32 %v2233_v13, 0.0 }
 0x22d   :  { %v2298_v3 = vmax.f32 %v2234_v16, 0.0 }
 0x22e   :  { %v2299_v34 = vmax.f32 %v2235_v26, 0.0  ;;  %v2049_v4 = vpop.f32.mrb[32].mxu0 }
 0x22f   :  { %v8413_v19 = vadd.f32 %v2049_v4, %v10196_v20  ;;  %v2051_v18 = vpop.f32.mrb[33].mxu0  ;;  %v10433_v46 = vpack.c.bf16 %v2298_v3, %v2296_v44 }
 0x230   :  { %v8414_v37 = vadd.f32 %v2051_v18, %v10198_v21  ;;  %v2053_v6 = vpop.f32.mrb[34].mxu0  ;;  %v10436_v42 = vpack.c.bf16 %v2299_v34, %v2297_v8 }
 0x231   :  { %v2236_v57 = vadd.f32 %v8413_v19, %v10269_v52  ;;  %v8415_v14 = vadd.f32 %v2053_v6, %v10200_v50  ;;  %v2055_v40 = vpop.f32.mrb[35].mxu0 }
 0x232   :  { %v2237_v60 = vadd.f32 %v8414_v37, %v10273_v1  ;;  %v8416_v45 = vadd.f32 %v2055_v40, %v10202_v28  ;;  %7473 = vmatprep.mubr.msk.bf16.mxu1 %vm2448_vm6, %v10436_v42 }
 0x233   :  { %v2238_v20 = vadd.f32 %v8415_v14, %v10269_v52  ;;  %2590 = vmatmul.mubr.bf16.gmra.mrb[92].mxu1 %v10433_v46  ;;  %v2300_v24 = vmax.f32 %v2236_v57, 0.0 }
 0x234   :  { %v2239_v21 = vadd.f32 %v8416_v45, %v10273_v1  ;;  %v2301_v61 = vmax.f32 %v2237_v60, 0.0 }
 0x235   :  { %v2302_v30 = vmax.f32 %v2238_v20, 0.0 }
 0x236   :  { %v2303_v35 = vmax.f32 %v2239_v21, 0.0  ;;  %v2059_v51 = vpop.f32.mrb[36].mxu0 }
 0x237   :  { %v8417_v50 = vadd.f32 %v2059_v51, %v10204_v29  ;;  %v2061_v48 = vpop.f32.mrb[37].mxu0  ;;  %v10448_v9 = vpack.c.bf16 %v2302_v30, %v2300_v24 }
 0x238   :  { %v8418_v28 = vadd.f32 %v2061_v48, %v10206_v2  ;;  %v2063_v15 = vpop.f32.mrb[38].mxu0  ;;  %v10451_v10 = vpack.c.bf16 %v2303_v35, %v2301_v61 }
 0x239   :  { %v2240_v12 = vadd.f32 %v8417_v50, %v10269_v52  ;;  %v8419_v7 = vadd.f32 %v2063_v15, %v10208_v31  ;;  %v2065_v56 = vpop.f32.mrb[39].mxu0 }
 0x23a   :  { %v2241_v13 = vadd.f32 %v8418_v28, %v10273_v1  ;;  %v8420_v0 = vadd.f32 %v2065_v56, %v10210_v11  ;;  %7474 = vmatprep.mubr.msk.bf16.mxu1 %vm2448_vm6, %v10451_v10 }
 0x23b   :  { %v2242_v29 = vadd.f32 %v8419_v7, %v10269_v52  ;;  %2598 = vmatmul.mubr.bf16.gmra.mrb[96].mxu1 %v10448_v9  ;;  %v2304_v16 = vmax.f32 %v2240_v12, 0.0  ;;  %v12260_v12 = vld [vmem:[#allocation3_spill] sm:$0xff] }
 0x23c   :  { %v2243_v2 = vadd.f32 %v8420_v0, %v10273_v1  ;;  %v2305_v44 = vmax.f32 %v2241_v13, 0.0 }
 0x23d   :  { %v2306_v26 = vmax.f32 %v2242_v29, 0.0 }
 0x23e   :  { %v2307_v3 = vmax.f32 %v2243_v2, 0.0  ;;  %v2069_v8 = vpop.f32.mrb[40].mxu0 }
 0x23f   :  { %v8421_v31 = vadd.f32 %v2069_v8, %v10212_v32  ;;  %v2071_v34 = vpop.f32.mrb[41].mxu0  ;;  %v10463_v4 = vpack.c.bf16 %v2306_v26, %v2304_v16 }
 0x240   :  { %v8422_v11 = vadd.f32 %v2071_v34, %v10214_v33  ;;  %v2073_v19 = vpop.f32.mrb[42].mxu0  ;;  %v10466_v18 = vpack.c.bf16 %v2307_v3, %v2305_v44  ;;  %v12262_v3 = vld [vmem:[#allocation5_spill] sm:$0xff] }
 0x241   :  { %v2244_v37 = vadd.f32 %v8421_v31, %v10269_v52  ;;  %v8423_v6 = vadd.f32 %v2073_v19, %v10216_v23  ;;  %v2075_v57 = vpop.f32.mrb[43].mxu0  ;;  %v12263_v19 = vld [vmem:[#allocation6_spill] sm:$0xff] }
 0x242   :  { %v2245_v14 = vadd.f32 %v8422_v11, %v10273_v1  ;;  %v8424_v40 = vadd.f32 %v2075_v57, %v10218_v39  ;;  %7475 = vmatprep.mubr.msk.bf16.mxu1 %vm2448_vm6, %v10466_v18 }
 0x243   :  { %v2246_v32 = vadd.f32 %v8423_v6, %v10269_v52  ;;  %2606 = vmatmul.mubr.bf16.gmra.mrb[100].mxu1 %v10463_v4  ;;  %v2308_v60 = vmax.f32 %v2244_v37, 0.0 }
 0x244   :  { %v2247_v33 = vadd.f32 %v8424_v40, %v10273_v1  ;;  %v2309_v20 = vmax.f32 %v2245_v14, 0.0  ;;  %v12264_v14 = vld [vmem:[#allocation7_spill] sm:$0xff] }
 0x245   :  { %v2310_v45 = vmax.f32 %v2246_v32, 0.0 }
 0x246   :  { %v2311_v21 = vmax.f32 %v2247_v33, 0.0  ;;  %v2079_v24 = vpop.f32.mrb[44].mxu0 }
 0x247   :  { %v8425_v23 = vadd.f32 %v2079_v24, %v10220_v25  ;;  %v2081_v30 = vpop.f32.mrb[45].mxu0  ;;  %v10478_v61 = vpack.c.bf16 %v2310_v45, %v2308_v60 }
 0x248   :  { %v8426_v39 = vadd.f32 %v2081_v30, %v10222_v5  ;;  %v2083_v35 = vpop.f32.mrb[46].mxu0  ;;  %v10481_v51 = vpack.c.bf16 %v2311_v21, %v2309_v20 }
 0x249   :  { %v2248_v50 = vadd.f32 %v8425_v23, %v10269_v52  ;;  %v8427_v48 = vadd.f32 %v2083_v35, %v10224_v59  ;;  %v2085_v28 = vpop.f32.mrb[47].mxu0  ;;  %v12261_v59 = vld [vmem:[#allocation4_spill] sm:$0xff] }
 0x24a   :  { %v2249_v15 = vadd.f32 %v8426_v39, %v10273_v1  ;;  %v8428_v7 = vadd.f32 %v2085_v28, %v12260_v12  ;;  %7476 = vmatprep.mubr.msk.bf16.mxu1 %vm2448_vm6, %v10481_v51  ;;  %v12265_v23 = vld [vmem:[#allocation8_spill] sm:$0xff] }
 0x24b   :  { %v2250_v25 = vadd.f32 %v8427_v48, %v10269_v52  ;;  %2614 = vmatmul.mubr.bf16.gmra.mrb[104].mxu1 %v10478_v61  ;;  %v2312_v56 = vmax.f32 %v2248_v50, 0.0  ;;  %v12266_v50 = vld [vmem:[#allocation9_spill] sm:$0xff] }
 0x24c   :  { %v2251_v5 = vadd.f32 %v8428_v7, %v10273_v1  ;;  %v2313_v0 = vmax.f32 %v2249_v15, 0.0  ;;  %v12267_v7 = vld [vmem:[#allocation10_spill] sm:$0xff] }
 0x24d   :  { %v2314_v13 = vmax.f32 %v2250_v25, 0.0 }
 0x24e   :  { %v2315_v29 = vmax.f32 %v2251_v5, 0.0  ;;  %v2089_v2 = vpop.f32.mrb[48].mxu0 }
 0x24f   :  { %v8429_v16 = vadd.f32 %v2089_v2, %v12261_v59  ;;  %v2091_v26 = vpop.f32.mrb[49].mxu0  ;;  %v10493_v44 = vpack.c.bf16 %v2314_v13, %v2312_v56  ;;  %v12268_v13 = vld [vmem:[#allocation11_spill] sm:$0xff] }
 0x250   :  { %v8430_v8 = vadd.f32 %v2091_v26, %v12262_v3  ;;  %v2093_v31 = vpop.f32.mrb[50].mxu0  ;;  %v10496_v34 = vpack.c.bf16 %v2315_v29, %v2313_v0 }
 0x251   :  { %v2252_v11 = vadd.f32 %v8429_v16, %v10269_v52  ;;  %v8431_v37 = vadd.f32 %v2093_v31, %v12263_v19  ;;  %v2095_v6 = vpop.f32.mrb[51].mxu0  ;;  %v12269_v31 = vld [vmem:[#allocation12_spill] sm:$0xff] }
 0x252   :  { %v2253_v57 = vadd.f32 %v8430_v8, %v10273_v1  ;;  %v8432_v40 = vadd.f32 %v2095_v6, %v12264_v14  ;;  %7477 = vmatprep.mubr.msk.bf16.mxu1 %vm2448_vm6, %v10496_v34  ;;  %v12270_v6 = vld [vmem:[#allocation13_spill] sm:$0xff] }
 0x253   :  { %v2254_v32 = vadd.f32 %v8431_v37, %v10269_v52  ;;  %2622 = vmatmul.mubr.bf16.gmra.mrb[108].mxu1 %v10493_v44  ;;  %v2316_v60 = vmax.f32 %v2252_v11, 0.0 }
 0x254   :  { %v2255_v33 = vadd.f32 %v8432_v40, %v10273_v1  ;;  %v2317_v20 = vmax.f32 %v2253_v57, 0.0 }
 0x255   :  { %v2318_v45 = vmax.f32 %v2254_v32, 0.0 }
 0x256   :  { %v2319_v21 = vmax.f32 %v2255_v33, 0.0  ;;  %v2099_v24 = vpop.f32.mrb[52].mxu0  ;;  %v12271_v33 = vld [vmem:[#allocation14_spill] sm:$0xff] }
 0x257   :  { %v8433_v30 = vadd.f32 %v2099_v24, %v12265_v23  ;;  %v2101_v39 = vpop.f32.mrb[53].mxu0  ;;  %v10508_v35 = vpack.c.bf16 %v2318_v45, %v2316_v60 }
 0x258   :  { %v8434_v48 = vadd.f32 %v2101_v39, %v12266_v50  ;;  %v2103_v28 = vpop.f32.mrb[54].mxu0  ;;  %v10511_v15 = vpack.c.bf16 %v2319_v21, %v2317_v20  ;;  %v12272_v21 = vld [vmem:[#allocation15_spill] sm:$0xff] }
 0x259   :  { %v2256_v12 = vadd.f32 %v8433_v30, %v10269_v52  ;;  %v8435_v25 = vadd.f32 %v2103_v28, %v12267_v7  ;;  %v2105_v5 = vpop.f32.mrb[55].mxu0  ;;  %v12273_v7 = vld [vmem:[#allocation17_spill] sm:$0xff] }
 0x25a   :  { %v2257_v56 = vadd.f32 %v8434_v48, %v10273_v1  ;;  %v8436_v0 = vadd.f32 %v2105_v5, %v12268_v13  ;;  %7478 = vmatprep.mubr.msk.bf16.mxu1 %vm2448_vm6, %v10511_v15  ;;  %v12274_v13 = vld [vmem:[#allocation18_spill] sm:$0xff] }
 0x25b   :  { %v2258_v29 = vadd.f32 %v8435_v25, %v10269_v52  ;;  %2630 = vmatmul.mubr.bf16.gmra.mrb[112].mxu1 %v10508_v35  ;;  %v2320_v59 = vmax.f32 %v2256_v12, 0.0 }
 0x25c   :  { %v2259_v2 = vadd.f32 %v8436_v0, %v10273_v1  ;;  %v2321_v26 = vmax.f32 %v2257_v56, 0.0 }
 0x25d   :  { %v2322_v16 = vmax.f32 %v2258_v29, 0.0 }
 0x25e   :  { %v2323_v3 = vmax.f32 %v2259_v2, 0.0  ;;  %v2109_v8 = vpop.f32.mrb[56].mxu0 }
 0x25f   :  { %v8437_v11 = vadd.f32 %v2109_v8, %v12269_v31  ;;  %v2111_v19 = vpop.f32.mrb[57].mxu0  ;;  %v10523_v37 = vpack.c.bf16 %v2322_v16, %v2320_v59  ;;  %v12275_v16 = vld [vmem:[#allocation19_spill] sm:$0xff]  ;;  %v12276_v31 = vld [vmem:[#allocation20_spill] sm:$0xff] }
 0x260   :  { %v8438_v57 = vadd.f32 %v2111_v19, %v12270_v6  ;;  %v2113_v14 = vpop.f32.mrb[58].mxu0  ;;  %v10526_v40 = vpack.c.bf16 %v2323_v3, %v2321_v26 }
 0x261   :  { %v2260_v32 = vadd.f32 %v8437_v11, %v10269_v52  ;;  %v8439_v60 = vadd.f32 %v2113_v14, %v12271_v33  ;;  %v2115_v45 = vpop.f32.mrb[59].mxu0 }
 0x262   :  { %v2261_v20 = vadd.f32 %v8438_v57, %v10273_v1  ;;  %v8440_v24 = vadd.f32 %v2115_v45, %v12272_v21  ;;  %7479 = vmatprep.mubr.msk.bf16.mxu1 %vm2448_vm6, %v10526_v40  ;;  %v9143_v21 = vld [vmem:[%s12224_s5 + $0x90] ss:$8 sps:$4 sm:$0xff]  }
 0x263   :  { %v2262_v23 = vadd.f32 %v8439_v60, %v10269_v52  ;;  %2638 = vmatmul.mubr.bf16.gmra.mrb[116].mxu1 %v10523_v37  ;;  %v2324_v39 = vmax.f32 %v2260_v32, 0.0  ;;  %v9142_v32 = vld [vmem:[%s12224_s5 + $0x84] ss:$8 sps:$4 sm:$0xff]  }
 0x264   :  { %v2263_v30 = vadd.f32 %v8440_v24, %v10273_v1  ;;  %v2325_v48 = vmax.f32 %v2261_v20, 0.0  ;;  %3294 = vmatprep.subr.bf16.mxu1 %v9142_v32  ;;  %v9148_v24 = vld [vmem:[%s12224_s5 + $0xa4] ss:$8 sps:$4 sm:$0xff]  }
 0x265   :  { %v2326_v50 = vmax.f32 %v2262_v23, 0.0 }
 0x266   :  { %v2327_v28 = vmax.f32 %v2263_v30, 0.0  ;;  %v2119_v12 = vpop.f32.mrb[60].mxu0 }
 0x267   :  { %v8441_v25 = vadd.f32 %v2119_v12, %v12273_v7  ;;  %v2121_v5 = vpop.f32.mrb[61].mxu0  ;;  %v10538_v56 = vpack.c.bf16 %v2326_v50, %v2324_v39 }
 0x268   :  { %v8442_v0 = vadd.f32 %v2121_v5, %v12274_v13  ;;  %v2123_v29 = vpop.f32.mrb[62].mxu0  ;;  %v10541_v2 = vpack.c.bf16 %v2327_v28, %v2325_v48 }
 0x269   :  { %v2264_v59 = vadd.f32 %v8441_v25, %v10269_v52  ;;  %v8443_v26 = vadd.f32 %v2123_v29, %v12275_v16  ;;  %v2125_v3 = vpop.f32.mrb[63].mxu0 }
 0x26a   :  { %v2265_v8 = vadd.f32 %v8442_v0, %v10273_v1  ;;  %v8444_v11 = vadd.f32 %v2125_v3, %v12276_v31  ;;  %7480 = vmatprep.mubr.msk.bf16.mxu1 %vm2448_vm6, %v10541_v2 }
 0x26b   :  { %v2266_v19 = vadd.f32 %v8443_v26, %v10269_v52  ;;  %2646 = vmatmul.mubr.bf16.gmra.mrb[120].mxu1 %v10538_v56  ;;  %v2328_v57 = vmax.f32 %v2264_v59, 0.0  ;;  %v9145_v52 = vld [vmem:[%s12224_s5 + $0x94] ss:$8 sps:$4 sm:$0xff]  }
 0x26c   :  { %v2267_v6 = vadd.f32 %v8444_v11, %v10273_v1  ;;  %v2329_v33 = vmax.f32 %v2265_v8, 0.0  ;;  %v9140_v1 = vld [vmem:[%s12224_s5 + $0x80] ss:$8 sps:$4 sm:$0xff]  }
 0x26d   :  { %v2330_v14 = vmax.f32 %v2266_v19, 0.0 }
 0x26e   :  { %v2331_v60 = vmax.f32 %v2267_v6, 0.0 }
 0x26f   :  { %v10555_v45 = vpack.c.bf16 %v2330_v14, %v2328_v57 }
 0x270   :  { %v10557_v20 = vpack.c.bf16 %v2331_v60, %v2329_v33 }
 0x272   :  { %7481 = vmatprep.mubr.msk.bf16.mxu1 %vm2448_vm6, %v10557_v20 }
 0x273   :  { %2654 = vmatmul.mubr.bf16.gmra.mrb[124].mxu1 %v10555_v45 }
 0x274   :  { %7493 = vmatprep.mubr.msk.bf16.mxu1 %vm2448_vm6, %v10287_v58  ;;  %v9146_v58 = vld [vmem:[%s12224_s5 + $0xa0] ss:$8 sps:$4 sm:$0xff]  }
 0x27b   :  { %2782 = vmatmul.mubr.bf16.vlgmr.msra.gmra.mrb[128].mxu1 %v10283_v63  ;;  %v9149_v63 = vld [vmem:[%s12224_s5 + $0xb0] ss:$8 sps:$4 sm:$0xff]  }
 0x27c   :  { %7494 = vmatprep.mubr.msk.bf16.mxu1 %vm2448_vm6, %v10309_v27  ;;  %3295 = vmatpush1.bf16.msra.mxu1 %v9140_v1  ;;  %v9152_v27 = vld [vmem:[%s12224_s5 + $0xc0] ss:$8 sps:$4 sm:$0xff]  }
 0x27d   :  { %3296 = vmatprep.subr.bf16.mxu1 %v9145_v52 }
 0x280   :  { %3297 = vmatpush1.bf16.msra.mxu1 %v9143_v21 }
 0x281   :  { %3298 = vmatprep.subr.bf16.mxu1 %v9148_v24 }
 0x283   :  { %2790 = vmatmul.mubr.bf16.gmra.mrb[132].mxu1 %v10306_v54  ;;  %v9151_v54 = vld [vmem:[%s12224_s5 + $0xb4] ss:$8 sps:$4 sm:$0xff]  }
 0x284   :  { %7495 = vmatprep.mubr.msk.bf16.mxu1 %vm2448_vm6, %v10332_v43  ;;  %3299 = vmatpush1.bf16.msra.mxu1 %v9146_v58  ;;  %v9155_v43 = vld [vmem:[%s12224_s5 + $0xd0] ss:$8 sps:$4 sm:$0xff]  }
 0x285   :  { %3300 = vmatprep.subr.bf16.mxu1 %v9151_v54 }
 0x288   :  { %3301 = vmatpush1.bf16.msra.mxu1 %v9149_v63 }
 0x28b   :  { %2798 = vmatmul.mubr.bf16.gmra.mrb[136].mxu1 %v10329_v38  ;;  %v9154_v38 = vld [vmem:[%s12224_s5 + $0xc4] ss:$8 sps:$4 sm:$0xff]  }
 0x28c   :  { %7496 = vmatprep.mubr.msk.bf16.mxu1 %vm2448_vm6, %v10355_v17  ;;  %3302 = vmatprep.subr.bf16.mxu1 %v9154_v38  ;;  %v9158_v17 = vld [vmem:[%s12224_s5 + $0xe0] ss:$8 sps:$4 sm:$0xff]  }
 0x28d   :  { %3303 = vmatpush1.bf16.msra.mxu1 %v9152_v27 }
 0x293   :  { %2806 = vmatmul.mubr.bf16.gmra.mrb[140].mxu1 %v10352_v22  ;;  %v9157_v22 = vld [vmem:[%s12224_s5 + $0xd4] ss:$8 sps:$4 sm:$0xff]  }
 0x294   :  { %7497 = vmatprep.mubr.msk.bf16.mxu1 %vm2448_vm6, %v10378_v47  ;;  %3304 = vmatprep.subr.bf16.mxu1 %v9157_v22 }
 0x295   :  { %3305 = vmatpush1.bf16.msra.mxu1 %v9155_v43 }
 0x29b   :  { %2814 = vmatmul.mubr.bf16.gmra.mrb[144].mxu1 %v10375_v55  ;;  %v9160_v55 = vld [vmem:[%s12224_s5 + $0xe4] ss:$8 sps:$4 sm:$0xff]  }
 0x29c   :  { %7498 = vmatprep.mubr.msk.bf16.mxu1 %vm2448_vm6, %v10404_v41  ;;  %3306 = vmatprep.subr.bf16.mxu1 %v9160_v55 }
 0x29d   :  { %3307 = vmatpush1.bf16.msra.mxu1 %v9158_v17 }
 0x2a3   :  { %2822 = vmatmul.mubr.bf16.gmra.mrb[148].mxu1 %v10401_v49 }
 0x2a4   :  { %7499 = vmatprep.mubr.msk.bf16.mxu1 %vm2448_vm6, %v10421_v53 }
 0x2ab   :  { %2830 = vmatmul.mubr.bf16.gmra.mrb[152].mxu1 %v10418_v62 }
 0x2ac   :  { %7500 = vmatprep.mubr.msk.bf16.mxu1 %vm2448_vm6, %v10436_v42 }
 0x2b3   :  { %2838 = vmatmul.mubr.bf16.gmra.mrb[156].mxu1 %v10433_v46 }
 0x2b4   :  { %7501 = vmatprep.mubr.msk.bf16.mxu1 %vm2448_vm6, %v10451_v10 }
 0x2bb   :  { %2846 = vmatmul.mubr.bf16.gmra.mrb[160].mxu1 %v10448_v9 }
 0x2bc   :  { %7502 = vmatprep.mubr.msk.bf16.mxu1 %vm2448_vm6, %v10466_v18  ;;  %v9163_v18 = vld [vmem:[%s12224_s5 + $0xf4] ss:$8 sps:$4 sm:$0xff]  }
 0x2bd   :  { %3308 = vmatprep.subr.bf16.mxu1 %v9163_v18 }
 0x2c3   :  { %2854 = vmatmul.mubr.bf16.gmra.mrb[164].mxu1 %v10463_v4  ;;  %v9161_v4 = vld [vmem:[%s12224_s5 + $0xf0] ss:$8 sps:$4 sm:$0xff]  }
 0x2c4   :  { %7503 = vmatprep.mubr.msk.bf16.mxu1 %vm2448_vm6, %v10481_v51  ;;  %3309 = vmatpush1.bf16.msra.mxu1 %v9161_v4 }
 0x2cb   :  { %2862 = vmatmul.mubr.bf16.gmra.mrb[168].mxu1 %v10478_v61 }
 0x2cc   :  { %7504 = vmatprep.mubr.msk.bf16.mxu1 %vm2448_vm6, %v10496_v34 }
 0x2ce   :  { %v10636_v47 = vpop.f32.mrb[64].mxu1 }
 0x2cf   :  { %v2537_v49 = vpop.f32.mrb[65].mxu1 }
 0x2d0   :  { %v10638_v41 = vpop.f32.mrb[66].mxu1 }
 0x2d1   :  { %v2540_v62 = vpop.f32.mrb[67].mxu1 }
 0x2d3   :  { %2870 = vmatmul.mubr.bf16.gmra.mrb[172].mxu1 %v10493_v44 }
 0x2d4   :  { %7505 = vmatprep.mubr.msk.bf16.mxu1 %vm2448_vm6, %v10511_v15 }
 0x2d6   :  { %v10643_v53 = vpop.f32.mrb[68].mxu1 }
 0x2d7   :  { %v2545_v46 = vpop.f32.mrb[69].mxu1 }
 0x2d8   :  { %v10645_v42 = vpop.f32.mrb[70].mxu1 }
 0x2d9   :  { %v2548_v9 = vpop.f32.mrb[71].mxu1 }
 0x2db   :  { %2878 = vmatmul.mubr.bf16.gmra.mrb[176].mxu1 %v10508_v35 }
 0x2dc   :  { %7506 = vmatprep.mubr.msk.bf16.mxu1 %vm2448_vm6, %v10526_v40 }
 0x2de   :  { %v10650_v10 = vpop.f32.mrb[72].mxu1 }
 0x2df   :  { %v2553_v61 = vpop.f32.mrb[73].mxu1 }
 0x2e0   :  { %v10658_v51 = vpop.f32.mrb[74].mxu1 }
 0x2e1   :  { %v2556_v44 = vpop.f32.mrb[75].mxu1 }
 0x2e3   :  { %2886 = vmatmul.mubr.bf16.gmra.mrb[180].mxu1 %v10523_v37  ;;  %v9166_v37 = vld [vmem:[%s12224_s5 + $0x4] ss:$8 sps:$4 sm:$0xff]  }
 0x2e4   :  { %7507 = vmatprep.mubr.msk.bf16.mxu1 %vm2448_vm6, %v10541_v2  ;;  %3565 = vmatprep.subr.bf16.mxu1 %v9166_v37 }
 0x2e6   :  { %v10663_v34 = vpop.f32.mrb[76].mxu1 }
 0x2e7   :  { %v2561_v35 = vpop.f32.mrb[77].mxu1 }
 0x2e8   :  { %v10665_v15 = vpop.f32.mrb[78].mxu1 }
 0x2e9   :  { %v2564_v40 = vpop.f32.mrb[79].mxu1 }
 0x2eb   :  { %2894 = vmatmul.mubr.bf16.gmra.mrb[184].mxu1 %v10538_v56 }
 0x2ec   :  { %7508 = vmatprep.mubr.msk.bf16.mxu1 %vm2448_vm6, %v10557_v20 }
 0x2ee   :  { %v10670_v23 = vpop.f32.mrb[80].mxu1 }
 0x2ef   :  { %v2569_v30 = vpop.f32.mrb[81].mxu1 }
 0x2f0   :  { %v10675_v39 = vpop.f32.mrb[82].mxu1 }
 0x2f1   :  { %v2572_v50 = vpop.f32.mrb[83].mxu1 }
 0x2f3   :  { %2902 = vmatmul.mubr.bf16.gmra.mrb[188].mxu1 %v10555_v45 }
 0x2f4   :  { %3326 = vmatprep.mubr.bf16.mxu1 %v12259_v36 }
 0x2f6   :  { %v10679_v48 = vpop.f32.mrb[84].mxu1 }
 0x2f7   :  { %v2577_v28 = vpop.f32.mrb[85].mxu1 }
 0x2f8   :  { %v10681_v12 = vpop.f32.mrb[86].mxu1 }
 0x2f9   :  { %v2580_v7 = vpop.f32.mrb[87].mxu1 }
 0x2fe   :  { %v10683_v25 = vpop.f32.mrb[88].mxu1 }
 0x2ff   :  { %v2585_v5 = vpop.f32.mrb[89].mxu1 }
 0x300   :  { %v10685_v56 = vpop.f32.mrb[90].mxu1 }
 0x301   :  { %v2588_v13 = vpop.f32.mrb[91].mxu1 }
 0x306   :  { %v10687_v0 = vpop.f32.mrb[92].mxu1 }
 0x307   :  { %v2593_v29 = vpop.f32.mrb[93].mxu1 }
 0x308   :  { %v10689_v2 = vpop.f32.mrb[94].mxu1 }
 0x309   :  { %v2596_v59 = vpop.f32.mrb[95].mxu1 }
 0x30e   :  { %v10691_v16 = vpop.f32.mrb[96].mxu1 }
 0x30f   :  { %v2601_v26 = vpop.f32.mrb[97].mxu1 }
 0x310   :  { %v10693_v3 = vpop.f32.mrb[98].mxu1 }
 0x311   :  { %v2604_v8 = vpop.f32.mrb[99].mxu1 }
 0x316   :  { %v10695_v31 = vpop.f32.mrb[100].mxu1 }
 0x317   :  { %v2609_v11 = vpop.f32.mrb[101].mxu1 }
 0x318   :  { %v10697_v19 = vpop.f32.mrb[102].mxu1 }
 0x319   :  { %v2612_v6 = vpop.f32.mrb[103].mxu1 }
 0x31e   :  { %v10699_v57 = vpop.f32.mrb[104].mxu1 }
 0x31f   :  { %v2617_v14 = vpop.f32.mrb[105].mxu1 }
 0x320   :  { %v10701_v32 = vpop.f32.mrb[106].mxu1 }
 0x321   :  { %v2620_v33 = vpop.f32.mrb[107].mxu1 }
 0x326   :  { %v10703_v60 = vpop.f32.mrb[108].mxu1 }
 0x327   :  { %v2625_v45 = vpop.f32.mrb[109].mxu1 }
 0x328   :  { %v10705_v20 = vpop.f32.mrb[110].mxu1 }
 0x329   :  { %v2628_v1 = vpop.f32.mrb[111].mxu1 }
 0x32e   :  { %v10707_v52 = vpop.f32.mrb[112].mxu1 }
 0x32f   :  { %v2633_v21 = vpop.f32.mrb[113].mxu1 }
 0x330   :  { %v10709_v58 = vpop.f32.mrb[114].mxu1 }
 0x331   :  { %v2636_v24 = vpop.f32.mrb[115].mxu1 }
 0x336   :  { %v10711_v63 = vpop.f32.mrb[116].mxu1 }
 0x337   :  { %v2641_v54 = vpop.f32.mrb[117].mxu1 }
 0x338   :  { %v10713_v27 = vpop.f32.mrb[118].mxu1 }
 0x339   :  { %v2644_v38 = vpop.f32.mrb[119].mxu1 }
 0x33e   :  { %v10715_v43 = vpop.f32.mrb[120].mxu1 }
 0x33f   :  { %v2649_v22 = vpop.f32.mrb[121].mxu1 }
 0x340   :  { %v10717_v17 = vpop.f32.mrb[122].mxu1 }
 0x341   :  { %v2652_v55 = vpop.f32.mrb[123].mxu1 }
 0x346   :  { %v10719_v49 = vpop.f32.mrb[124].mxu1 }
 0x347   :  { %v2657_v62 = vpop.f32.mrb[125].mxu1 }
 0x348   :  { %v10721_v46 = vpop.f32.mrb[126].mxu1 }
 0x349   :  { %v2660_v9 = vpop.f32.mrb[127].mxu1 }
 0x34e   :  { %v2783_v4 = vpop.f32.mrb[128].mxu1 }
 0x34f   :  { %v2910_v18 = vmax.f32 %v10636_v47, %v2783_v4  ;;  %v2785_v61 = vpop.f32.mrb[129].mxu1 }
 0x350   :  { %v2786_v44 = vpop.f32.mrb[130].mxu1 }
 0x351   :  { %v2911_v35 = vmax.f32 %v10638_v41, %v2786_v44  ;;  %v2788_v40 = vpop.f32.mrb[131].mxu1  ;;  %v2975_v37 = vrot.slane %v2910_v18, 1 }
 0x353   :  { %v2976_v30 = vrot.slane %v2911_v35, 1 }
 0x355   :  { %v2977_v50 = vsel %vm925_vm0, %v2975_v37, %v2976_v30 }
 0x356   :  { %v3070_v28 = vmax.f32 %v2910_v18, %v2977_v50  ;;  %v2791_v7 = vpop.f32.mrb[132].mxu1 }
 0x357   :  { %v2912_v5 = vmax.f32 %v10643_v53, %v2791_v7  ;;  %v2793_v13 = vpop.f32.mrb[133].mxu1 }
 0x358   :  { %v2794_v29 = vpop.f32.mrb[134].mxu1 }
 0x359   :  { %v2978_v59 = vrot.slane %v2912_v5, 1  ;;  %v2913_v26 = vmax.f32 %v10645_v42, %v2794_v29  ;;  %v2796_v8 = vpop.f32.mrb[135].mxu1  ;;  %v9167_v29 = vld [vmem:[%s12224_s5 + $0x10] ss:$8 sps:$4 sm:$0xff]  }
 0x35b   :  { %v2979_v47 = vsel %vm925_vm0, %v2976_v30, %v2978_v59  ;;  %v2980_v11 = vrot.slane %v2913_v26, 1 }
 0x35c   :  { %v3071_v6 = vmax.f32 %v2911_v35, %v2979_v47 }
 0x35d   :  { %v2981_v41 = vsel %vm925_vm0, %v2978_v59, %v2980_v11  ;;  %v9172_v59 = vld [vmem:[%s12224_s5 + $0x24] ss:$8 sps:$4 sm:$0xff]  }
 0x35e   :  { %v10730_v14 = vpack.c.bf16 %v3071_v6, %v3070_v28  ;;  %v3072_v33 = vmax.f32 %v2912_v5, %v2981_v41  ;;  %v2799_v45 = vpop.f32.mrb[136].mxu1  ;;  %v9169_v28 = vld [vmem:[%s12224_s5 + $0x14] ss:$8 sps:$4 sm:$0xff]  }
 0x35f   :  { %v2914_v1 = vmax.f32 %v10650_v10, %v2799_v45  ;;  %v2801_v21 = vpop.f32.mrb[137].mxu1  ;;  %v9170_v45 = vld [vmem:[%s12224_s5 + $0x20] ss:$8 sps:$4 sm:$0xff]  }
 0x360   :  { %v2802_v53 = vpop.f32.mrb[138].mxu1  ;;  %v3167_v35 = vrot.slane %v10730_v14, 1 }
 0x361   :  { %v2982_v24 = vrot.slane %v2914_v1, 1  ;;  %v2915_v54 = vmax.f32 %v10658_v51, %v2802_v53  ;;  %v2804_v38 = vpop.f32.mrb[139].mxu1  ;;  %v9164_v51 = vld [vmem:[%s12224_s5] ss:$8 sps:$4 sm:$0xff]  }
 0x363   :  { %v2983_v42 = vsel %vm925_vm0, %v2980_v11, %v2982_v24  ;;  %v2984_v22 = vrot.slane %v2915_v54, 1 }
 0x364   :  { %v3073_v55 = vmax.f32 %v2913_v26, %v2983_v42 }
 0x365   :  { %v2985_v62 = vsel %vm925_vm0, %v2982_v24, %v2984_v22  ;;  %v9175_v24 = vld [vmem:[%s12224_s5 + $0x34] ss:$8 sps:$4 sm:$0xff]  }
 0x366   :  { %v10736_v9 = vpack.c.bf16 %v3073_v55, %v3072_v33  ;;  %v3074_v4 = vmax.f32 %v2914_v1, %v2985_v62  ;;  %v2807_v18 = vpop.f32.mrb[140].mxu1  ;;  %v9178_v55 = vld [vmem:[%s12224_s5 + $0x44] ss:$8 sps:$4 sm:$0xff]  }
 0x367   :  { %v2916_v61 = vmax.f32 %v10663_v34, %v2807_v18  ;;  %v2809_v44 = vpop.f32.mrb[141].mxu1 }
 0x368   :  { %v2810_v10 = vpop.f32.mrb[142].mxu1  ;;  %v3168_v40 = vrot.slane %v10736_v9, 1 }
 0x369   :  { %v2986_v37 = vrot.slane %v2916_v61, 1  ;;  %v2917_v30 = vmax.f32 %v10665_v15, %v2810_v10  ;;  %v2812_v50 = vpop.f32.mrb[143].mxu1 }
 0x36a   :  { %v3169_v34 = vsel %vm925_vm0, %v3167_v35, %v3168_v40  ;;  %v9181_v50 = vld [vmem:[%s12224_s5 + $0x54] ss:$8 sps:$4 sm:$0xff]  }
 0x36b   :  { %v2987_v7 = vsel %vm925_vm0, %v2984_v22, %v2986_v37  ;;  %v2988_v5 = vrot.slane %v2917_v30, 1  ;;  %3327 = vmatmul.mubr.bf16.vlgmr.msra.gmra.mrb[192].mxu1 %v3169_v34 }
 0x36c   :  { %v3075_v13 = vmax.f32 %v2915_v54, %v2987_v7  ;;  %3566 = vmatpush1.bf16.msra.mxu1 %v9164_v51  ;;  %3336 = vmatprep.mubr.bf16.mxu1 %v12259_v36 }
 0x36d   :  { %v2989_v15 = vsel %vm925_vm0, %v2986_v37, %v2988_v5  ;;  %3567 = vmatprep.subr.bf16.mxu1 %v9169_v28 }
 0x36e   :  { %v10758_v26 = vpack.c.bf16 %v3075_v13, %v3074_v4  ;;  %v3076_v8 = vmax.f32 %v2916_v61, %v2989_v15  ;;  %v2815_v47 = vpop.f32.mrb[144].mxu1  ;;  %v9184_v13 = vld [vmem:[%s12224_s5 + $0x64] ss:$8 sps:$4 sm:$0xff]  }
 0x36f   :  { %v2918_v11 = vmax.f32 %v10670_v23, %v2815_v47  ;;  %v2817_v6 = vpop.f32.mrb[145].mxu1 }
 0x370   :  { %v2818_v41 = vpop.f32.mrb[146].mxu1  ;;  %v3170_v33 = vrot.slane %v10758_v26, 1  ;;  %3568 = vmatpush1.bf16.msra.mxu1 %v9167_v29 }
 0x371   :  { %v2990_v1 = vrot.slane %v2918_v11, 1  ;;  %v2919_v21 = vmax.f32 %v10675_v39, %v2818_v41  ;;  %v2820_v53 = vpop.f32.mrb[147].mxu1  ;;  %3569 = vmatprep.subr.bf16.mxu1 %v9172_v59  ;;  %v9173_v39 = vld [vmem:[%s12224_s5 + $0x30] ss:$8 sps:$4 sm:$0xff]   ;;  %v9182_v41 = vld [vmem:[%s12224_s5 + $0x60] ss:$8 sps:$4 sm:$0xff]  }
 0x372   :  { %v3171_v23 = vsel %vm925_vm0, %v3168_v40, %v3170_v33  ;;  %v9176_v40 = vld [vmem:[%s12224_s5 + $0x40] ss:$8 sps:$4 sm:$0xff]  }
 0x373   :  { %v2991_v54 = vsel %vm925_vm0, %v2988_v5, %v2990_v1  ;;  %v2992_v38 = vrot.slane %v2919_v21, 1  ;;  %3337 = vmatmul.mubr.bf16.gmra.mrb[196].mxu1 %v3171_v23 }
 0x374   :  { %v3077_v42 = vmax.f32 %v2917_v30, %v2991_v54  ;;  %3346 = vmatprep.mubr.bf16.mxu1 %v12259_v36  ;;  %3570 = vmatpush1.bf16.msra.mxu1 %v9170_v45 }
 0x375   :  { %v2993_v22 = vsel %vm925_vm0, %v2990_v1, %v2992_v38  ;;  %3571 = vmatprep.subr.bf16.mxu1 %v9175_v24 }
 0x376   :  { %v10779_v62 = vpack.c.bf16 %v3077_v42, %v3076_v8  ;;  %v3078_v4 = vmax.f32 %v2918_v11, %v2993_v22  ;;  %v2823_v18 = vpop.f32.mrb[148].mxu1 }
 0x377   :  { %v2920_v61 = vmax.f32 %v10679_v48, %v2823_v18  ;;  %v2825_v44 = vpop.f32.mrb[149].mxu1 }
 0x378   :  { %v2826_v10 = vpop.f32.mrb[150].mxu1  ;;  %v3172_v35 = vrot.slane %v10779_v62, 1  ;;  %3572 = vmatpush1.bf16.msra.mxu1 %v9173_v39 }
 0x379   :  { %v2994_v51 = vrot.slane %v2920_v61, 1  ;;  %v2921_v37 = vmax.f32 %v10681_v12, %v2826_v10  ;;  %v2828_v30 = vpop.f32.mrb[151].mxu1  ;;  %3573 = vmatprep.subr.bf16.mxu1 %v9178_v55  ;;  %v9179_v12 = vld [vmem:[%s12224_s5 + $0x50] ss:$8 sps:$4 sm:$0xff]  }
 0x37a   :  { %v3173_v48 = vsel %vm925_vm0, %v3170_v33, %v3172_v35 }
 0x37b   :  { %v2995_v28 = vsel %vm925_vm0, %v2992_v38, %v2994_v51  ;;  %v2996_v34 = vrot.slane %v2921_v37, 1  ;;  %3347 = vmatmul.mubr.bf16.gmra.mrb[200].mxu1 %v3173_v48  ;;  %v9190_v38 = vld [vmem:[%s12224_s5 + $0x104] ss:$8 sps:$4 sm:$0xff]  }
 0x37c   :  { %v3079_v7 = vmax.f32 %v2919_v21, %v2995_v28  ;;  %3356 = vmatprep.mubr.bf16.mxu1 %v12259_v36  ;;  %3574 = vmatpush1.bf16.msra.mxu1 %v9176_v40  ;;  %v9187_v21 = vld [vmem:[%s12224_s5 + $0x74] ss:$8 sps:$4 sm:$0xff]  }
 0x37d   :  { %v2997_v5 = vsel %vm925_vm0, %v2994_v51, %v2996_v34  ;;  %3575 = vmatprep.subr.bf16.mxu1 %v9181_v50 }
 0x37e   :  { %v10800_v29 = vpack.c.bf16 %v3079_v7, %v3078_v4  ;;  %v3080_v15 = vmax.f32 %v2920_v61, %v2997_v5  ;;  %v2831_v59 = vpop.f32.mrb[152].mxu1 }
 0x37f   :  { %v2922_v8 = vmax.f32 %v10683_v25, %v2831_v59  ;;  %v2833_v47 = vpop.f32.mrb[153].mxu1 }
 0x380   :  { %v2834_v11 = vpop.f32.mrb[154].mxu1  ;;  %v3174_v6 = vrot.slane %v10800_v29, 1  ;;  %3576 = vmatpush1.bf16.msra.mxu1 %v9179_v12 }
 0x381   :  { %v2998_v33 = vrot.slane %v2922_v8, 1  ;;  %v2923_v45 = vmax.f32 %v10685_v56, %v2834_v11  ;;  %v2836_v1 = vpop.f32.mrb[155].mxu1  ;;  %3577 = vmatprep.subr.bf16.mxu1 %v9184_v13  ;;  %v9185_v56 = vld [vmem:[%s12224_s5 + $0x70] ss:$8 sps:$4 sm:$0xff]  }
 0x382   :  { %v3175_v25 = vsel %vm925_vm0, %v3172_v35, %v3174_v6 }
 0x383   :  { %v2999_v53 = vsel %vm925_vm0, %v2996_v34, %v2998_v33  ;;  %v3000_v24 = vrot.slane %v2923_v45, 1  ;;  %3357 = vmatmul.mubr.bf16.gmra.mrb[204].mxu1 %v3175_v25 }
 0x384   :  { %v3081_v23 = vmax.f32 %v2921_v37, %v2999_v53  ;;  %3366 = vmatprep.mubr.bf16.mxu1 %v12259_v36  ;;  %3578 = vmatpush1.bf16.msra.mxu1 %v9182_v41 }
 0x385   :  { %v3001_v54 = vsel %vm925_vm0, %v2998_v33, %v3000_v24  ;;  %3579 = vmatprep.subr.bf16.mxu1 %v9187_v21 }
 0x386   :  { %v10821_v42 = vpack.c.bf16 %v3081_v23, %v3080_v15  ;;  %v3082_v39 = vmax.f32 %v2922_v8, %v3001_v54  ;;  %v2839_v22 = vpop.f32.mrb[156].mxu1 }
 0x387   :  { %v2924_v55 = vmax.f32 %v10687_v0, %v2839_v22  ;;  %v2841_v4 = vpop.f32.mrb[157].mxu1 }
 0x388   :  { %v2842_v18 = vpop.f32.mrb[158].mxu1  ;;  %v3176_v61 = vrot.slane %v10821_v42, 1  ;;  %3580 = vmatpush1.bf16.msra.mxu1 %v9185_v56 }
 0x389   :  { %v3002_v44 = vrot.slane %v2924_v55, 1  ;;  %v2925_v10 = vmax.f32 %v10689_v2, %v2842_v18  ;;  %v2844_v35 = vpop.f32.mrb[159].mxu1  ;;  %3900 = vmatprep.subr.bf16.mxu1 %v9190_v38 }
 0x38a   :  { %v3177_v40 = vsel %vm925_vm0, %v3174_v6, %v3176_v61 }
 0x38b   :  { %v3003_v51 = vsel %vm925_vm0, %v3000_v24, %v3002_v44  ;;  %v3004_v37 = vrot.slane %v2925_v10, 1  ;;  %3367 = vmatmul.mubr.bf16.gmra.mrb[208].mxu1 %v3177_v40 }
 0x38c   :  { %v3083_v30 = vmax.f32 %v2923_v45, %v3003_v51  ;;  %3376 = vmatprep.mubr.bf16.mxu1 %v12259_v36 }
 0x38d   :  { %v3005_v0 = vsel %vm925_vm0, %v3002_v44, %v3004_v37 }
 0x38e   :  { %v10830_v50 = vpack.c.bf16 %v3083_v30, %v3082_v39  ;;  %v3084_v48 = vmax.f32 %v2924_v55, %v3005_v0  ;;  %v2847_v28 = vpop.f32.mrb[160].mxu1 }
 0x38f   :  { %v2926_v34 = vmax.f32 %v10691_v16, %v2847_v28  ;;  %v2849_v2 = vpop.f32.mrb[161].mxu1 }
 0x390   :  { %v2850_v7 = vpop.f32.mrb[162].mxu1  ;;  %v3178_v12 = vrot.slane %v10830_v50, 1 }
 0x391   :  { %v3006_v5 = vrot.slane %v2926_v34, 1  ;;  %v2927_v13 = vmax.f32 %v10693_v3, %v2850_v7  ;;  %v2852_v15 = vpop.f32.mrb[163].mxu1 }
 0x392   :  { %v3179_v59 = vsel %vm925_vm0, %v3176_v61, %v3178_v12 }
 0x393   :  { %v3007_v8 = vsel %vm925_vm0, %v3004_v37, %v3006_v5  ;;  %v3008_v47 = vrot.slane %v2927_v13, 1  ;;  %3377 = vmatmul.mubr.bf16.gmra.mrb[212].mxu1 %v3179_v59 }
 0x394   :  { %v3085_v11 = vmax.f32 %v2925_v10, %v3007_v8  ;;  %3386 = vmatprep.mubr.bf16.mxu1 %v12259_v36 }
 0x395   :  { %v3009_v6 = vsel %vm925_vm0, %v3006_v5, %v3008_v47 }
 0x396   :  { %v10839_v16 = vpack.c.bf16 %v3085_v11, %v3084_v48  ;;  %v3086_v41 = vmax.f32 %v2926_v34, %v3009_v6  ;;  %v2855_v33 = vpop.f32.mrb[164].mxu1 }
 0x397   :  { %v2928_v45 = vmax.f32 %v10695_v31, %v2855_v33  ;;  %v2857_v1 = vpop.f32.mrb[165].mxu1 }
 0x398   :  { %v2858_v3 = vpop.f32.mrb[166].mxu1  ;;  %v3180_v21 = vrot.slane %v10839_v16, 1 }
 0x399   :  { %v3010_v25 = vrot.slane %v2928_v45, 1  ;;  %v2929_v53 = vmax.f32 %v10697_v19, %v2858_v3  ;;  %v2860_v24 = vpop.f32.mrb[167].mxu1 }
 0x39a   :  { %v3181_v23 = vsel %vm925_vm0, %v3178_v12, %v3180_v21 }
 0x39b   :  { %v3011_v56 = vsel %vm925_vm0, %v3008_v47, %v3010_v25  ;;  %v3012_v54 = vrot.slane %v2929_v53, 1  ;;  %3387 = vmatmul.mubr.bf16.gmra.mrb[216].mxu1 %v3181_v23 }
 0x39c   :  { %v3087_v38 = vmax.f32 %v2927_v13, %v3011_v56  ;;  %3396 = vmatprep.mubr.bf16.mxu1 %v12259_v36 }
 0x39d   :  { %v3013_v39 = vsel %vm925_vm0, %v3010_v25, %v3012_v54 }
 0x39e   :  { %v10848_v31 = vpack.c.bf16 %v3087_v38, %v3086_v41  ;;  %v3088_v22 = vmax.f32 %v2928_v45, %v3013_v39  ;;  %v2863_v55 = vpop.f32.mrb[168].mxu1 }
 0x39f   :  { %v2930_v4 = vmax.f32 %v10699_v57, %v2863_v55  ;;  %v2865_v18 = vpop.f32.mrb[169].mxu1 }
 0x3a0   :  { %v2866_v19 = vpop.f32.mrb[170].mxu1  ;;  %v3182_v61 = vrot.slane %v10848_v31, 1 }
 0x3a1   :  { %v3014_v44 = vrot.slane %v2930_v4, 1  ;;  %v2931_v10 = vmax.f32 %v10701_v32, %v2866_v19  ;;  %v2868_v35 = vpop.f32.mrb[171].mxu1 }
 0x3a2   :  { %v3183_v40 = vsel %vm925_vm0, %v3180_v21, %v3182_v61 }
 0x3a3   :  { %v3015_v51 = vsel %vm925_vm0, %v3012_v54, %v3014_v44  ;;  %v3016_v37 = vrot.slane %v2931_v10, 1  ;;  %3397 = vmatmul.mubr.bf16.gmra.mrb[220].mxu1 %v3183_v40 }
 0x3a4   :  { %v3089_v30 = vmax.f32 %v2929_v53, %v3015_v51  ;;  %3406 = vmatprep.mubr.bf16.mxu1 %v12259_v36 }
 0x3a5   :  { %v3017_v0 = vsel %vm925_vm0, %v3014_v44, %v3016_v37 }
 0x3a6   :  { %v10857_v57 = vpack.c.bf16 %v3089_v30, %v3088_v22  ;;  %v3090_v48 = vmax.f32 %v2930_v4, %v3017_v0  ;;  %v2871_v28 = vpop.f32.mrb[172].mxu1 }
 0x3a7   :  { %v2932_v34 = vmax.f32 %v10703_v60, %v2871_v28  ;;  %v2873_v2 = vpop.f32.mrb[173].mxu1 }
 0x3a8   :  { %v2874_v32 = vpop.f32.mrb[174].mxu1  ;;  %v3184_v7 = vrot.slane %v10857_v57, 1 }
 0x3a9   :  { %v3018_v12 = vrot.slane %v2932_v34, 1  ;;  %v2933_v5 = vmax.f32 %v10705_v20, %v2874_v32  ;;  %v2876_v13 = vpop.f32.mrb[175].mxu1 }
 0x3aa   :  { %v3185_v15 = vsel %vm925_vm0, %v3182_v61, %v3184_v7 }
 0x3ab   :  { %v3019_v59 = vsel %vm925_vm0, %v3016_v37, %v3018_v12  ;;  %v3020_v8 = vrot.slane %v2933_v5, 1  ;;  %3407 = vmatmul.mubr.bf16.gmra.mrb[224].mxu1 %v3185_v15 }
 0x3ac   :  { %v3091_v47 = vmax.f32 %v2931_v10, %v3019_v59  ;;  %3416 = vmatprep.mubr.bf16.mxu1 %v12259_v36 }
 0x3ad   :  { %v3021_v11 = vsel %vm925_vm0, %v3018_v12, %v3020_v8 }
 0x3ae   :  { %v10866_v60 = vpack.c.bf16 %v3091_v47, %v3090_v48  ;;  %v3092_v6 = vmax.f32 %v2932_v34, %v3021_v11  ;;  %v2879_v41 = vpop.f32.mrb[176].mxu1 }
 0x3af   :  { %v2934_v33 = vmax.f32 %v10707_v52, %v2879_v41  ;;  %v2881_v45 = vpop.f32.mrb[177].mxu1 }
 0x3b0   :  { %v2882_v20 = vpop.f32.mrb[178].mxu1  ;;  %v3186_v1 = vrot.slane %v10866_v60, 1 }
 0x3b1   :  { %v3022_v3 = vrot.slane %v2934_v33, 1  ;;  %v2935_v21 = vmax.f32 %v10709_v58, %v2882_v20  ;;  %v2884_v25 = vpop.f32.mrb[179].mxu1 }
 0x3b2   :  { %v3187_v53 = vsel %vm925_vm0, %v3184_v7, %v3186_v1 }
 0x3b3   :  { %v3023_v24 = vsel %vm925_vm0, %v3020_v8, %v3022_v3  ;;  %v3024_v23 = vrot.slane %v2935_v21, 1  ;;  %3417 = vmatmul.mubr.bf16.gmra.mrb[228].mxu1 %v3187_v53 }
 0x3b4   :  { %v3093_v56 = vmax.f32 %v2933_v5, %v3023_v24  ;;  %3426 = vmatprep.mubr.bf16.mxu1 %v12259_v36 }
 0x3b5   :  { %v3025_v54 = vsel %vm925_vm0, %v3022_v3, %v3024_v23 }
 0x3b6   :  { %v10875_v52 = vpack.c.bf16 %v3093_v56, %v3092_v6  ;;  %v3094_v38 = vmax.f32 %v2934_v33, %v3025_v54  ;;  %v2887_v39 = vpop.f32.mrb[180].mxu1 }
 0x3b7   :  { %v2936_v22 = vmax.f32 %v10711_v63, %v2887_v39  ;;  %v2889_v55 = vpop.f32.mrb[181].mxu1  ;;  %v9188_v39 = vld [vmem:[%s12224_s5 + $0x100] ss:$8 sps:$4 sm:$0xff]  }
 0x3b8   :  { %v2890_v58 = vpop.f32.mrb[182].mxu1  ;;  %v3188_v4 = vrot.slane %v10875_v52, 1  ;;  %v9191_v55 = vld [vmem:[%s12224_s5 + $0x110] ss:$8 sps:$4 sm:$0xff]  }
 0x3b9   :  { %v3026_v18 = vrot.slane %v2936_v22, 1  ;;  %v2937_v19 = vmax.f32 %v10713_v27, %v2890_v58  ;;  %v2892_v61 = vpop.f32.mrb[183].mxu1  ;;  %v9196_v58 = vld [vmem:[%s12224_s5 + $0x124] ss:$8 sps:$4 sm:$0xff]  }
 0x3ba   :  { %v3189_v44 = vsel %vm925_vm0, %v3186_v1, %v3188_v4  ;;  %v9202_v61 = vld [vmem:[%s12224_s5 + $0x144] ss:$8 sps:$4 sm:$0xff]  }
 0x3bb   :  { %v3027_v10 = vsel %vm925_vm0, %v3024_v23, %v3026_v18  ;;  %v3028_v35 = vrot.slane %v2937_v19, 1  ;;  %3427 = vmatmul.mubr.bf16.gmra.mrb[232].mxu1 %v3189_v44  ;;  %v9200_v44 = vld [vmem:[%s12224_s5 + $0x140] ss:$8 sps:$4 sm:$0xff]  }
 0x3bc   :  { %v3095_v40 = vmax.f32 %v2935_v21, %v3027_v10  ;;  %3436 = vmatprep.mubr.bf16.mxu1 %v12259_v36  ;;  %v9205_v10 = vld [vmem:[%s12224_s5 + $0x154] ss:$8 sps:$4 sm:$0xff]  }
 0x3bd   :  { %v3029_v51 = vsel %vm925_vm0, %v3026_v18, %v3028_v35  ;;  %v9199_v18 = vld [vmem:[%s12224_s5 + $0x134] ss:$8 sps:$4 sm:$0xff]  }
 0x3be   :  { %v10884_v63 = vpack.c.bf16 %v3095_v40, %v3094_v38  ;;  %v3096_v37 = vmax.f32 %v2936_v22, %v3029_v51  ;;  %v2895_v30 = vpop.f32.mrb[184].mxu1  ;;  %v9193_v22 = vld [vmem:[%s12224_s5 + $0x114] ss:$8 sps:$4 sm:$0xff]   ;;  %v9208_v40 = vld [vmem:[%s12224_s5 + $0x164] ss:$8 sps:$4 sm:$0xff]  }
 0x3bf   :  { %v2938_v0 = vmax.f32 %v10715_v43, %v2895_v30  ;;  %v2897_v48 = vpop.f32.mrb[185].mxu1  ;;  %v9206_v51 = vld [vmem:[%s12224_s5 + $0x160] ss:$8 sps:$4 sm:$0xff]   ;;  %v9209_v30 = vld [vmem:[%s12224_s5 + $0x170] ss:$8 sps:$4 sm:$0xff]  }
 0x3c0   :  { %v2898_v27 = vpop.f32.mrb[186].mxu1  ;;  %v3190_v28 = vrot.slane %v10884_v63, 1  ;;  %v3774_v48 = vrot.slane %v10736_v9, 2 }
 0x3c1   :  { %v3030_v34 = vrot.slane %v2938_v0, 1  ;;  %v2939_v2 = vmax.f32 %v10717_v17, %v2898_v27  ;;  %v2900_v32 = vpop.f32.mrb[187].mxu1  ;;  %v3773_v27 = vrot.slane %v10730_v14, 2 }
 0x3c2   :  { %v3191_v7 = vsel %vm925_vm0, %v3188_v4, %v3190_v28  ;;  %v9194_v4 = vld [vmem:[%s12224_s5 + $0x120] ss:$8 sps:$4 sm:$0xff]   ;;  %v9215_v32 = vld [vmem:[%s12224_s5 + $0x190] ss:$8 sps:$4 sm:$0xff]  }
 0x3c3   :  { %v3031_v12 = vsel %vm925_vm0, %v3028_v35, %v3030_v34  ;;  %v3032_v5 = vrot.slane %v2939_v2, 1  ;;  %3437 = vmatmul.mubr.bf16.gmra.mrb[236].mxu1 %v3191_v7  ;;  %v9203_v35 = vld [vmem:[%s12224_s5 + $0x150] ss:$8 sps:$4 sm:$0xff]   ;;  %v9220_v7 = vld [vmem:[%s12224_s5 + $0x1a4] ss:$8 sps:$4 sm:$0xff]  }
 0x3c4   :  { %v3097_v13 = vmax.f32 %v2937_v19, %v3031_v12  ;;  %3446 = vmatprep.mubr.bf16.mxu1 %v12259_v36  ;;  %v9197_v19 = vld [vmem:[%s12224_s5 + $0x130] ss:$8 sps:$4 sm:$0xff]   ;;  %v3776_v12 = vrot.slane %v10758_v26, 2 }
 0x3c5   :  { %v3033_v15 = vsel %vm925_vm0, %v3030_v34, %v3032_v5  ;;  %v9217_v34 = vld [vmem:[%s12224_s5 + $0x194] ss:$8 sps:$4 sm:$0xff]  }
 0x3c6   :  { %v10893_v43 = vpack.c.bf16 %v3097_v13, %v3096_v37  ;;  %v3098_v59 = vmax.f32 %v2938_v0, %v3033_v15  ;;  %v2903_v8 = vpop.f32.mrb[188].mxu1  ;;  %v9211_v37 = vld [vmem:[%s12224_s5 + $0x174] ss:$8 sps:$4 sm:$0xff]   ;;  %v9214_v0 = vld [vmem:[%s12224_s5 + $0x184] ss:$8 sps:$4 sm:$0xff]   ;;  %v3777_v15 = vsel %vm1795_vm4, %v3774_v48, %v3776_v12 }
 0x3c7   :  { %v2940_v47 = vmax.f32 %v10719_v49, %v2903_v8  ;;  %v2905_v11 = vpop.f32.mrb[189].mxu1  ;;  %v9223_v13 = vld [vmem:[%s12224_s5 + $0x1b4] ss:$8 sps:$4 sm:$0xff]   ;;  %v9226_v8 = vld [vmem:[%s12224_s5 + $0x1c4] ss:$8 sps:$4 sm:$0xff]  }
 0x3c8   :  { %v2906_v17 = vpop.f32.mrb[190].mxu1  ;;  %v3192_v6 = vrot.slane %v10893_v43, 1  ;;  %v9224_v11 = vld [vmem:[%s12224_s5 + $0x1c0] ss:$8 sps:$4 sm:$0xff]  }
 0x3c9   :  { %v3034_v41 = vrot.slane %v2940_v47, 1  ;;  %v2941_v33 = vmax.f32 %v10721_v46, %v2906_v17  ;;  %v2908_v45 = vpop.f32.mrb[191].mxu1  ;;  %v9229_v17 = vld [vmem:[%s12224_s5 + $0x1d4] ss:$8 sps:$4 sm:$0xff]  }
 0x3ca   :  { %v3193_v20 = vsel %vm925_vm0, %v3190_v28, %v3192_v6  ;;  %v9212_v28 = vld [vmem:[%s12224_s5 + $0x180] ss:$8 sps:$4 sm:$0xff]   ;;  %v3780_v45 = vrot.slane %v10800_v29, 2 }
 0x3cb   :  { %v3035_v1 = vsel %vm925_vm0, %v3032_v5, %v3034_v41  ;;  %v3036_v3 = vrot.slane %v2941_v33, 1  ;;  %3447 = vmatmul.mubr.bf16.gmra.mrb[240].mxu1 %v3193_v20  ;;  %v9218_v5 = vld [vmem:[%s12224_s5 + $0x1a0] ss:$8 sps:$4 sm:$0xff]  }
 0x3cc   :  { %v3099_v21 = vmax.f32 %v2939_v2, %v3035_v1  ;;  %3456 = vmatprep.mubr.bf16.mxu1 %v12259_v36  ;;  %v3775_v2 = vsel %vm1795_vm4, %v3773_v27, %v3774_v48  ;;  %v9230_v20 = vld [vmem:[%s12224_s5 + $0x1e0] ss:$8 sps:$4 sm:$0xff]   ;;  %v9235_v1 = vld [vmem:[%s12224_s5 + $0x1f4] ss:$8 sps:$4 sm:$0xff]  }
 0x3cd   :  { %v3037_v25 = vsel %vm925_vm0, %v3034_v41, %v3036_v3  ;;  %v3101_v49 = vmax.f32 %v2941_v33, %v3036_v3  ;;  %v9227_v41 = vld [vmem:[%s12224_s5 + $0x1d0] ss:$8 sps:$4 sm:$0xff]   ;;  %v9232_v33 = vld [vmem:[%s12224_s5 + $0x1e4] ss:$8 sps:$4 sm:$0xff]  }
 0x3ce   :  { %v10902_v53 = vpack.c.bf16 %v3099_v21, %v3098_v59  ;;  %v3100_v24 = vmax.f32 %v2940_v47, %v3037_v25  ;;  %v9221_v59 = vld [vmem:[%s12224_s5 + $0x1b0] ss:$8 sps:$4 sm:$0xff]   ;;  %v3778_v47 = vrot.slane %v10779_v62, 2  ;;  %v9238_v25 = vld [vmem:[%s12224_s5 + $0x204] ss:$8 sps:$4 sm:$0xff]  }
 0x3cf   :  { %v9233_v21 = vld [vmem:[%s12224_s5 + $0x1f0] ss:$8 sps:$4 sm:$0xff]  }
 0x3d0   :  { %v10904_v23 = vpack.c.bf16 %v3101_v49, %v3100_v24  ;;  %v3194_v46 = vrot.slane %v10902_v53, 1  ;;  %v3781_v3 = vsel %vm1795_vm4, %v3778_v47, %v3780_v45  ;;  %v3782_v49 = vrot.slane %v10821_v42, 2 }
 0x3d1   :  { %v3800_v48 = vrot.slane %v10902_v53, 2 }
 0x3d2   :  { %v3195_v56 = vsel %vm925_vm0, %v3192_v6, %v3194_v46  ;;  %v3196_v54 = vrot.slane %v10904_v23, 1  ;;  %v3779_v6 = vsel %vm1795_vm4, %v3776_v12, %v3778_v47  ;;  %v3783_v24 = vsel %vm1795_vm4, %v3780_v45, %v3782_v49  ;;  %v9241_v12 = vld [vmem:[%s12224_s5 + $0x214] ss:$8 sps:$4 sm:$0xff]  }
 0x3d3   :  { %3457 = vmatmul.mubr.bf16.gmra.mrb[244].mxu1 %v3195_v56  ;;  %v9247_v47 = vld [vmem:[%s12224_s5 + $0x234] ss:$8 sps:$4 sm:$0xff]  }
 0x3d4   :  { %3466 = vmatprep.mubr.bf16.mxu1 %v12259_v36  ;;  %v3197_v38 = vsel %vm925_vm0, %v3194_v46, %v3196_v54  ;;  %v3784_v46 = vrot.slane %v10830_v50, 2  ;;  %v9253_v45 = vld [vmem:[%s12224_s5 + $0x254] ss:$8 sps:$4 sm:$0xff]  }
 0x3d6   :  { %v3785_v56 = vsel %vm1795_vm4, %v3782_v49, %v3784_v46  ;;  %v9259_v49 = vld [vmem:[%s12224_s5 + $0x274] ss:$8 sps:$4 sm:$0xff]  }
 0x3db   :  { %3467 = vmatmul.mubr.bf16.gmra.mrb[248].mxu1 %v3197_v38 }
 0x3dc   :  { %3476 = vmatprep.mubr.bf16.mxu1 %v12259_v36 }
 0x3e3   :  { %3477 = vmatmul.mubr.bf16.gmra.mrb[252].mxu1 %v3196_v54  ;;  %v3786_v54 = vrot.slane %v10839_v16, 2 }
 0x3e4   :  { %3597 = vmatprep.mubr.bf16.mxu1 %v12259_v36 }
 0x3e5   :  { %v3787_v38 = vsel %vm1795_vm4, %v3784_v46, %v3786_v54  ;;  %v9257_v46 = vld [vmem:[%s12224_s5 + $0x270] ss:$8 sps:$4 sm:$0xff]  }
 0x3eb   :  { %3598 = vmatmul.mubr.bf16.vlgmr.msra.gmra.mrb[192].mxu1 %v10730_v14 }
 0x3ec   :  { %3901 = vmatpush1.bf16.msra.mxu1 %v9188_v39  ;;  %3607 = vmatprep.mubr.bf16.mxu1 %v12259_v36  ;;  %v3788_v39 = vrot.slane %v10848_v31, 2 }
 0x3ed   :  { %3902 = vmatprep.subr.bf16.mxu1 %v9193_v22 }
 0x3ee   :  { %v3789_v22 = vsel %vm1795_vm4, %v3786_v54, %v3788_v39 }
 0x3f0   :  { %3903 = vmatpush1.bf16.msra.mxu1 %v9191_v55  ;;  %v3790_v55 = vrot.slane %v10857_v57, 2 }
 0x3f1   :  { %3904 = vmatprep.subr.bf16.mxu1 %v9196_v58 }
 0x3f2   :  { %v3791_v58 = vsel %vm1795_vm4, %v3788_v39, %v3790_v55 }
 0x3f3   :  { %3608 = vmatmul.mubr.bf16.gmra.mrb[196].mxu1 %v10736_v9 }
 0x3f4   :  { %3617 = vmatprep.mubr.bf16.mxu1 %v12259_v36  ;;  %3905 = vmatpush1.bf16.msra.mxu1 %v9194_v4  ;;  %v3792_v4 = vrot.slane %v10866_v60, 2 }
 0x3f5   :  { %3906 = vmatprep.subr.bf16.mxu1 %v9199_v18 }
 0x3f6   :  { %v3793_v18 = vsel %vm1795_vm4, %v3790_v55, %v3792_v4 }
 0x3f8   :  { %3907 = vmatpush1.bf16.msra.mxu1 %v9197_v19 }
 0x3f9   :  { %3908 = vmatprep.subr.bf16.mxu1 %v9202_v61  ;;  %v3794_v61 = vrot.slane %v10875_v52, 2 }
 0x3fb   :  { %3618 = vmatmul.mubr.bf16.gmra.mrb[200].mxu1 %v10758_v26 }
 0x3fc   :  { %3627 = vmatprep.mubr.bf16.mxu1 %v12259_v36  ;;  %3909 = vmatpush1.bf16.msra.mxu1 %v9200_v44 }
 0x3fd   :  { %3910 = vmatprep.subr.bf16.mxu1 %v9205_v10 }
 0x400   :  { %3911 = vmatpush1.bf16.msra.mxu1 %v9203_v35 }
 0x401   :  { %3912 = vmatprep.subr.bf16.mxu1 %v9208_v40  ;;  %v3795_v40 = vsel %vm1795_vm4, %v3792_v4, %v3794_v61 }
 0x403   :  { %3628 = vmatmul.mubr.bf16.gmra.mrb[204].mxu1 %v10779_v62 }
 0x404   :  { %3637 = vmatprep.mubr.bf16.mxu1 %v12259_v36  ;;  %3913 = vmatpush1.bf16.msra.mxu1 %v9206_v51  ;;  %v3796_v51 = vrot.slane %v10884_v63, 2 }
 0x405   :  { %3914 = vmatprep.subr.bf16.mxu1 %v9211_v37 }
 0x406   :  { %v3797_v37 = vsel %vm1795_vm4, %v3794_v61, %v3796_v51 }
 0x408   :  { %3915 = vmatpush1.bf16.msra.mxu1 %v9209_v30  ;;  %v3798_v30 = vrot.slane %v10893_v43, 2 }
 0x409   :  { %4298 = vmatprep.subr.bf16.mxu1 %v9214_v0 }
 0x40a   :  { %v3799_v0 = vsel %vm1795_vm4, %v3796_v51, %v3798_v30  ;;  %v3801_v27 = vsel %vm1795_vm4, %v3798_v30, %v3800_v48  ;;  %v4192_v51 = vrot.slane %v10875_v52, 3 }
 0x40b   :  { %3638 = vmatmul.mubr.bf16.gmra.mrb[208].mxu1 %v10800_v29 }
 0x40c   :  { %3647 = vmatprep.mubr.bf16.mxu1 %v12259_v36 }
 0x413   :  { %3648 = vmatmul.mubr.bf16.gmra.mrb[212].mxu1 %v10821_v42 }
 0x414   :  { %3657 = vmatprep.mubr.bf16.mxu1 %v12259_v36 }
 0x41b   :  { %3658 = vmatmul.mubr.bf16.gmra.mrb[216].mxu1 %v10830_v50 }
 0x41c   :  { %3667 = vmatprep.mubr.bf16.mxu1 %v12259_v36 }
 0x423   :  { %3668 = vmatmul.mubr.bf16.gmra.mrb[220].mxu1 %v10839_v16 }
 0x424   :  { %3677 = vmatprep.mubr.bf16.mxu1 %v12259_v36 }
 0x42b   :  { %3678 = vmatmul.mubr.bf16.gmra.mrb[224].mxu1 %v10848_v31 }
 0x42c   :  { %3687 = vmatprep.mubr.bf16.mxu1 %v12259_v36 }
 0x433   :  { %3688 = vmatmul.mubr.bf16.gmra.mrb[228].mxu1 %v10857_v57 }
 0x434   :  { %3697 = vmatprep.mubr.bf16.mxu1 %v12259_v36 }
 0x43b   :  { %3698 = vmatmul.mubr.bf16.gmra.mrb[232].mxu1 %v10866_v60 }
 0x43c   :  { %3707 = vmatprep.mubr.bf16.mxu1 %v12259_v36 }
 0x443   :  { %3708 = vmatmul.mubr.bf16.gmra.mrb[236].mxu1 %v10875_v52 }
 0x444   :  { %3717 = vmatprep.mubr.bf16.mxu1 %v12259_v36 }
 0x44b   :  { %3718 = vmatmul.mubr.bf16.gmra.mrb[240].mxu1 %v10884_v63 }
 0x44c   :  { %3727 = vmatprep.mubr.bf16.mxu1 %v12259_v36 }
 0x453   :  { %3728 = vmatmul.mubr.bf16.gmra.mrb[244].mxu1 %v10893_v43 }
 0x454   :  { %3737 = vmatprep.mubr.bf16.mxu1 %v12259_v36 }
 0x45b   :  { %3738 = vmatmul.mubr.bf16.gmra.mrb[248].mxu1 %v10902_v53 }
 0x45c   :  { %3747 = vmatprep.mubr.bf16.mxu1 %v12259_v36 }
 0x463   :  { %3748 = vmatmul.mubr.bf16.gmra.mrb[0].mxu1 %v10904_v23 }
 0x464   :  { %3932 = vmatprep.mubr.bf16.mxu1 %v12259_v36 }
 0x46b   :  { %3933 = vmatmul.mubr.bf16.vlgmr.msra.gmra.mrb[192].mxu1 %v3775_v2  ;;  %v4172_v2 = vrot.slane %v10736_v9, 3 }
 0x46c   :  { %4299 = vmatpush1.bf16.msra.mxu1 %v9212_v28  ;;  %3942 = vmatprep.mubr.bf16.mxu1 %v12259_v36  ;;  %v3802_v28 = vrot.slane %v10904_v23, 2 }
 0x46d   :  { %4300 = vmatprep.subr.bf16.mxu1 %v9217_v34 }
 0x46e   :  { %v3803_v34 = vsel %vm1795_vm4, %v3800_v48, %v3802_v28 }
 0x470   :  { %4301 = vmatpush1.bf16.msra.mxu1 %v9215_v32  ;;  %v4171_v32 = vrot.slane %v10730_v14, 3 }
 0x471   :  { %4302 = vmatprep.subr.bf16.mxu1 %v9220_v7  ;;  %v9236_v7 = vld [vmem:[%s12224_s5 + $0x200] ss:$8 sps:$4 sm:$0xff]  }
 0x473   :  { %3943 = vmatmul.mubr.bf16.gmra.mrb[196].mxu1 %v3777_v15  ;;  %v9244_v15 = vld [vmem:[%s12224_s5 + $0x224] ss:$8 sps:$4 sm:$0xff]  }
 0x474   :  { %3952 = vmatprep.mubr.bf16.mxu1 %v12259_v36  ;;  %4303 = vmatpush1.bf16.msra.mxu1 %v9218_v5  ;;  %v4173_v5 = vsel %vm4170_vm7, %v4171_v32, %v4172_v2 }
 0x475   :  { %4304 = vmatprep.subr.bf16.mxu1 %v9223_v13  ;;  %v9239_v13 = vld [vmem:[%s12224_s5 + $0x210] ss:$8 sps:$4 sm:$0xff]  }
 0x478   :  { %4305 = vmatpush1.bf16.msra.mxu1 %v9221_v59  ;;  %v4174_v59 = vrot.slane %v10758_v26, 3 }
 0x479   :  { %4306 = vmatprep.subr.bf16.mxu1 %v9226_v8  ;;  %v9242_v8 = vld [vmem:[%s12224_s5 + $0x220] ss:$8 sps:$4 sm:$0xff]  }
 0x47b   :  { %3953 = vmatmul.mubr.bf16.gmra.mrb[200].mxu1 %v3779_v6  ;;  %v9250_v6 = vld [vmem:[%s12224_s5 + $0x244] ss:$8 sps:$4 sm:$0xff]  }
 0x47c   :  { %3962 = vmatprep.mubr.bf16.mxu1 %v12259_v36  ;;  %4307 = vmatpush1.bf16.msra.mxu1 %v9224_v11  ;;  %v4175_v11 = vsel %vm4170_vm7, %v4172_v2, %v4174_v59 }
 0x47d   :  { %4308 = vmatprep.subr.bf16.mxu1 %v9229_v17  ;;  %v9245_v17 = vld [vmem:[%s12224_s5 + $0x230] ss:$8 sps:$4 sm:$0xff]  }
 0x480   :  { %4309 = vmatpush1.bf16.msra.mxu1 %v9227_v41  ;;  %v4176_v41 = vrot.slane %v10779_v62, 3 }
 0x481   :  { %4310 = vmatprep.subr.bf16.mxu1 %v9232_v33  ;;  %v9248_v33 = vld [vmem:[%s12224_s5 + $0x240] ss:$8 sps:$4 sm:$0xff]  }
 0x483   :  { %3963 = vmatmul.mubr.bf16.gmra.mrb[204].mxu1 %v3781_v3  ;;  %v9256_v3 = vld [vmem:[%s12224_s5 + $0x264] ss:$8 sps:$4 sm:$0xff]  }
 0x484   :  { %3972 = vmatprep.mubr.bf16.mxu1 %v12259_v36  ;;  %4311 = vmatpush1.bf16.msra.mxu1 %v9230_v20  ;;  %v4177_v20 = vsel %vm4170_vm7, %v4174_v59, %v4176_v41  ;;  %v9262_v59 = vld [vmem:[%s12225_s7 + $0x10] sm:$0xff]  }
 0x485   :  { %4312 = vmatprep.subr.bf16.mxu1 %v9235_v1  ;;  %v9251_v1 = vld [vmem:[%s12224_s5 + $0x250] ss:$8 sps:$4 sm:$0xff]  }
 0x488   :  { %4313 = vmatpush1.bf16.msra.mxu1 %v9233_v21  ;;  %v4178_v21 = vrot.slane %v10800_v29, 3 }
 0x489   :  { %4696 = vmatprep.subr.bf16.mxu1 %v9238_v25  ;;  %v9254_v25 = vld [vmem:[%s12224_s5 + $0x260] ss:$8 sps:$4 sm:$0xff]  }
 0x48b   :  { %3973 = vmatmul.mubr.bf16.gmra.mrb[208].mxu1 %v3783_v24  ;;  %v4179_v24 = vsel %vm4170_vm7, %v4176_v41, %v4178_v21  ;;  %v4572_v41 = vrot.slane %v10758_v26, 4  ;;  %v4574_v26 = vrot.slane %v10779_v62, 4 }
 0x48c   :  { %3982 = vmatprep.mubr.bf16.mxu1 %v12259_v36 }
 0x493   :  { %3983 = vmatmul.mubr.bf16.gmra.mrb[212].mxu1 %v3785_v56  ;;  %v4180_v56 = vrot.slane %v10821_v42, 3 }
 0x494   :  { %3992 = vmatprep.mubr.bf16.mxu1 %v12259_v36 }
 0x495   :  { %v4181_v54 = vsel %vm4170_vm7, %v4178_v21, %v4180_v56  ;;  %v4578_v21 = vrot.slane %v10821_v42, 4  ;;  %v4584_v42 = vrot.slane %v10848_v31, 4 }
 0x49b   :  { %3993 = vmatmul.mubr.bf16.gmra.mrb[216].mxu1 %v3787_v38  ;;  %v4182_v38 = vrot.slane %v10830_v50, 3 }
 0x49c   :  { %4002 = vmatprep.mubr.bf16.mxu1 %v12259_v36 }
 0x49d   :  { %v4183_v39 = vsel %vm4170_vm7, %v4180_v56, %v4182_v38 }
 0x4a3   :  { %4003 = vmatmul.mubr.bf16.gmra.mrb[220].mxu1 %v3789_v22  ;;  %v4184_v22 = vrot.slane %v10839_v16, 3 }
 0x4a4   :  { %4012 = vmatprep.mubr.bf16.mxu1 %v12259_v36 }
 0x4a5   :  { %v4185_v55 = vsel %vm4170_vm7, %v4182_v38, %v4184_v22 }
 0x4ab   :  { %4013 = vmatmul.mubr.bf16.gmra.mrb[224].mxu1 %v3791_v58  ;;  %v4186_v58 = vrot.slane %v10848_v31, 3 }
 0x4ac   :  { %4022 = vmatprep.mubr.bf16.mxu1 %v12259_v36 }
 0x4ad   :  { %v4187_v4 = vsel %vm4170_vm7, %v4184_v22, %v4186_v58 }
 0x4b3   :  { %4023 = vmatmul.mubr.bf16.gmra.mrb[228].mxu1 %v3793_v18  ;;  %v4188_v18 = vrot.slane %v10857_v57, 3 }
 0x4b4   :  { %4032 = vmatprep.mubr.bf16.mxu1 %v12259_v36 }
 0x4b5   :  { %v4189_v61 = vsel %vm4170_vm7, %v4186_v58, %v4188_v18 }
 0x4b6   :  { %v11072_v19 = vpop.f32.mrb[252].mxu1 }
 0x4b7   :  { %v11075_v44 = vpop.f32.mrb[253].mxu1 }
 0x4b8   :  { %v3482_v10 = vpop.f32.mrb[254].mxu1 }
 0x4b9   :  { %v3483_v35 = vpop.f32.mrb[255].mxu1  ;;  %v4190_v10 = vrot.slane %v10866_v60, 3 }
 0x4bb   :  { %4033 = vmatmul.mubr.bf16.gmra.mrb[232].mxu1 %v3795_v40  ;;  %v4191_v35 = vsel %vm4170_vm7, %v4188_v18, %v4190_v10 }
 0x4bc   :  { %4042 = vmatprep.mubr.bf16.mxu1 %v12259_v36 }
 0x4c3   :  { %4043 = vmatmul.mubr.bf16.gmra.mrb[236].mxu1 %v3797_v37 }
 0x4c4   :  { %4052 = vmatprep.mubr.bf16.mxu1 %v12259_v36 }
 0x4cb   :  { %4053 = vmatmul.mubr.bf16.gmra.mrb[240].mxu1 %v3799_v0 }
 0x4cc   :  { %4062 = vmatprep.mubr.bf16.mxu1 %v12259_v36 }
 0x4d3   :  { %4063 = vmatmul.mubr.bf16.gmra.mrb[244].mxu1 %v3801_v27 }
 0x4d4   :  { %4072 = vmatprep.mubr.bf16.mxu1 %v12259_v36 }
 0x4db   :  { %4073 = vmatmul.mubr.bf16.gmra.mrb[248].mxu1 %v3803_v34  ;;  %v4194_v34 = vrot.slane %v10884_v63, 3 }
 0x4dc   :  { %4082 = vmatprep.mubr.bf16.mxu1 %v12259_v36 }
 0x4dd   :  { %v4195_v2 = vsel %vm4170_vm7, %v4192_v51, %v4194_v34 }
 0x4e3   :  { %4083 = vmatmul.mubr.bf16.gmra.mrb[4].mxu1 %v3802_v28  ;;  %v4193_v28 = vsel %vm4170_vm7, %v4190_v10, %v4192_v51  ;;  %v4594_v10 = vrot.slane %v10893_v43, 4  ;;  %v4598_v51 = vrot.slane %v10904_v23, 4 }
 0x4e4   :  { %4330 = vmatprep.mubr.bf16.mxu1 %v12259_v36 }
 0x4eb   :  { %4331 = vmatmul.mubr.bf16.vlgmr.msra.gmra.mrb[192].mxu1 %v4173_v5  ;;  %v9261_v5 = vld [vmem:[%s12225_s7 + $0x8] sm:$0xff]  }
 0x4ec   :  { %4697 = vmatpush1.bf16.msra.mxu1 %v9236_v7  ;;  %4340 = vmatprep.mubr.bf16.mxu1 %v12259_v36  ;;  %v4198_v7 = vrot.slane %v10902_v53, 3 }
 0x4ed   :  { %4698 = vmatprep.subr.bf16.mxu1 %v9241_v12 }
 0x4f0   :  { %4699 = vmatpush1.bf16.msra.mxu1 %v9239_v13  ;;  %v4200_v13 = vrot.slane %v10904_v23, 3 }
 0x4f1   :  { %4700 = vmatprep.subr.bf16.mxu1 %v9244_v15 }
 0x4f2   :  { %v4201_v15 = vsel %vm4170_vm7, %v4198_v7, %v4200_v13 }
 0x4f3   :  { %4341 = vmatmul.mubr.bf16.gmra.mrb[196].mxu1 %v4175_v11  ;;  %v4569_v11 = vrot.slane %v10730_v14, 4  ;;  %v9266_v14 = vld [vmem:[%s12225_s7 + $0x30] sm:$0xff]  }
 0x4f4   :  { %4350 = vmatprep.mubr.bf16.mxu1 %v12259_v36  ;;  %4701 = vmatpush1.bf16.msra.mxu1 %v9242_v8  ;;  %v9263_v8 = vld [vmem:[%s12225_s7 + $0x18] sm:$0xff]  }
 0x4f5   :  { %4702 = vmatprep.subr.bf16.mxu1 %v9247_v47  ;;  %v4570_v47 = vrot.slane %v10736_v9, 4  ;;  %v9265_v9 = vld [vmem:[%s12225_s7 + $0x28] sm:$0xff]  }
 0x4f8   :  { %4703 = vmatpush1.bf16.msra.mxu1 %v9245_v17  ;;  %v9264_v17 = vld [vmem:[%s12225_s7 + $0x20] sm:$0xff]  }
 0x4f9   :  { %4704 = vmatprep.subr.bf16.mxu1 %v9250_v6  ;;  %v4571_v6 = vsel %vm2497_vm5, %v4569_v11, %v4570_v47 }
 0x4fb   :  { %4351 = vmatmul.mubr.bf16.gmra.mrb[200].mxu1 %v4177_v20  ;;  %v9268_v20 = vld [vmem:[%s12225_s7 + $0x40] sm:$0xff]  }
 0x4fc   :  { %4360 = vmatprep.mubr.bf16.mxu1 %v12259_v36  ;;  %4705 = vmatpush1.bf16.msra.mxu1 %v9248_v33  ;;  %v4573_v33 = vsel %vm2497_vm5, %v4570_v47, %v4572_v41 }
 0x4fd   :  { %4706 = vmatprep.subr.bf16.mxu1 %v9253_v45  ;;  %v9267_v45 = vld [vmem:[%s12225_s7 + $0x38] sm:$0xff]  }
 0x500   :  { %4707 = vmatpush1.bf16.msra.mxu1 %v9251_v1  ;;  %v4575_v1 = vsel %vm2497_vm5, %v4572_v41, %v4574_v26 }
 0x501   :  { %4708 = vmatprep.subr.bf16.mxu1 %v9256_v3  ;;  %v4576_v3 = vrot.slane %v10800_v29, 4  ;;  %v4582_v29 = vrot.slane %v10839_v16, 4  ;;  %v4588_v16 = vrot.slane %v10866_v60, 4  ;;  %v4592_v60 = vrot.slane %v10884_v63, 4 }
 0x502   :  { %v4596_v63 = vrot.slane %v10902_v53, 4 }
 0x503   :  { %4361 = vmatmul.mubr.bf16.gmra.mrb[204].mxu1 %v4179_v24  ;;  %v4577_v62 = vsel %vm2497_vm5, %v4574_v26, %v4576_v3  ;;  %v4585_v56 = vsel %vm2497_vm5, %v4582_v29, %v4584_v42 }
 0x504   :  { %4370 = vmatprep.mubr.bf16.mxu1 %v12259_v36  ;;  %4709 = vmatpush1.bf16.msra.mxu1 %v9254_v25  ;;  %v4579_v25 = vsel %vm2497_vm5, %v4576_v3, %v4578_v21 }
 0x505   :  { %4710 = vmatprep.subr.bf16.mxu1 %v9259_v49  ;;  %v4580_v49 = vrot.slane %v10830_v50, 4  ;;  %v4586_v50 = vrot.slane %v10857_v57, 4 }
 0x507   :  { %v4581_v24 = vsel %vm2497_vm5, %v4578_v21, %v4580_v49  ;;  %v4589_v38 = vsel %vm2497_vm5, %v4586_v50, %v4588_v16 }
 0x508   :  { %4711 = vmatpush1.bf16.msra.mxu1 %v9257_v46  ;;  %v4583_v46 = vsel %vm2497_vm5, %v4580_v49, %v4582_v29 }
 0x50b   :  { %4371 = vmatmul.mubr.bf16.gmra.mrb[208].mxu1 %v4181_v54  ;;  %v4587_v54 = vsel %vm2497_vm5, %v4584_v42, %v4586_v50 }
 0x50c   :  { %4380 = vmatprep.mubr.bf16.mxu1 %v12259_v36 }
 0x513   :  { %4381 = vmatmul.mubr.bf16.gmra.mrb[212].mxu1 %v4183_v39  ;;  %v4590_v39 = vrot.slane %v10875_v52, 4 }
 0x514   :  { %4390 = vmatprep.mubr.bf16.mxu1 %v12259_v36 }
 0x515   :  { %v4591_v18 = vsel %vm2497_vm5, %v4588_v16, %v4590_v39  ;;  %v4593_v52 = vsel %vm2497_vm5, %v4590_v39, %v4592_v60 }
 0x51b   :  { %4391 = vmatmul.mubr.bf16.gmra.mrb[216].mxu1 %v4185_v55 }
 0x51c   :  { %4400 = vmatprep.mubr.bf16.mxu1 %v12259_v36 }
 0x523   :  { %4401 = vmatmul.mubr.bf16.gmra.mrb[220].mxu1 %v4187_v4 }
 0x524   :  { %4410 = vmatprep.mubr.bf16.mxu1 %v12259_v36 }
 0x52b   :  { %4411 = vmatmul.mubr.bf16.gmra.mrb[224].mxu1 %v4189_v61  ;;  %v9269_v61 = vld [vmem:[%s12225_s7 + $0x48] sm:$0xff]  }
 0x52c   :  { %4420 = vmatprep.mubr.bf16.mxu1 %v12259_v36 }
 0x533   :  { %4421 = vmatmul.mubr.bf16.gmra.mrb[228].mxu1 %v4191_v35  ;;  %v4595_v35 = vsel %vm2497_vm5, %v4592_v60, %v4594_v10 }
 0x534   :  { %4430 = vmatprep.mubr.bf16.mxu1 %v12259_v36 }
 0x536   :  { %v3749_v40 = vpop.f32.mrb[0].mxu1 }
 0x537   :  { %v11170_v37 = vadd.f32 %v3749_v40, %v11072_v19  ;;  %v3751_v30 = vpop.f32.mrb[1].mxu1  ;;  %v4196_v19 = vrot.slane %v10893_v43, 3  ;;  %v4597_v40 = vsel %vm2497_vm5, %v4594_v10, %v4596_v63 }
 0x538   :  { %v11173_v0 = vadd.f32 %v3751_v30, %v11075_v44  ;;  %v3753_v48 = vpop.f32.mrb[2].mxu1  ;;  %v9260_v44 = vld [vmem:[%s12225_s7] sm:$0xff]  }
 0x539   :  { %v3754_v27 = vpop.f32.mrb[3].mxu1  ;;  %5247 = vmatpush1.bf16.msra.mxu0 %v9260_v44  ;;  %v4197_v32 = vsel %vm4170_vm7, %v4194_v34, %v4196_v19  ;;  %v4199_v12 = vsel %vm4170_vm7, %v4196_v19, %v4198_v7  ;;  %v12277_v34 = vld [vmem:[#allocation16_spill] sm:$0xff] }
 0x53a   :  { %5248 = vmatprep.subr.bf16.mxu0 %v12259_v36  ;;  %v4949_v27 = vld [vmem:[%s12227_s6] sm:$0x3]  ;;  %v12278_v23 = vsub.s32 0, %v12277_v34  ;;  %v12279_v19 = vsub.s32 1, %v12277_v34 }
 0x53b   :  { %4431 = vmatmul.mubr.bf16.gmra.mrb[232].mxu1 %v4193_v28 }
 0x53c   :  { %4440 = vmatprep.mubr.bf16.mxu1 %v12259_v36  ;;  %v11291_v44 = vrot.slane %v4949_v27, %v12279_v19 }
 0x53d   :  { %5249 = vmatpush1.bf16.msra.mxu0 %v9261_v5 }
 0x53e   :  { %5250 = vmatprep.subr.bf16.mxu0 %v12259_v36 }
 0x541   :  { %5251 = vmatpush1.bf16.msra.mxu0 %v9262_v59 }
 0x542   :  { %5252 = vmatprep.subr.bf16.mxu0 %v12259_v36 }
 0x543   :  { %4441 = vmatmul.mubr.bf16.gmra.mrb[236].mxu1 %v4195_v2  ;;  %v11287_v2 = vrot.slane %v4949_v27, %v12278_v23 }
 0x544   :  { %4450 = vmatprep.mubr.bf16.mxu1 %v12259_v36 }
 0x545   :  { %5253 = vmatpush1.bf16.msra.mxu0 %v9263_v8 }
 0x546   :  { %5254 = vmatprep.subr.bf16.mxu0 %v12259_v36 }
 0x549   :  { %5255 = vmatpush1.bf16.msra.mxu0 %v9264_v17 }
 0x54a   :  { %5256 = vmatprep.subr.bf16.mxu0 %v12259_v36 }
 0x54b   :  { %4451 = vmatmul.mubr.bf16.gmra.mrb[240].mxu1 %v4197_v32 }
 0x54c   :  { %4460 = vmatprep.mubr.bf16.mxu1 %v12259_v36 }
 0x54d   :  { %5257 = vmatpush1.bf16.msra.mxu0 %v9265_v9 }
 0x54e   :  { %5258 = vmatprep.subr.bf16.mxu0 %v12259_v36 }
 0x551   :  { %5259 = vmatpush1.bf16.msra.mxu0 %v9266_v14 }
 0x552   :  { %5260 = vmatprep.subr.bf16.mxu0 %v12259_v36 }
 0x553   :  { %4461 = vmatmul.mubr.bf16.gmra.mrb[244].mxu1 %v4199_v12 }
 0x554   :  { %4470 = vmatprep.mubr.bf16.mxu1 %v12259_v36 }
 0x555   :  { %5261 = vmatpush1.bf16.msra.mxu0 %v9267_v45 }
 0x556   :  { %5262 = vmatprep.subr.bf16.mxu0 %v12259_v36 }
 0x559   :  { %5263 = vmatpush1.bf16.msra.mxu0 %v9268_v20 }
 0x55a   :  { %5264 = vmatprep.subr.bf16.mxu0 %v12259_v36 }
 0x55b   :  { %4471 = vmatmul.mubr.bf16.gmra.mrb[248].mxu1 %v4201_v15 }
 0x55c   :  { %4480 = vmatprep.mubr.bf16.mxu1 %v12259_v36 }
 0x55d   :  { %5265 = vmatpush1.bf16.msra.mxu0 %v9269_v61 }
 0x55e   :  { %5486 = vmatprep.subr.bf16.mxu0 %v12259_v36 }
 0x563   :  { %4481 = vmatmul.mubr.bf16.gmra.mrb[8].mxu1 %v4200_v13 }
 0x564   :  { %4728 = vmatprep.mubr.bf16.mxu1 %v12259_v36 }
 0x56b   :  { %4729 = vmatmul.mubr.bf16.vlgmr.msra.gmra.mrb[192].mxu1 %v4571_v6 }
 0x56c   :  { %4738 = vmatprep.mubr.bf16.mxu1 %v12259_v36 }
 0x573   :  { %4739 = vmatmul.mubr.bf16.gmra.mrb[196].mxu1 %v4573_v33  ;;  %v9270_v33 = vld [vmem:[%s12226_s8] sm:$0xff]  }
 0x574   :  { %4748 = vmatprep.mubr.bf16.mxu1 %v12259_v36 }
 0x57b   :  { %4749 = vmatmul.mubr.bf16.gmra.mrb[200].mxu1 %v4575_v1 }
 0x57c   :  { %4758 = vmatprep.mubr.bf16.mxu1 %v12259_v36 }
 0x583   :  { %4759 = vmatmul.mubr.bf16.gmra.mrb[204].mxu1 %v4577_v62 }
 0x584   :  { %4768 = vmatprep.mubr.bf16.mxu1 %v12259_v36 }
 0x58b   :  { %4769 = vmatmul.mubr.bf16.gmra.mrb[208].mxu1 %v4579_v25  ;;  %v9271_v25 = vld [vmem:[%s12226_s8 + $0x8] sm:$0xff]  }
 0x58c   :  { %4778 = vmatprep.mubr.bf16.mxu1 %v12259_v36 }
 0x593   :  { %4779 = vmatmul.mubr.bf16.gmra.mrb[212].mxu1 %v4581_v24 }
 0x594   :  { %4788 = vmatprep.mubr.bf16.mxu1 %v12259_v36 }
 0x59b   :  { %4789 = vmatmul.mubr.bf16.gmra.mrb[216].mxu1 %v4583_v46 }
 0x59c   :  { %4798 = vmatprep.mubr.bf16.mxu1 %v12259_v36 }
 0x5a3   :  { %4799 = vmatmul.mubr.bf16.gmra.mrb[220].mxu1 %v4585_v56 }
 0x5a4   :  { %4808 = vmatprep.mubr.bf16.mxu1 %v12259_v36 }
 0x5ab   :  { %4809 = vmatmul.mubr.bf16.gmra.mrb[224].mxu1 %v4587_v54  ;;  %v9272_v54 = vld [vmem:[%s12226_s8 + $0x10] sm:$0xff]  }
 0x5ac   :  { %4818 = vmatprep.mubr.bf16.mxu1 %v12259_v36 }
 0x5b3   :  { %4819 = vmatmul.mubr.bf16.gmra.mrb[228].mxu1 %v4589_v38 }
 0x5b4   :  { %4828 = vmatprep.mubr.bf16.mxu1 %v12259_v36 }
 0x5b6   :  { %v4084_v31 = vpop.f32.mrb[4].mxu1 }
 0x5b7   :  { %v4151_v22 = vadd.f32 %v4084_v31, %v11170_v37  ;;  %v4086_v55 = vpop.f32.mrb[5].mxu1  ;;  %v4599_v37 = vsel %vm2497_vm5, %v4596_v63, %v4598_v51  ;;  %v9274_v63 = vld [vmem:[%s12226_s8 + $0x20] sm:$0xff]  }
 0x5b8   :  { %v4152_v57 = vadd.f32 %v4086_v55, %v11173_v0  ;;  %v4088_v58 = vpop.f32.mrb[6].mxu1 }
 0x5b9   :  { %v4089_v4 = vpop.f32.mrb[7].mxu1  ;;  %v9273_v58 = vld [vmem:[%s12226_s8 + $0x18] sm:$0xff]  }
 0x5bb   :  { %4829 = vmatmul.mubr.bf16.gmra.mrb[232].mxu1 %v4591_v18 }
 0x5bc   :  { %4838 = vmatprep.mubr.bf16.mxu1 %v12259_v36 }
 0x5c3   :  { %4839 = vmatmul.mubr.bf16.gmra.mrb[236].mxu1 %v4593_v52 }
 0x5c4   :  { %4848 = vmatprep.mubr.bf16.mxu1 %v12259_v36 }
 0x5cb   :  { %4849 = vmatmul.mubr.bf16.gmra.mrb[240].mxu1 %v4595_v35 }
 0x5cc   :  { %4858 = vmatprep.mubr.bf16.mxu1 %v12259_v36 }
 0x5d3   :  { %4859 = vmatmul.mubr.bf16.gmra.mrb[244].mxu1 %v4597_v40 }
 0x5d4   :  { %4868 = vmatprep.mubr.bf16.mxu1 %v12259_v36 }
 0x5db   :  { %4869 = vmatmul.mubr.bf16.gmra.mrb[248].mxu1 %v4599_v37 }
 0x5dc   :  { %4878 = vmatprep.mubr.bf16.mxu1 %v12259_v36 }
 0x5e3   :  { %4879 = vmatmul.mubr.bf16.gmra.mrb[12].mxu1 %v4598_v51 }
 0x636   :  { %v4482_v43 = vpop.f32.mrb[8].mxu1 }
 0x637   :  { %v11278_v30 = vadd.f32 %v4482_v43, %v4151_v22  ;;  %v4484_v0 = vpop.f32.mrb[9].mxu1 }
 0x638   :  { %v11280_v48 = vadd.f32 %v4484_v0, %v4152_v57  ;;  %v4486_v53 = vpop.f32.mrb[10].mxu1 }
 0x639   :  { %v4487_v28 = vpop.f32.mrb[11].mxu1 }
 0x63a   :  { %v9275_v28 = vld [vmem:[%s12226_s8 + $0x28] sm:$0xff]  }
 0x63e   :  { %v4730_v32 = vpop.f32.mrb[192].mxu1 }
 0x63f   :  { %v4961_v7 = vadd.f32 %v11287_v2, %v4730_v32  ;;  %v4732_v12 = vpop.f32.mrb[193].mxu1 }
 0x640   :  { %v4962_v5 = vadd.f32 %v11291_v44, %v4732_v12  ;;  %v4734_v13 = vpop.f32.mrb[194].mxu1 }
 0x641   :  { %v4963_v15 = vadd.f32 %v11287_v2, %v4734_v13  ;;  %v4736_v59 = vpop.f32.mrb[195].mxu1  ;;  %v5023_v47 = vmax.f32 %v4961_v7, 0.0  ;;  %v9276_v13 = vld [vmem:[%s12226_s8 + $0x30] sm:$0xff]  }
 0x642   :  { %v4964_v8 = vadd.f32 %v11291_v44, %v4736_v59  ;;  %v5024_v17 = vmax.f32 %v4962_v5, 0.0 }
 0x643   :  { %v5025_v11 = vmax.f32 %v4963_v15, 0.0 }
 0x644   :  { %v5026_v6 = vmax.f32 %v4964_v8, 0.0 }
 0x645   :  { %v11297_v9 = vpack.c.bf16 %v5025_v11, %v5023_v47 }
 0x646   :  { %v11299_v41 = vpack.c.bf16 %v5026_v6, %v5024_v17  ;;  %v4740_v14 = vpop.f32.mrb[196].mxu1 }
 0x647   :  { %v4965_v45 = vadd.f32 %v11287_v2, %v4740_v14  ;;  %v4742_v26 = vpop.f32.mrb[197].mxu1  ;;  %v9277_v14 = vld [vmem:[%s12226_s8 + $0x38] sm:$0xff]  }
 0x648   :  { %v4966_v20 = vadd.f32 %v11291_v44, %v4742_v26  ;;  %v4744_v1 = vpop.f32.mrb[198].mxu1  ;;  %7663 = vmatprep.mubr.msk.bf16.mxu0 %vm5197_vm8, %v11299_v41 }
 0x649   :  { %v4967_v3 = vadd.f32 %v11287_v2, %v4744_v1  ;;  %v4746_v62 = vpop.f32.mrb[199].mxu1  ;;  %5279 = vmatmul.mubr.bf16.vlgmr.msra.gmra.mrb[64].mxu0 %v11297_v9  ;;  %v5027_v49 = vmax.f32 %v4965_v45, 0.0 }
 0x64a   :  { %v4968_v21 = vadd.f32 %v11291_v44, %v4746_v62  ;;  %5487 = vmatpush1.bf16.msra.mxu0 %v9270_v33  ;;  %v5028_v29 = vmax.f32 %v4966_v20, 0.0 }
 0x64b   :  { %v5029_v24 = vmax.f32 %v4967_v3, 0.0  ;;  %5488 = vmatprep.subr.bf16.mxu0 %v12259_v36 }
 0x64c   :  { %v5030_v46 = vmax.f32 %v4968_v21, 0.0  ;;  %v9278_v21 = vld [vmem:[%s12226_s8 + $0x40] sm:$0xff]  }
 0x64d   :  { %v11315_v42 = vpack.c.bf16 %v5029_v24, %v5027_v49 }
 0x64e   :  { %v11317_v56 = vpack.c.bf16 %v5030_v46, %v5028_v29  ;;  %v4750_v50 = vpop.f32.mrb[200].mxu1  ;;  %5489 = vmatpush1.bf16.msra.mxu0 %v9271_v25 }
 0x64f   :  { %v4969_v16 = vadd.f32 %v11287_v2, %v4750_v50  ;;  %v4752_v38 = vpop.f32.mrb[201].mxu1  ;;  %5490 = vmatprep.subr.bf16.mxu0 %v12259_v36 }
 0x650   :  { %v4970_v31 = vadd.f32 %v11291_v44, %v4752_v38  ;;  %v4754_v39 = vpop.f32.mrb[202].mxu1  ;;  %7664 = vmatprep.mubr.msk.bf16.mxu0 %vm5197_vm8, %v11317_v56 }
 0x651   :  { %v4971_v22 = vadd.f32 %v11287_v2, %v4754_v39  ;;  %v4756_v55 = vpop.f32.mrb[203].mxu1  ;;  %5287 = vmatmul.mubr.bf16.gmra.mrb[68].mxu0 %v11315_v42  ;;  %v5031_v4 = vmax.f32 %v4969_v16, 0.0  ;;  %v9279_v16 = vld [vmem:[%s12226_s8 + $0x48] sm:$0xff]  }
 0x652   :  { %v4972_v57 = vadd.f32 %v11291_v44, %v4756_v55  ;;  %5491 = vmatpush1.bf16.msra.mxu0 %v9272_v54  ;;  %v5032_v60 = vmax.f32 %v4970_v31, 0.0 }
 0x653   :  { %v5033_v18 = vmax.f32 %v4971_v22, 0.0  ;;  %5492 = vmatprep.subr.bf16.mxu0 %v12259_v36 }
 0x654   :  { %v5034_v61 = vmax.f32 %v4972_v57, 0.0 }
 0x655   :  { %v11334_v52 = vpack.c.bf16 %v5033_v18, %v5031_v4 }
 0x656   :  { %v11336_v10 = vpack.c.bf16 %v5034_v61, %v5032_v60  ;;  %v4760_v35 = vpop.f32.mrb[204].mxu1  ;;  %5493 = vmatpush1.bf16.msra.mxu0 %v9273_v58 }
 0x657   :  { %v4973_v40 = vadd.f32 %v11287_v2, %v4760_v35  ;;  %v4762_v51 = vpop.f32.mrb[205].mxu1  ;;  %5494 = vmatprep.subr.bf16.mxu0 %v12259_v36 }
 0x658   :  { %v4974_v37 = vadd.f32 %v11291_v44, %v4762_v51  ;;  %v4764_v43 = vpop.f32.mrb[206].mxu1  ;;  %7665 = vmatprep.mubr.msk.bf16.mxu0 %vm5197_vm8, %v11336_v10 }
 0x659   :  { %v4975_v0 = vadd.f32 %v11287_v2, %v4764_v43  ;;  %v4766_v53 = vpop.f32.mrb[207].mxu1  ;;  %5295 = vmatmul.mubr.bf16.gmra.mrb[72].mxu0 %v11334_v52  ;;  %v5035_v34 = vmax.f32 %v4973_v40, 0.0 }
 0x65a   :  { %v4976_v27 = vadd.f32 %v11291_v44, %v4766_v53  ;;  %5495 = vmatpush1.bf16.msra.mxu0 %v9274_v63  ;;  %v5036_v19 = vmax.f32 %v4974_v37, 0.0 }
 0x65b   :  { %v5037_v23 = vmax.f32 %v4975_v0, 0.0  ;;  %5496 = vmatprep.subr.bf16.mxu0 %v12259_v36 }
 0x65c   :  { %v5038_v32 = vmax.f32 %v4976_v27, 0.0 }
 0x65d   :  { %v11353_v7 = vpack.c.bf16 %v5037_v23, %v5035_v34 }
 0x65e   :  { %v11355_v12 = vpack.c.bf16 %v5038_v32, %v5036_v19  ;;  %v4770_v5 = vpop.f32.mrb[208].mxu1  ;;  %5497 = vmatpush1.bf16.msra.mxu0 %v9275_v28 }
 0x65f   :  { %v4977_v15 = vadd.f32 %v11287_v2, %v4770_v5  ;;  %v4772_v59 = vpop.f32.mrb[209].mxu1  ;;  %5498 = vmatprep.subr.bf16.mxu0 %v12259_v36 }
 0x660   :  { %v4978_v8 = vadd.f32 %v11291_v44, %v4772_v59  ;;  %v4774_v47 = vpop.f32.mrb[210].mxu1  ;;  %7666 = vmatprep.mubr.msk.bf16.mxu0 %vm5197_vm8, %v11355_v12 }
 0x661   :  { %v4979_v11 = vadd.f32 %v11287_v2, %v4774_v47  ;;  %v4776_v17 = vpop.f32.mrb[211].mxu1  ;;  %5303 = vmatmul.mubr.bf16.gmra.mrb[76].mxu0 %v11353_v7  ;;  %v5039_v33 = vmax.f32 %v4977_v15, 0.0 }
 0x662   :  { %v4980_v6 = vadd.f32 %v11291_v44, %v4776_v17  ;;  %5499 = vmatpush1.bf16.msra.mxu0 %v9276_v13  ;;  %v5040_v26 = vmax.f32 %v4978_v8, 0.0 }
 0x663   :  { %v5041_v45 = vmax.f32 %v4979_v11, 0.0  ;;  %5500 = vmatprep.subr.bf16.mxu0 %v12259_v36 }
 0x664   :  { %v5042_v20 = vmax.f32 %v4980_v6, 0.0 }
 0x665   :  { %v11372_v1 = vpack.c.bf16 %v5041_v45, %v5039_v33 }
 0x666   :  { %v11374_v3 = vpack.c.bf16 %v5042_v20, %v5040_v26  ;;  %v4780_v62 = vpop.f32.mrb[212].mxu1  ;;  %5501 = vmatpush1.bf16.msra.mxu0 %v9277_v14 }
 0x667   :  { %v4981_v25 = vadd.f32 %v11287_v2, %v4780_v62  ;;  %v4782_v49 = vpop.f32.mrb[213].mxu1  ;;  %5502 = vmatprep.subr.bf16.mxu0 %v12259_v36 }
 0x668   :  { %v4982_v24 = vadd.f32 %v11291_v44, %v4782_v49  ;;  %v4784_v29 = vpop.f32.mrb[214].mxu1  ;;  %7667 = vmatprep.mubr.msk.bf16.mxu0 %vm5197_vm8, %v11374_v3 }
 0x669   :  { %v4983_v46 = vadd.f32 %v11287_v2, %v4784_v29  ;;  %v4786_v50 = vpop.f32.mrb[215].mxu1  ;;  %5311 = vmatmul.mubr.bf16.gmra.mrb[80].mxu0 %v11372_v1  ;;  %v5043_v38 = vmax.f32 %v4981_v25, 0.0 }
 0x66a   :  { %v4984_v54 = vadd.f32 %v11291_v44, %v4786_v50  ;;  %5503 = vmatpush1.bf16.msra.mxu0 %v9278_v21  ;;  %v5044_v39 = vmax.f32 %v4982_v24, 0.0 }
 0x66b   :  { %v5045_v31 = vmax.f32 %v4983_v46, 0.0  ;;  %5504 = vmatprep.subr.bf16.mxu0 %v12259_v36 }
 0x66c   :  { %v5046_v22 = vmax.f32 %v4984_v54, 0.0 }
 0x66d   :  { %v11391_v55 = vpack.c.bf16 %v5045_v31, %v5043_v38 }
 0x66e   :  { %v11393_v57 = vpack.c.bf16 %v5046_v22, %v5044_v39  ;;  %v4790_v58 = vpop.f32.mrb[216].mxu1  ;;  %5505 = vmatpush1.bf16.msra.mxu0 %v9279_v16 }
 0x66f   :  { %v4985_v4 = vadd.f32 %v11287_v2, %v4790_v58  ;;  %v4792_v18 = vpop.f32.mrb[217].mxu1 }
 0x670   :  { %v4986_v60 = vadd.f32 %v11291_v44, %v4792_v18  ;;  %v4794_v61 = vpop.f32.mrb[218].mxu1  ;;  %7668 = vmatprep.mubr.msk.bf16.mxu0 %vm5197_vm8, %v11393_v57 }
 0x671   :  { %v4987_v35 = vadd.f32 %v11287_v2, %v4794_v61  ;;  %v4796_v36 = vpop.f32.mrb[219].mxu1  ;;  %5319 = vmatmul.mubr.bf16.gmra.mrb[84].mxu0 %v11391_v55  ;;  %v5047_v40 = vmax.f32 %v4985_v4, 0.0 }
 0x672   :  { %v4988_v63 = vadd.f32 %v11291_v44, %v4796_v36  ;;  %v5048_v37 = vmax.f32 %v4986_v60, 0.0 }
 0x673   :  { %v5049_v51 = vmax.f32 %v4987_v35, 0.0 }
 0x674   :  { %v5050_v43 = vmax.f32 %v4988_v63, 0.0 }
 0x675   :  { %v11402_v0 = vpack.c.bf16 %v5049_v51, %v5047_v40 }
 0x676   :  { %v11404_v53 = vpack.c.bf16 %v5050_v43, %v5048_v37  ;;  %v4800_v27 = vpop.f32.mrb[220].mxu1 }
 0x677   :  { %v4989_v28 = vadd.f32 %v11287_v2, %v4800_v27  ;;  %v4802_v34 = vpop.f32.mrb[221].mxu1 }
 0x678   :  { %v4990_v23 = vadd.f32 %v11291_v44, %v4802_v34  ;;  %v4804_v19 = vpop.f32.mrb[222].mxu1  ;;  %7669 = vmatprep.mubr.msk.bf16.mxu0 %vm5197_vm8, %v11404_v53 }
 0x679   :  { %v4991_v32 = vadd.f32 %v11287_v2, %v4804_v19  ;;  %v4806_v5 = vpop.f32.mrb[223].mxu1  ;;  %5327 = vmatmul.mubr.bf16.gmra.mrb[88].mxu0 %v11402_v0  ;;  %v5051_v15 = vmax.f32 %v4989_v28, 0.0 }
 0x67a   :  { %v4992_v13 = vadd.f32 %v11291_v44, %v4806_v5  ;;  %v5052_v8 = vmax.f32 %v4990_v23, 0.0 }
 0x67b   :  { %v5053_v59 = vmax.f32 %v4991_v32, 0.0 }
 0x67c   :  { %v5054_v47 = vmax.f32 %v4992_v13, 0.0 }
 0x67d   :  { %v11413_v11 = vpack.c.bf16 %v5053_v59, %v5051_v15 }
 0x67e   :  { %v11415_v17 = vpack.c.bf16 %v5054_v47, %v5052_v8  ;;  %v4810_v6 = vpop.f32.mrb[224].mxu1 }
 0x67f   :  { %v4993_v14 = vadd.f32 %v11287_v2, %v4810_v6  ;;  %v4812_v33 = vpop.f32.mrb[225].mxu1 }
 0x680   :  { %v4994_v45 = vadd.f32 %v11291_v44, %v4812_v33  ;;  %v4814_v26 = vpop.f32.mrb[226].mxu1  ;;  %7670 = vmatprep.mubr.msk.bf16.mxu0 %vm5197_vm8, %v11415_v17 }
 0x681   :  { %v4995_v20 = vadd.f32 %v11287_v2, %v4814_v26  ;;  %v4816_v62 = vpop.f32.mrb[227].mxu1  ;;  %5335 = vmatmul.mubr.bf16.gmra.mrb[92].mxu0 %v11413_v11  ;;  %v5055_v25 = vmax.f32 %v4993_v14, 0.0 }
 0x682   :  { %v4996_v21 = vadd.f32 %v11291_v44, %v4816_v62  ;;  %v5056_v24 = vmax.f32 %v4994_v45, 0.0 }
 0x683   :  { %v5057_v49 = vmax.f32 %v4995_v20, 0.0 }
 0x684   :  { %v5058_v29 = vmax.f32 %v4996_v21, 0.0 }
 0x685   :  { %v11424_v46 = vpack.c.bf16 %v5057_v49, %v5055_v25 }
 0x686   :  { %v11426_v50 = vpack.c.bf16 %v5058_v29, %v5056_v24  ;;  %v4820_v54 = vpop.f32.mrb[228].mxu1 }
 0x687   :  { %v4997_v16 = vadd.f32 %v11287_v2, %v4820_v54  ;;  %v4822_v38 = vpop.f32.mrb[229].mxu1 }
 0x688   :  { %v4998_v31 = vadd.f32 %v11291_v44, %v4822_v38  ;;  %v4824_v39 = vpop.f32.mrb[230].mxu1  ;;  %7671 = vmatprep.mubr.msk.bf16.mxu0 %vm5197_vm8, %v11426_v50 }
 0x689   :  { %v4999_v22 = vadd.f32 %v11287_v2, %v4824_v39  ;;  %v4826_v58 = vpop.f32.mrb[231].mxu1  ;;  %5343 = vmatmul.mubr.bf16.gmra.mrb[96].mxu0 %v11424_v46  ;;  %v5059_v18 = vmax.f32 %v4997_v16, 0.0 }
 0x68a   :  { %v5000_v4 = vadd.f32 %v11291_v44, %v4826_v58  ;;  %v5060_v61 = vmax.f32 %v4998_v31, 0.0 }
 0x68b   :  { %v5061_v60 = vmax.f32 %v4999_v22, 0.0 }
 0x68c   :  { %v5062_v35 = vmax.f32 %v5000_v4, 0.0 }
 0x68d   :  { %v11435_v36 = vpack.c.bf16 %v5061_v60, %v5059_v18 }
 0x68e   :  { %v11437_v63 = vpack.c.bf16 %v5062_v35, %v5060_v61  ;;  %v4830_v40 = vpop.f32.mrb[232].mxu1 }
 0x68f   :  { %v5001_v51 = vadd.f32 %v11287_v2, %v4830_v40  ;;  %v4832_v37 = vpop.f32.mrb[233].mxu1 }
 0x690   :  { %v5002_v43 = vadd.f32 %v11291_v44, %v4832_v37  ;;  %v4834_v27 = vpop.f32.mrb[234].mxu1  ;;  %7672 = vmatprep.mubr.msk.bf16.mxu0 %vm5197_vm8, %v11437_v63 }
 0x691   :  { %v5003_v28 = vadd.f32 %v11287_v2, %v4834_v27  ;;  %v4836_v34 = vpop.f32.mrb[235].mxu1  ;;  %5351 = vmatmul.mubr.bf16.gmra.mrb[100].mxu0 %v11435_v36  ;;  %v5063_v19 = vmax.f32 %v5001_v51, 0.0 }
 0x692   :  { %v5004_v23 = vadd.f32 %v11291_v44, %v4836_v34  ;;  %v5064_v5 = vmax.f32 %v5002_v43, 0.0 }
 0x693   :  { %v5065_v32 = vmax.f32 %v5003_v28, 0.0 }
 0x694   :  { %v5066_v13 = vmax.f32 %v5004_v23, 0.0 }
 0x695   :  { %v11446_v15 = vpack.c.bf16 %v5065_v32, %v5063_v19 }
 0x696   :  { %v11448_v59 = vpack.c.bf16 %v5066_v13, %v5064_v5  ;;  %v4840_v8 = vpop.f32.mrb[236].mxu1 }
 0x697   :  { %v5005_v47 = vadd.f32 %v11287_v2, %v4840_v8  ;;  %v4842_v6 = vpop.f32.mrb[237].mxu1 }
 0x698   :  { %v5006_v14 = vadd.f32 %v11291_v44, %v4842_v6  ;;  %v4844_v33 = vpop.f32.mrb[238].mxu1  ;;  %7673 = vmatprep.mubr.msk.bf16.mxu0 %vm5197_vm8, %v11448_v59 }
 0x699   :  { %v5007_v45 = vadd.f32 %v11287_v2, %v4844_v33  ;;  %v4846_v26 = vpop.f32.mrb[239].mxu1  ;;  %5359 = vmatmul.mubr.bf16.gmra.mrb[104].mxu0 %v11446_v15  ;;  %v5067_v62 = vmax.f32 %v5005_v47, 0.0 }
 0x69a   :  { %v5008_v20 = vadd.f32 %v11291_v44, %v4846_v26  ;;  %v5068_v25 = vmax.f32 %v5006_v14, 0.0 }
 0x69b   :  { %v5069_v21 = vmax.f32 %v5007_v45, 0.0 }
 0x69c   :  { %v5070_v49 = vmax.f32 %v5008_v20, 0.0 }
 0x69d   :  { %v11457_v24 = vpack.c.bf16 %v5069_v21, %v5067_v62 }
 0x69e   :  { %v11459_v29 = vpack.c.bf16 %v5070_v49, %v5068_v25  ;;  %v4850_v54 = vpop.f32.mrb[240].mxu1 }
 0x69f   :  { %v5009_v16 = vadd.f32 %v11287_v2, %v4850_v54  ;;  %v4852_v38 = vpop.f32.mrb[241].mxu1 }
 0x6a0   :  { %v5010_v31 = vadd.f32 %v11291_v44, %v4852_v38  ;;  %v4854_v39 = vpop.f32.mrb[242].mxu1  ;;  %7674 = vmatprep.mubr.msk.bf16.mxu0 %vm5197_vm8, %v11459_v29 }
 0x6a1   :  { %v5011_v22 = vadd.f32 %v11287_v2, %v4854_v39  ;;  %v4856_v58 = vpop.f32.mrb[243].mxu1  ;;  %5367 = vmatmul.mubr.bf16.gmra.mrb[108].mxu0 %v11457_v24  ;;  %v5071_v18 = vmax.f32 %v5009_v16, 0.0 }
 0x6a2   :  { %v5012_v4 = vadd.f32 %v11291_v44, %v4856_v58  ;;  %v5072_v61 = vmax.f32 %v5010_v31, 0.0 }
 0x6a3   :  { %v5073_v60 = vmax.f32 %v5011_v22, 0.0 }
 0x6a4   :  { %v5074_v35 = vmax.f32 %v5012_v4, 0.0 }
 0x6a5   :  { %v11468_v40 = vpack.c.bf16 %v5073_v60, %v5071_v18 }
 0x6a6   :  { %v11470_v51 = vpack.c.bf16 %v5074_v35, %v5072_v61  ;;  %v4860_v37 = vpop.f32.mrb[244].mxu1 }
 0x6a7   :  { %v5013_v43 = vadd.f32 %v11287_v2, %v4860_v37  ;;  %v4862_v27 = vpop.f32.mrb[245].mxu1 }
 0x6a8   :  { %v5014_v28 = vadd.f32 %v11291_v44, %v4862_v27  ;;  %v4864_v34 = vpop.f32.mrb[246].mxu1  ;;  %7675 = vmatprep.mubr.msk.bf16.mxu0 %vm5197_vm8, %v11470_v51  ;;  %v9337_v27 = vmov 0.0  }
 0x6a9   :  { %v5015_v23 = vadd.f32 %v11287_v2, %v4864_v34  ;;  %v4866_v19 = vpop.f32.mrb[247].mxu1  ;;  %5375 = vmatmul.mubr.bf16.gmra.mrb[112].mxu0 %v11468_v40  ;;  %v5075_v5 = vmax.f32 %v5013_v43, 0.0  ;;  %7961 = vmatprep.subr.bf16.mxu0 %v9337_v27 }
 0x6aa   :  { %v5016_v32 = vadd.f32 %v11291_v44, %v4866_v19  ;;  %v5076_v8 = vmax.f32 %v5014_v28, 0.0  ;;  %8341 = vmatprep.subr.bf16.mxu1 %v9337_v27  ;;  %8357 = vmatprep.mubr.msk.bf16.mxu1 %vm9338_vm9, %v9337_v27 }
 0x6ab   :  { %v5077_v13 = vmax.f32 %v5015_v23, 0.0 }
 0x6ac   :  { %v5078_v47 = vmax.f32 %v5016_v32, 0.0 }
 0x6ad   :  { %v11479_v6 = vpack.c.bf16 %v5077_v13, %v5075_v5 }
 0x6ae   :  { %v11481_v14 = vpack.c.bf16 %v5078_v47, %v5076_v8  ;;  %v4870_v33 = vpop.f32.mrb[248].mxu1 }
 0x6af   :  { %v5017_v45 = vadd.f32 %v11287_v2, %v4870_v33  ;;  %v4872_v26 = vpop.f32.mrb[249].mxu1 }
 0x6b0   :  { %v5018_v20 = vadd.f32 %v11291_v44, %v4872_v26  ;;  %v4874_v62 = vpop.f32.mrb[250].mxu1  ;;  %7676 = vmatprep.mubr.msk.bf16.mxu0 %vm5197_vm8, %v11481_v14 }
 0x6b1   :  { %v5019_v21 = vadd.f32 %v11287_v2, %v4874_v62  ;;  %v4876_v25 = vpop.f32.mrb[251].mxu1  ;;  %5383 = vmatmul.mubr.bf16.gmra.mrb[116].mxu0 %v11479_v6  ;;  %v5079_v54 = vmax.f32 %v5017_v45, 0.0 }
 0x6b2   :  { %v5020_v49 = vadd.f32 %v11291_v44, %v4876_v25  ;;  %v5080_v38 = vmax.f32 %v5018_v20, 0.0 }
 0x6b3   :  { %v5081_v16 = vmax.f32 %v5019_v21, 0.0 }
 0x6b4   :  { %v5082_v31 = vmax.f32 %v5020_v49, 0.0 }
 0x6b5   :  { %v11490_v39 = vpack.c.bf16 %v5081_v16, %v5079_v54 }
 0x6b6   :  { %v11492_v22 = vpack.c.bf16 %v5082_v31, %v5080_v38  ;;  %v4880_v58 = vpop.f32.mrb[12].mxu1 }
 0x6b7   :  { %v4947_v4 = vadd.f32 %v4880_v58, %v11278_v30  ;;  %v4882_v18 = vpop.f32.mrb[13].mxu1 }
 0x6b8   :  { %v4948_v60 = vadd.f32 %v4882_v18, %v11280_v48  ;;  %v4884_v61 = vpop.f32.mrb[14].mxu1  ;;  %7677 = vmatprep.mubr.msk.bf16.mxu0 %vm5197_vm8, %v11492_v22 }
 0x6b9   :  { %v5021_v35 = vadd.f32 %v11287_v2, %v4947_v4  ;;  %v4885_v37 = vpop.f32.mrb[15].mxu1  ;;  %5391 = vmatmul.mubr.bf16.gmra.mrb[120].mxu0 %v11490_v39  ;;  %v9280_v2 = vld [vmem:[%s12228_s9 + $0x40] sm:$0xff]  }
 0x6ba   :  { %v5022_v43 = vadd.f32 %v11291_v44, %v4948_v60  ;;  %v9281_v44 = vld [vmem:[%s12228_s9 + $0x48] sm:$0xff]  }
 0x6bb   :  { %v5083_v30 = vmax.f32 %v5021_v35, 0.0 }
 0x6bc   :  { %v5084_v28 = vmax.f32 %v5022_v43, 0.0 }
 0x6bd   :  { %v11505_v48 = vpack.c.bf16 %v5083_v30, %v5083_v30 }
 0x6be   :  { %v11503_v34 = vpack.c.bf16 %v5084_v28, %v5084_v28 }
 0x6c0   :  { %7678 = vmatprep.mubr.msk.bf16.mxu0 %vm5197_vm8, %v11503_v34 }
 0x6c1   :  { %5399 = vmatmul.mubr.bf16.gmra.mrb[124].mxu0 %v11505_v48 }
 0x6c2   :  { %7689 = vmatprep.mubr.msk.bf16.mxu0 %vm5197_vm8, %v11299_v41  ;;  %v9282_v41 = vld [vmem:[%s12228_s9 + $0x50] sm:$0xff]  }
 0x6c9   :  { %5519 = vmatmul.mubr.bf16.vlgmr.msra.gmra.mrb[128].mxu0 %v11297_v9  ;;  %v9283_v9 = vld [vmem:[%s12228_s9 + $0x58] sm:$0xff]  }
 0x6ca   :  { %7690 = vmatprep.mubr.msk.bf16.mxu0 %vm5197_vm8, %v11317_v56  ;;  %7962 = vmatpush3.bf16.msra.mxu0 %v9280_v2  ;;  %v9285_v56 = vld [vmem:[%s12228_s9 + $0x68] sm:$0xff]  }
 0x6cb   :  { %7963 = vmatprep.subr.bf16.mxu0 %v9337_v27 }
 0x6ce   :  { %7964 = vmatpush3.bf16.msra.mxu0 %v9281_v44 }
 0x6cf   :  { %7965 = vmatprep.subr.bf16.mxu0 %v9337_v27 }
 0x6d1   :  { %5527 = vmatmul.mubr.bf16.gmra.mrb[132].mxu0 %v11315_v42  ;;  %v9284_v42 = vld [vmem:[%s12228_s9 + $0x60] sm:$0xff]  }
 0x6d2   :  { %7691 = vmatprep.mubr.msk.bf16.mxu0 %vm5197_vm8, %v11336_v10  ;;  %7966 = vmatpush3.bf16.msra.mxu0 %v9282_v41 }
 0x6d3   :  { %7967 = vmatprep.subr.bf16.mxu0 %v9337_v27 }
 0x6d6   :  { %7968 = vmatpush3.bf16.msra.mxu0 %v9283_v9 }
 0x6d7   :  { %7969 = vmatprep.subr.bf16.mxu0 %v9337_v27 }
 0x6d9   :  { %5535 = vmatmul.mubr.bf16.gmra.mrb[136].mxu0 %v11334_v52  ;;  %v9286_v52 = vld [vmem:[%s12228_s9 + $0x70] sm:$0xff]  }
 0x6da   :  { %7692 = vmatprep.mubr.msk.bf16.mxu0 %vm5197_vm8, %v11355_v12  ;;  %7970 = vmatpush3.bf16.msra.mxu0 %v9284_v42 }
 0x6db   :  { %7971 = vmatprep.subr.bf16.mxu0 %v9337_v27 }
 0x6de   :  { %7972 = vmatpush3.bf16.msra.mxu0 %v9285_v56 }
 0x6df   :  { %7973 = vmatprep.subr.bf16.mxu0 %v9337_v27 }
 0x6e1   :  { %5543 = vmatmul.mubr.bf16.gmra.mrb[140].mxu0 %v11353_v7 }
 0x6e2   :  { %7693 = vmatprep.mubr.msk.bf16.mxu0 %vm5197_vm8, %v11374_v3  ;;  %7974 = vmatpush3.bf16.msra.mxu0 %v9286_v52 }
 0x6e3   :  { %7975 = vmatprep.subr.bf16.mxu0 %v9337_v27 }
 0x6e9   :  { %5551 = vmatmul.mubr.bf16.gmra.mrb[144].mxu0 %v11372_v1 }
 0x6ea   :  { %7694 = vmatprep.mubr.msk.bf16.mxu0 %vm5197_vm8, %v11393_v57 }
 0x6f1   :  { %5559 = vmatmul.mubr.bf16.gmra.mrb[148].mxu0 %v11391_v55 }
 0x6f2   :  { %7695 = vmatprep.mubr.msk.bf16.mxu0 %vm5197_vm8, %v11404_v53 }
 0x6f9   :  { %5567 = vmatmul.mubr.bf16.gmra.mrb[152].mxu0 %v11402_v0 }
 0x6fa   :  { %7696 = vmatprep.mubr.msk.bf16.mxu0 %vm5197_vm8, %v11415_v17 }
 0x701   :  { %5575 = vmatmul.mubr.bf16.gmra.mrb[156].mxu0 %v11413_v11  ;;  %v9287_v11 = vld [vmem:[%s12228_s9 + $0x78] sm:$0xff]  }
 0x702   :  { %7697 = vmatprep.mubr.msk.bf16.mxu0 %vm5197_vm8, %v11426_v50  ;;  %7976 = vmatpush3.bf16.msra.mxu0 %v9287_v11 }
 0x703   :  { %8037 = vmatprep.subr.bf16.mxu0 %v9337_v27 }
 0x709   :  { %5583 = vmatmul.mubr.bf16.gmra.mrb[160].mxu0 %v11424_v46 }
 0x70a   :  { %7698 = vmatprep.mubr.msk.bf16.mxu0 %vm5197_vm8, %v11437_v63 }
 0x711   :  { %5591 = vmatmul.mubr.bf16.gmra.mrb[164].mxu0 %v11435_v36 }
 0x712   :  { %7699 = vmatprep.mubr.msk.bf16.mxu0 %vm5197_vm8, %v11448_v59 }
 0x719   :  { %5599 = vmatmul.mubr.bf16.gmra.mrb[168].mxu0 %v11446_v15 }
 0x71a   :  { %7700 = vmatprep.mubr.msk.bf16.mxu0 %vm5197_vm8, %v11459_v29 }
 0x71c   :  { %v11573_v10 = vpop.f32.mrb[64].mxu0 }
 0x71d   :  { %v5282_v7 = vpop.f32.mrb[65].mxu0 }
 0x71e   :  { %v11575_v12 = vpop.f32.mrb[66].mxu0 }
 0x71f   :  { %v5285_v1 = vpop.f32.mrb[67].mxu0 }
 0x721   :  { %5607 = vmatmul.mubr.bf16.gmra.mrb[172].mxu0 %v11457_v24 }
 0x722   :  { %7701 = vmatprep.mubr.msk.bf16.mxu0 %vm5197_vm8, %v11470_v51 }
 0x724   :  { %v11580_v3 = vpop.f32.mrb[68].mxu0 }
 0x725   :  { %v5290_v55 = vpop.f32.mrb[69].mxu0 }
 0x726   :  { %v11582_v57 = vpop.f32.mrb[70].mxu0 }
 0x727   :  { %v5293_v0 = vpop.f32.mrb[71].mxu0 }
 0x729   :  { %5615 = vmatmul.mubr.bf16.gmra.mrb[176].mxu0 %v11468_v40 }
 0x72a   :  { %7702 = vmatprep.mubr.msk.bf16.mxu0 %vm5197_vm8, %v11481_v14 }
 0x72c   :  { %v11587_v53 = vpop.f32.mrb[72].mxu0 }
 0x72d   :  { %v5298_v17 = vpop.f32.mrb[73].mxu0 }
 0x72e   :  { %v11592_v46 = vpop.f32.mrb[74].mxu0 }
 0x72f   :  { %v5301_v50 = vpop.f32.mrb[75].mxu0 }
 0x731   :  { %5623 = vmatmul.mubr.bf16.gmra.mrb[180].mxu0 %v11479_v6 }
 0x732   :  { %7703 = vmatprep.mubr.msk.bf16.mxu0 %vm5197_vm8, %v11492_v22 }
 0x734   :  { %v11598_v36 = vpop.f32.mrb[76].mxu0 }
 0x735   :  { %v5306_v63 = vpop.f32.mrb[77].mxu0 }
 0x736   :  { %v11600_v15 = vpop.f32.mrb[78].mxu0 }
 0x737   :  { %v5309_v59 = vpop.f32.mrb[79].mxu0 }
 0x739   :  { %5631 = vmatmul.mubr.bf16.gmra.mrb[184].mxu0 %v11490_v39 }
 0x73a   :  { %7704 = vmatprep.mubr.msk.bf16.mxu0 %vm5197_vm8, %v11503_v34 }
 0x73c   :  { %v11607_v24 = vpop.f32.mrb[80].mxu0 }
 0x73d   :  { %v5314_v29 = vpop.f32.mrb[81].mxu0 }
 0x73e   :  { %v11609_v40 = vpop.f32.mrb[82].mxu0 }
 0x73f   :  { %v5317_v51 = vpop.f32.mrb[83].mxu0 }
 0x741   :  { %5639 = vmatmul.mubr.bf16.gmra.mrb[188].mxu0 %v11505_v48 }
 0x742   :  { %7977 = vmatprep.mubr.msk.bf16.mxu0 %vm9338_vm9, %v9337_v27 }
 0x744   :  { %v11614_v23 = vpop.f32.mrb[84].mxu0 }
 0x745   :  { %v5322_v19 = vpop.f32.mrb[85].mxu0 }
 0x746   :  { %v11616_v32 = vpop.f32.mrb[86].mxu0 }
 0x747   :  { %v5325_v5 = vpop.f32.mrb[87].mxu0 }
 0x74c   :  { %v11618_v13 = vpop.f32.mrb[88].mxu0 }
 0x74d   :  { %v5330_v8 = vpop.f32.mrb[89].mxu0 }
 0x74e   :  { %v11620_v47 = vpop.f32.mrb[90].mxu0 }
 0x74f   :  { %v5333_v6 = vpop.f32.mrb[91].mxu0 }
 0x754   :  { %v11622_v14 = vpop.f32.mrb[92].mxu0 }
 0x755   :  { %v5338_v33 = vpop.f32.mrb[93].mxu0 }
 0x756   :  { %v11624_v45 = vpop.f32.mrb[94].mxu0 }
 0x757   :  { %v5341_v26 = vpop.f32.mrb[95].mxu0 }
 0x75c   :  { %v11626_v20 = vpop.f32.mrb[96].mxu0 }
 0x75d   :  { %v5346_v62 = vpop.f32.mrb[97].mxu0 }
 0x75e   :  { %v11628_v21 = vpop.f32.mrb[98].mxu0 }
 0x75f   :  { %v5349_v25 = vpop.f32.mrb[99].mxu0 }
 0x764   :  { %v11630_v49 = vpop.f32.mrb[100].mxu0 }
 0x765   :  { %v5354_v54 = vpop.f32.mrb[101].mxu0 }
 0x766   :  { %v11632_v16 = vpop.f32.mrb[102].mxu0 }
 0x767   :  { %v5357_v38 = vpop.f32.mrb[103].mxu0 }
 0x76c   :  { %v11634_v31 = vpop.f32.mrb[104].mxu0 }
 0x76d   :  { %v5362_v39 = vpop.f32.mrb[105].mxu0 }
 0x76e   :  { %v11636_v22 = vpop.f32.mrb[106].mxu0 }
 0x76f   :  { %v5365_v58 = vpop.f32.mrb[107].mxu0 }
 0x774   :  { %v11638_v4 = vpop.f32.mrb[108].mxu0 }
 0x775   :  { %v5370_v18 = vpop.f32.mrb[109].mxu0 }
 0x776   :  { %v11640_v60 = vpop.f32.mrb[110].mxu0 }
 0x777   :  { %v5373_v61 = vpop.f32.mrb[111].mxu0 }
 0x77c   :  { %v11642_v35 = vpop.f32.mrb[112].mxu0 }
 0x77d   :  { %v5378_v37 = vpop.f32.mrb[113].mxu0 }
 0x77e   :  { %v11644_v43 = vpop.f32.mrb[114].mxu0 }
 0x77f   :  { %v5381_v30 = vpop.f32.mrb[115].mxu0 }
 0x784   :  { %v11646_v28 = vpop.f32.mrb[116].mxu0 }
 0x785   :  { %v5386_v34 = vpop.f32.mrb[117].mxu0 }
 0x786   :  { %v11648_v48 = vpop.f32.mrb[118].mxu0 }
 0x787   :  { %v5389_v2 = vpop.f32.mrb[119].mxu0 }
 0x78c   :  { %v11650_v44 = vpop.f32.mrb[120].mxu0 }
 0x78d   :  { %v5394_v41 = vpop.f32.mrb[121].mxu0 }
 0x78e   :  { %v11652_v9 = vpop.f32.mrb[122].mxu0 }
 0x78f   :  { %v5397_v42 = vpop.f32.mrb[123].mxu0 }
 0x794   :  { %v11654_v56 = vpop.f32.mrb[124].mxu0 }
 0x795   :  { %v5402_v52 = vpop.f32.mrb[125].mxu0 }
 0x796   :  { %v5403_v7 = vpop.f32.mrb[126].mxu0 }
 0x797   :  { %v5404_v1 = vpop.f32.mrb[127].mxu0 }
 0x79c   :  { %v5520_v55 = vpop.f32.mrb[128].mxu0 }
 0x79d   :  { %v5646_v0 = vmax.f32 %v11573_v10, %v5520_v55  ;;  %v5522_v11 = vpop.f32.mrb[129].mxu0 }
 0x79e   :  { %v5523_v17 = vpop.f32.mrb[130].mxu0 }
 0x79f   :  { %v5647_v50 = vmax.f32 %v11575_v12, %v5523_v17  ;;  %v5525_v63 = vpop.f32.mrb[131].mxu0  ;;  %v5709_v59 = vrot.slane %v5646_v0, 2 }
 0x7a1   :  { %v5710_v29 = vrot.slane %v5647_v50, 2 }
 0x7a3   :  { %v5711_v51 = vsel %vm1795_vm4, %v5709_v59, %v5710_v29 }
 0x7a4   :  { %v5801_v19 = vmax.f32 %v5646_v0, %v5711_v51  ;;  %v5528_v5 = vpop.f32.mrb[132].mxu0 }
 0x7a5   :  { %v5648_v8 = vmax.f32 %v11580_v3, %v5528_v5  ;;  %v5530_v6 = vpop.f32.mrb[133].mxu0 }
 0x7a6   :  { %v5531_v33 = vpop.f32.mrb[134].mxu0 }
 0x7a7   :  { %v5712_v26 = vrot.slane %v5648_v8, 2  ;;  %v5649_v62 = vmax.f32 %v11582_v57, %v5531_v33  ;;  %v5533_v25 = vpop.f32.mrb[135].mxu0 }
 0x7a9   :  { %v5713_v10 = vsel %vm1795_vm4, %v5710_v29, %v5712_v26  ;;  %v5714_v54 = vrot.slane %v5649_v62, 2 }
 0x7aa   :  { %v5802_v38 = vmax.f32 %v5647_v50, %v5713_v10 }
 0x7ab   :  { %v5715_v12 = vsel %vm1795_vm4, %v5712_v26, %v5714_v54 }
 0x7ac   :  { %v11663_v39 = vpack.c.bf16 %v5802_v38, %v5801_v19  ;;  %v5803_v58 = vmax.f32 %v5648_v8, %v5715_v12  ;;  %v5536_v18 = vpop.f32.mrb[136].mxu0  ;;  %v9289_v8 = vld [vmem:[%s12228_s9 + $0x8] sm:$0xff]   ;;  %v9290_v38 = vld [vmem:[%s12228_s9 + $0x10] sm:$0xff]  }
 0x7ad   :  { %v5650_v61 = vmax.f32 %v11587_v53, %v5536_v18  ;;  %v5538_v37 = vpop.f32.mrb[137].mxu0 }
 0x7ae   :  { %v5539_v3 = vpop.f32.mrb[138].mxu0  ;;  %v5896_v17 = vrot.slane %v11663_v39, 2 }
 0x7af   :  { %v5716_v30 = vrot.slane %v5650_v61, 2  ;;  %v5651_v34 = vmax.f32 %v11592_v46, %v5539_v3  ;;  %v5541_v2 = vpop.f32.mrb[139].mxu0  ;;  %v9288_v46 = vld [vmem:[%s12228_s9] sm:$0xff]  }
 0x7b1   :  { %v5717_v57 = vsel %vm1795_vm4, %v5714_v54, %v5716_v30  ;;  %v5718_v41 = vrot.slane %v5651_v34, 2 }
 0x7b2   :  { %v5804_v42 = vmax.f32 %v5649_v62, %v5717_v57 }
 0x7b3   :  { %v5719_v52 = vsel %vm1795_vm4, %v5716_v30, %v5718_v41  ;;  %v9291_v30 = vld [vmem:[%s12228_s9 + $0x18] sm:$0xff]  }
 0x7b4   :  { %v11669_v7 = vpack.c.bf16 %v5804_v42, %v5803_v58  ;;  %v5805_v1 = vmax.f32 %v5650_v61, %v5719_v52  ;;  %v5544_v55 = vpop.f32.mrb[140].mxu0 }
 0x7b5   :  { %v5652_v0 = vmax.f32 %v11598_v36, %v5544_v55  ;;  %v5546_v11 = vpop.f32.mrb[141].mxu0  ;;  %v9292_v55 = vld [vmem:[%s12228_s9 + $0x20] sm:$0xff]  }
 0x7b6   :  { %v5547_v53 = vpop.f32.mrb[142].mxu0  ;;  %v5897_v50 = vrot.slane %v11669_v7, 2 }
 0x7b7   :  { %v5720_v63 = vrot.slane %v5652_v0, 2  ;;  %v5653_v59 = vmax.f32 %v11600_v15, %v5547_v53  ;;  %v5549_v29 = vpop.f32.mrb[143].mxu0 }
 0x7b8   :  { %v5898_v51 = vsel %vm1795_vm4, %v5896_v17, %v5897_v50 }
 0x7b9   :  { %v5721_v19 = vsel %vm1795_vm4, %v5718_v41, %v5720_v63  ;;  %v5722_v5 = vrot.slane %v5653_v59, 2  ;;  %7978 = vmatmul.mubr.bf16.vlgmr.msra.gmra.mrb[192].mxu0 %v5898_v51 }
 0x7ba   :  { %v5806_v36 = vmax.f32 %v5651_v34, %v5721_v19  ;;  %8038 = vmatpush3.bf16.msra.mxu0 %v9288_v46  ;;  %7981 = vmatprep.mubr.msk.bf16.mxu0 %vm9338_vm9, %v9337_v27 }
 0x7bb   :  { %v5723_v6 = vsel %vm1795_vm4, %v5720_v63, %v5722_v5  ;;  %8039 = vmatprep.subr.bf16.mxu0 %v9337_v27  ;;  %v9293_v63 = vld [vmem:[%s12228_s9 + $0x28] sm:$0xff]  }
 0x7bc   :  { %v11687_v15 = vpack.c.bf16 %v5806_v36, %v5805_v1  ;;  %v5807_v33 = vmax.f32 %v5652_v0, %v5723_v6  ;;  %v5552_v26 = vpop.f32.mrb[144].mxu0  ;;  %v9294_v6 = vld [vmem:[%s12228_s9 + $0x30] sm:$0xff]  }
 0x7bd   :  { %v5654_v62 = vmax.f32 %v11607_v24, %v5552_v26  ;;  %v5554_v25 = vpop.f32.mrb[145].mxu0 }
 0x7be   :  { %v5555_v10 = vpop.f32.mrb[146].mxu0  ;;  %v5899_v54 = vrot.slane %v11687_v15, 2  ;;  %8040 = vmatpush3.bf16.msra.mxu0 %v9289_v8 }
 0x7bf   :  { %v5724_v12 = vrot.slane %v5654_v62, 2  ;;  %v5655_v58 = vmax.f32 %v11609_v40, %v5555_v10  ;;  %v5557_v18 = vpop.f32.mrb[147].mxu0  ;;  %8041 = vmatprep.subr.bf16.mxu0 %v9337_v27 }
 0x7c0   :  { %v5900_v61 = vsel %vm1795_vm4, %v5897_v50, %v5899_v54 }
 0x7c1   :  { %v5725_v37 = vsel %vm1795_vm4, %v5722_v5, %v5724_v12  ;;  %v5726_v24 = vrot.slane %v5655_v58, 2  ;;  %7982 = vmatmul.mubr.bf16.gmra.mrb[196].mxu0 %v5900_v61 }
 0x7c2   :  { %v5808_v3 = vmax.f32 %v5653_v59, %v5725_v37  ;;  %7985 = vmatprep.mubr.msk.bf16.mxu0 %vm9338_vm9, %v9337_v27  ;;  %8042 = vmatpush3.bf16.msra.mxu0 %v9290_v38  ;;  %v9295_v38 = vld [vmem:[%s12228_s9 + $0x38] sm:$0xff]  }
 0x7c3   :  { %v5727_v40 = vsel %vm1795_vm4, %v5724_v12, %v5726_v24  ;;  %8043 = vmatprep.subr.bf16.mxu0 %v9337_v27 }
 0x7c4   :  { %v11705_v34 = vpack.c.bf16 %v5808_v3, %v5807_v33  ;;  %v5809_v2 = vmax.f32 %v5654_v62, %v5727_v40  ;;  %v5560_v57 = vpop.f32.mrb[148].mxu0 }
 0x7c5   :  { %v5656_v41 = vmax.f32 %v11614_v23, %v5560_v57  ;;  %v5562_v42 = vpop.f32.mrb[149].mxu0 }
 0x7c6   :  { %v5563_v52 = vpop.f32.mrb[150].mxu0  ;;  %v5901_v1 = vrot.slane %v11705_v34, 2  ;;  %8044 = vmatpush3.bf16.msra.mxu0 %v9291_v30 }
 0x7c7   :  { %v5728_v0 = vrot.slane %v5656_v41, 2  ;;  %v5657_v11 = vmax.f32 %v11616_v32, %v5563_v52  ;;  %v5565_v53 = vpop.f32.mrb[151].mxu0  ;;  %8045 = vmatprep.subr.bf16.mxu0 %v9337_v27 }
 0x7c8   :  { %v5902_v17 = vsel %vm1795_vm4, %v5899_v54, %v5901_v1 }
 0x7c9   :  { %v5729_v50 = vsel %vm1795_vm4, %v5726_v24, %v5728_v0  ;;  %v5730_v23 = vrot.slane %v5657_v11, 2  ;;  %7986 = vmatmul.mubr.bf16.gmra.mrb[200].mxu0 %v5902_v17 }
 0x7ca   :  { %v5810_v46 = vmax.f32 %v5655_v58, %v5729_v50  ;;  %7989 = vmatprep.mubr.msk.bf16.mxu0 %vm9338_vm9, %v9337_v27  ;;  %8046 = vmatpush3.bf16.msra.mxu0 %v9292_v55 }
 0x7cb   :  { %v5731_v32 = vsel %vm1795_vm4, %v5728_v0, %v5730_v23  ;;  %8047 = vmatprep.subr.bf16.mxu0 %v9337_v27 }
 0x7cc   :  { %v11723_v59 = vpack.c.bf16 %v5810_v46, %v5809_v2  ;;  %v5811_v29 = vmax.f32 %v5656_v41, %v5731_v32  ;;  %v5568_v51 = vpop.f32.mrb[152].mxu0 }
 0x7cd   :  { %v5658_v19 = vmax.f32 %v11618_v13, %v5568_v51  ;;  %v5570_v5 = vpop.f32.mrb[153].mxu0 }
 0x7ce   :  { %v5571_v36 = vpop.f32.mrb[154].mxu0  ;;  %v5903_v8 = vrot.slane %v11723_v59, 2  ;;  %8048 = vmatpush3.bf16.msra.mxu0 %v9293_v63 }
 0x7cf   :  { %v5732_v33 = vrot.slane %v5658_v19, 2  ;;  %v5659_v26 = vmax.f32 %v11620_v47, %v5571_v36  ;;  %v5573_v62 = vpop.f32.mrb[155].mxu0  ;;  %8049 = vmatprep.subr.bf16.mxu0 %v9337_v27 }
 0x7d0   :  { %v5904_v25 = vsel %vm1795_vm4, %v5901_v1, %v5903_v8 }
 0x7d1   :  { %v5733_v10 = vsel %vm1795_vm4, %v5730_v23, %v5732_v33  ;;  %v5734_v13 = vrot.slane %v5659_v26, 2  ;;  %7990 = vmatmul.mubr.bf16.gmra.mrb[204].mxu0 %v5904_v25 }
 0x7d2   :  { %v5812_v54 = vmax.f32 %v5657_v11, %v5733_v10  ;;  %7993 = vmatprep.mubr.msk.bf16.mxu0 %vm9338_vm9, %v9337_v27  ;;  %8050 = vmatpush3.bf16.msra.mxu0 %v9294_v6 }
 0x7d3   :  { %v5735_v47 = vsel %vm1795_vm4, %v5732_v33, %v5734_v13  ;;  %8051 = vmatprep.subr.bf16.mxu0 %v9337_v27 }
 0x7d4   :  { %v11741_v12 = vpack.c.bf16 %v5812_v54, %v5811_v29  ;;  %v5813_v58 = vmax.f32 %v5658_v19, %v5735_v47  ;;  %v5576_v18 = vpop.f32.mrb[156].mxu0 }
 0x7d5   :  { %v5660_v61 = vmax.f32 %v11622_v14, %v5576_v18  ;;  %v5578_v37 = vpop.f32.mrb[157].mxu0 }
 0x7d6   :  { %v5579_v24 = vpop.f32.mrb[158].mxu0  ;;  %v5905_v3 = vrot.slane %v11741_v12, 2  ;;  %8052 = vmatpush3.bf16.msra.mxu0 %v9295_v38 }
 0x7d7   :  { %v5736_v30 = vrot.slane %v5660_v61, 2  ;;  %v5661_v40 = vmax.f32 %v11624_v45, %v5579_v24  ;;  %v5581_v2 = vpop.f32.mrb[159].mxu0  ;;  %8113 = vmatprep.subr.bf16.mxu0 %v9337_v27 }
 0x7d8   :  { %v5906_v57 = vsel %vm1795_vm4, %v5903_v8, %v5905_v3 }
 0x7d9   :  { %v5737_v41 = vsel %vm1795_vm4, %v5734_v13, %v5736_v30  ;;  %v5738_v42 = vrot.slane %v5661_v40, 2  ;;  %7994 = vmatmul.mubr.bf16.gmra.mrb[208].mxu0 %v5906_v57 }
 0x7da   :  { %v5814_v52 = vmax.f32 %v5659_v26, %v5737_v41  ;;  %7997 = vmatprep.mubr.msk.bf16.mxu0 %vm9338_vm9, %v9337_v27 }
 0x7db   :  { %v5739_v14 = vsel %vm1795_vm4, %v5736_v30, %v5738_v42 }
 0x7dc   :  { %v11752_v1 = vpack.c.bf16 %v5814_v52, %v5813_v58  ;;  %v5815_v55 = vmax.f32 %v5660_v61, %v5739_v14  ;;  %v5584_v0 = vpop.f32.mrb[160].mxu0 }
 0x7dd   :  { %v5662_v45 = vmax.f32 %v11626_v20, %v5584_v0  ;;  %v5586_v11 = vpop.f32.mrb[161].mxu0 }
 0x7de   :  { %v5587_v53 = vpop.f32.mrb[162].mxu0  ;;  %v5907_v17 = vrot.slane %v11752_v1, 2 }
 0x7df   :  { %v5740_v50 = vrot.slane %v5662_v45, 2  ;;  %v5663_v23 = vmax.f32 %v11628_v21, %v5587_v53  ;;  %v5589_v46 = vpop.f32.mrb[163].mxu0 }
 0x7e0   :  { %v5908_v63 = vsel %vm1795_vm4, %v5905_v3, %v5907_v17 }
 0x7e1   :  { %v5741_v32 = vsel %vm1795_vm4, %v5738_v42, %v5740_v50  ;;  %v5742_v29 = vrot.slane %v5663_v23, 2  ;;  %7998 = vmatmul.mubr.bf16.gmra.mrb[212].mxu0 %v5908_v63 }
 0x7e2   :  { %v5816_v51 = vmax.f32 %v5661_v40, %v5741_v32  ;;  %8001 = vmatprep.mubr.msk.bf16.mxu0 %vm9338_vm9, %v9337_v27 }
 0x7e3   :  { %v5743_v20 = vsel %vm1795_vm4, %v5740_v50, %v5742_v29 }
 0x7e4   :  { %v11762_v19 = vpack.c.bf16 %v5816_v51, %v5815_v55  ;;  %v5817_v5 = vmax.f32 %v5662_v45, %v5743_v20  ;;  %v5592_v36 = vpop.f32.mrb[164].mxu0 }
 0x7e5   :  { %v5664_v8 = vmax.f32 %v11630_v49, %v5592_v36  ;;  %v5594_v21 = vpop.f32.mrb[165].mxu0 }
 0x7e6   :  { %v5595_v6 = vpop.f32.mrb[166].mxu0  ;;  %v5909_v33 = vrot.slane %v11762_v19, 2 }
 0x7e7   :  { %v5744_v26 = vrot.slane %v5664_v8, 2  ;;  %v5665_v62 = vmax.f32 %v11632_v16, %v5595_v6  ;;  %v5597_v25 = vpop.f32.mrb[167].mxu0 }
 0x7e8   :  { %v5910_v10 = vsel %vm1795_vm4, %v5907_v17, %v5909_v33 }
 0x7e9   :  { %v5745_v13 = vsel %vm1795_vm4, %v5742_v29, %v5744_v26  ;;  %v5746_v54 = vrot.slane %v5665_v62, 2  ;;  %8002 = vmatmul.mubr.bf16.gmra.mrb[216].mxu0 %v5910_v10 }
 0x7ea   :  { %v5818_v38 = vmax.f32 %v5663_v23, %v5745_v13  ;;  %8005 = vmatprep.mubr.msk.bf16.mxu0 %vm9338_vm9, %v9337_v27 }
 0x7eb   :  { %v5747_v49 = vsel %vm1795_vm4, %v5744_v26, %v5746_v54 }
 0x7ec   :  { %v11772_v47 = vpack.c.bf16 %v5818_v38, %v5817_v5  ;;  %v5819_v58 = vmax.f32 %v5664_v8, %v5747_v49  ;;  %v5600_v18 = vpop.f32.mrb[168].mxu0 }
 0x7ed   :  { %v5666_v61 = vmax.f32 %v11634_v31, %v5600_v18  ;;  %v5602_v16 = vpop.f32.mrb[169].mxu0 }
 0x7ee   :  { %v5603_v37 = vpop.f32.mrb[170].mxu0  ;;  %v5911_v24 = vrot.slane %v11772_v47, 2 }
 0x7ef   :  { %v5748_v3 = vrot.slane %v5666_v61, 2  ;;  %v5667_v30 = vmax.f32 %v11636_v22, %v5603_v37  ;;  %v5605_v40 = vpop.f32.mrb[171].mxu0 }
 0x7f0   :  { %v5912_v2 = vsel %vm1795_vm4, %v5909_v33, %v5911_v24 }
 0x7f1   :  { %v5749_v57 = vsel %vm1795_vm4, %v5746_v54, %v5748_v3  ;;  %v5750_v41 = vrot.slane %v5667_v30, 2  ;;  %8006 = vmatmul.mubr.bf16.gmra.mrb[220].mxu0 %v5912_v2 }
 0x7f2   :  { %v5820_v42 = vmax.f32 %v5665_v62, %v5749_v57  ;;  %8009 = vmatprep.mubr.msk.bf16.mxu0 %vm9338_vm9, %v9337_v27 }
 0x7f3   :  { %v5751_v31 = vsel %vm1795_vm4, %v5748_v3, %v5750_v41 }
 0x7f4   :  { %v11782_v52 = vpack.c.bf16 %v5820_v42, %v5819_v58  ;;  %v5821_v14 = vmax.f32 %v5666_v61, %v5751_v31  ;;  %v5608_v55 = vpop.f32.mrb[172].mxu0 }
 0x7f5   :  { %v5668_v0 = vmax.f32 %v11638_v4, %v5608_v55  ;;  %v5610_v22 = vpop.f32.mrb[173].mxu0 }
 0x7f6   :  { %v5611_v45 = vpop.f32.mrb[174].mxu0  ;;  %v5913_v11 = vrot.slane %v11782_v52, 2 }
 0x7f7   :  { %v5752_v53 = vrot.slane %v5668_v0, 2  ;;  %v5669_v17 = vmax.f32 %v11640_v60, %v5611_v45  ;;  %v5613_v50 = vpop.f32.mrb[175].mxu0 }
 0x7f8   :  { %v5914_v23 = vsel %vm1795_vm4, %v5911_v24, %v5913_v11 }
 0x7f9   :  { %v5753_v46 = vsel %vm1795_vm4, %v5750_v41, %v5752_v53  ;;  %v5754_v63 = vrot.slane %v5669_v17, 2  ;;  %8010 = vmatmul.mubr.bf16.gmra.mrb[224].mxu0 %v5914_v23 }
 0x7fa   :  { %v5822_v32 = vmax.f32 %v5667_v30, %v5753_v46  ;;  %8013 = vmatprep.mubr.msk.bf16.mxu0 %vm9338_vm9, %v9337_v27 }
 0x7fb   :  { %v5755_v4 = vsel %vm1795_vm4, %v5752_v53, %v5754_v63 }
 0x7fc   :  { %v11792_v29 = vpack.c.bf16 %v5822_v32, %v5821_v14  ;;  %v5823_v51 = vmax.f32 %v5668_v0, %v5755_v4  ;;  %v5616_v20 = vpop.f32.mrb[176].mxu0 }
 0x7fd   :  { %v5670_v5 = vmax.f32 %v11642_v35, %v5616_v20  ;;  %v5618_v60 = vpop.f32.mrb[177].mxu0 }
 0x7fe   :  { %v5619_v36 = vpop.f32.mrb[178].mxu0  ;;  %v5915_v8 = vrot.slane %v11792_v29, 2 }
 0x7ff   :  { %v5756_v21 = vrot.slane %v5670_v5, 2  ;;  %v5671_v6 = vmax.f32 %v11644_v43, %v5619_v36  ;;  %v5621_v33 = vpop.f32.mrb[179].mxu0 }
 0x800   :  { %v5916_v26 = vsel %vm1795_vm4, %v5913_v11, %v5915_v8  ;;  %v9296_v33 = vld [vmem:[%s12228_s9 + $0x80] sm:$0xff]  }
 0x801   :  { %v5757_v62 = vsel %vm1795_vm4, %v5754_v63, %v5756_v21  ;;  %v5758_v25 = vrot.slane %v5671_v6, 2  ;;  %8014 = vmatmul.mubr.bf16.gmra.mrb[228].mxu0 %v5916_v26  ;;  %v9297_v26 = vld [vmem:[%s12228_s9 + $0x88] sm:$0xff]  }
 0x802   :  { %v5824_v10 = vmax.f32 %v5669_v17, %v5757_v62  ;;  %8017 = vmatprep.mubr.msk.bf16.mxu0 %vm9338_vm9, %v9337_v27  ;;  %v9298_v62 = vld [vmem:[%s12228_s9 + $0x90] sm:$0xff]  }
 0x803   :  { %v5759_v35 = vsel %vm1795_vm4, %v5756_v21, %v5758_v25 }
 0x804   :  { %v11802_v13 = vpack.c.bf16 %v5824_v10, %v5823_v51  ;;  %v5825_v54 = vmax.f32 %v5670_v5, %v5759_v35  ;;  %v5624_v38 = vpop.f32.mrb[180].mxu0  ;;  %v9300_v10 = vld [vmem:[%s12228_s9 + $0xa0] sm:$0xff]   ;;  %v9301_v35 = vld [vmem:[%s12228_s9 + $0xa8] sm:$0xff]  }
 0x805   :  { %v5672_v49 = vmax.f32 %v11646_v28, %v5624_v38  ;;  %v5626_v43 = vpop.f32.mrb[181].mxu0  ;;  %v9303_v38 = vld [vmem:[%s12228_s9 + $0xb8] sm:$0xff]  }
 0x806   :  { %v5627_v58 = vpop.f32.mrb[182].mxu0  ;;  %v5917_v18 = vrot.slane %v11802_v13, 2 }
 0x807   :  { %v5760_v61 = vrot.slane %v5672_v49, 2  ;;  %v5673_v16 = vmax.f32 %v11648_v48, %v5627_v58  ;;  %v5629_v37 = vpop.f32.mrb[183].mxu0 }
 0x808   :  { %v5918_v24 = vsel %vm1795_vm4, %v5915_v8, %v5917_v18 }
 0x809   :  { %v5761_v3 = vsel %vm1795_vm4, %v5758_v25, %v5760_v61  ;;  %v5762_v30 = vrot.slane %v5673_v16, 2  ;;  %8018 = vmatmul.mubr.bf16.gmra.mrb[232].mxu0 %v5918_v24  ;;  %v9299_v25 = vld [vmem:[%s12228_s9 + $0x98] sm:$0xff]  }
 0x80a   :  { %v5826_v40 = vmax.f32 %v5671_v6, %v5761_v3  ;;  %8021 = vmatprep.mubr.msk.bf16.mxu0 %vm9338_vm9, %v9337_v27  ;;  %v6315_v3 = vrot.slane %v11663_v39, 4 }
 0x80b   :  { %v5763_v28 = vsel %vm1795_vm4, %v5760_v61, %v5762_v30 }
 0x80c   :  { %v11812_v2 = vpack.c.bf16 %v5826_v40, %v5825_v54  ;;  %v5827_v57 = vmax.f32 %v5672_v49, %v5763_v28  ;;  %v5632_v41 = vpop.f32.mrb[184].mxu0  ;;  %v9302_v54 = vld [vmem:[%s12228_s9 + $0xb0] sm:$0xff]  }
 0x80d   :  { %v5674_v42 = vmax.f32 %v11650_v44, %v5632_v41  ;;  %v5634_v48 = vpop.f32.mrb[185].mxu0  ;;  %v6318_v41 = vrot.slane %v11687_v15, 4 }
 0x80e   :  { %v5635_v31 = vpop.f32.mrb[186].mxu0  ;;  %v5919_v14 = vrot.slane %v11812_v2, 2 }
 0x80f   :  { %v5764_v55 = vrot.slane %v5674_v42, 2  ;;  %v5675_v0 = vmax.f32 %v11652_v9, %v5635_v31  ;;  %v5637_v22 = vpop.f32.mrb[187].mxu0  ;;  %v9307_v31 = vld [vmem:[%s12228_s9 + $0xd8] sm:$0xff]  }
 0x810   :  { %v5920_v45 = vsel %vm1795_vm4, %v5917_v18, %v5919_v14 }
 0x811   :  { %v5765_v11 = vsel %vm1795_vm4, %v5762_v30, %v5764_v55  ;;  %v5766_v53 = vrot.slane %v5675_v0, 2  ;;  %8022 = vmatmul.mubr.bf16.gmra.mrb[236].mxu0 %v5920_v45  ;;  %v9304_v30 = vld [vmem:[%s12228_s9 + $0xc0] sm:$0xff]  }
 0x812   :  { %v5828_v17 = vmax.f32 %v5673_v16, %v5765_v11  ;;  %8025 = vmatprep.mubr.msk.bf16.mxu0 %vm9338_vm9, %v9337_v27  ;;  %v6316_v16 = vrot.slane %v11669_v7, 4  ;;  %v9308_v45 = vld [vmem:[%s12228_s9 + $0xe0] sm:$0xff]  }
 0x813   :  { %v5767_v44 = vsel %vm1795_vm4, %v5764_v55, %v5766_v53  ;;  %v6320_v55 = vrot.slane %v11705_v34, 4 }
 0x814   :  { %v11822_v50 = vpack.c.bf16 %v5828_v17, %v5827_v57  ;;  %v5829_v23 = vmax.f32 %v5674_v42, %v5767_v44  ;;  %v5640_v46 = vpop.f32.mrb[188].mxu0  ;;  %v6317_v28 = vsel %vm2497_vm5, %v6315_v3, %v6316_v16  ;;  %v9305_v57 = vld [vmem:[%s12228_s9 + $0xc8] sm:$0xff]   ;;  %v9306_v42 = vld [vmem:[%s12228_s9 + $0xd0] sm:$0xff]   ;;  %v6319_v48 = vsel %vm2497_vm5, %v6316_v16, %v6318_v41 }
 0x815   :  { %v5676_v63 = vmax.f32 %v11654_v56, %v5640_v46  ;;  %v5642_v9 = vpop.f32.mrb[189].mxu0  ;;  %v9309_v17 = vld [vmem:[%s12228_s9 + $0xe8] sm:$0xff]   ;;  %v6322_v44 = vrot.slane %v11723_v59, 4 }
 0x816   :  { %v5643_v32 = vpop.f32.mrb[190].mxu0  ;;  %v5921_v4 = vrot.slane %v11822_v50, 2 }
 0x817   :  { %v5768_v51 = vrot.slane %v5676_v63, 2  ;;  %v5644_v20 = vpop.f32.mrb[191].mxu0  ;;  %v6323_v46 = vsel %vm2497_vm5, %v6320_v55, %v6322_v44  ;;  %v6324_v32 = vrot.slane %v11741_v12, 4 }
 0x818   :  { %v5922_v5 = vsel %vm1795_vm4, %v5919_v14, %v5921_v4 }
 0x819   :  { %v5769_v60 = vsel %vm1795_vm4, %v5766_v53, %v5768_v51  ;;  %v11828_v36 = vmax.f32 %v5676_v63, %v5768_v51  ;;  %8026 = vmatmul.mubr.bf16.gmra.mrb[240].mxu0 %v5922_v5  ;;  %v6321_v53 = vsel %vm2497_vm5, %v6318_v41, %v6320_v55  ;;  %v9311_v63 = vld [vmem:[%s12228_s9 + $0xf8] sm:$0xff]   ;;  %v6325_v5 = vsel %vm2497_vm5, %v6322_v44, %v6324_v32 }
 0x81a   :  { %v5830_v8 = vmax.f32 %v5675_v0, %v5769_v60  ;;  %8029 = vmatprep.mubr.msk.bf16.mxu0 %vm9338_vm9, %v9337_v27  ;;  %v6326_v60 = vrot.slane %v11752_v1, 4 }
 0x81c   :  { %v11832_v21 = vpack.c.bf16 %v5830_v8, %v5829_v23  ;;  %v9310_v23 = vld [vmem:[%s12228_s9 + $0xf0] sm:$0xff]   ;;  %v6327_v8 = vsel %vm2497_vm5, %v6324_v32, %v6326_v60  ;;  %v9313_v32 = vld [vmem:[%s12228_s9 + $0x108] sm:$0xff]  }
 0x81e   :  { %v5923_v56 = vrot.slane %v11832_v21, 2 }
 0x820   :  { %v5924_v6 = vsel %vm1795_vm4, %v5921_v4, %v5923_v56 }
 0x821   :  { %8030 = vmatmul.mubr.bf16.gmra.mrb[244].mxu0 %v5924_v6  ;;  %v6328_v6 = vrot.slane %v11762_v19, 4 }
 0x822   :  { %8033 = vmatprep.mubr.msk.bf16.mxu0 %vm9338_vm9, %v9337_v27 }
 0x829   :  { %8034 = vmatmul.mubr.bf16.gmra.mrb[248].mxu0 %v5923_v56 }
 0x82a   :  { %8053 = vmatprep.mubr.msk.bf16.mxu0 %vm9338_vm9, %v9337_v27 }
 0x831   :  { %8054 = vmatmul.mubr.bf16.vlgmr.msra.gmra.mrb[192].mxu0 %v11663_v39 }
 0x832   :  { %8114 = vmatpush3.bf16.msra.mxu0 %v9296_v33  ;;  %8057 = vmatprep.mubr.msk.bf16.mxu0 %vm9338_vm9, %v9337_v27 }
 0x833   :  { %8115 = vmatprep.subr.bf16.mxu0 %v9337_v27 }
 0x836   :  { %8116 = vmatpush3.bf16.msra.mxu0 %v9297_v26 }
 0x837   :  { %8117 = vmatprep.subr.bf16.mxu0 %v9337_v27 }
 0x839   :  { %8058 = vmatmul.mubr.bf16.gmra.mrb[252].mxu0 %v11669_v7 }
 0x83a   :  { %8061 = vmatprep.mubr.msk.bf16.mxu0 %vm9338_vm9, %v9337_v27  ;;  %8118 = vmatpush3.bf16.msra.mxu0 %v9298_v62 }
 0x83b   :  { %8119 = vmatprep.subr.bf16.mxu0 %v9337_v27 }
 0x83e   :  { %8120 = vmatpush3.bf16.msra.mxu0 %v9299_v25  ;;  %v6329_v25 = vsel %vm2497_vm5, %v6326_v60, %v6328_v6  ;;  %v6569_v60 = vrot.slane %v11705_v34, 6 }
 0x83f   :  { %8121 = vmatprep.subr.bf16.mxu0 %v9337_v27 }
 0x841   :  { %8062 = vmatmul.mubr.bf16.gmra.mrb[200].mxu0 %v11687_v15 }
 0x842   :  { %8065 = vmatprep.mubr.msk.bf16.mxu0 %vm9338_vm9, %v9337_v27  ;;  %8122 = vmatpush3.bf16.msra.mxu0 %v9300_v10  ;;  %v6330_v10 = vrot.slane %v11772_v47, 4 }
 0x843   :  { %8123 = vmatprep.subr.bf16.mxu0 %v9337_v27 }
 0x846   :  { %8124 = vmatpush3.bf16.msra.mxu0 %v9301_v35  ;;  %v6331_v35 = vsel %vm2497_vm5, %v6328_v6, %v6330_v10  ;;  %v9316_v6 = vld [vmem:[%s12228_s9 + $0x120] sm:$0xff]  }
 0x847   :  { %8125 = vmatprep.subr.bf16.mxu0 %v9337_v27 }
 0x849   :  { %8066 = vmatmul.mubr.bf16.gmra.mrb[0].mxu0 %v11705_v34 }
 0x84a   :  { %8069 = vmatprep.mubr.msk.bf16.mxu0 %vm9338_vm9, %v9337_v27  ;;  %8126 = vmatpush3.bf16.msra.mxu0 %v9302_v54 }
 0x84b   :  { %8127 = vmatprep.subr.bf16.mxu0 %v9337_v27 }
 0x84e   :  { %8128 = vmatpush3.bf16.msra.mxu0 %v9303_v38  ;;  %v6332_v38 = vrot.slane %v11782_v52, 4 }
 0x84f   :  { %8189 = vmatprep.subr.bf16.mxu0 %v9337_v27 }
 0x851   :  { %8070 = vmatmul.mubr.bf16.gmra.mrb[208].mxu0 %v11723_v59 }
 0x852   :  { %8073 = vmatprep.mubr.msk.bf16.mxu0 %vm9338_vm9, %v9337_v27 }
 0x859   :  { %8074 = vmatmul.mubr.bf16.gmra.mrb[4].mxu0 %v11741_v12 }
 0x85a   :  { %8077 = vmatprep.mubr.msk.bf16.mxu0 %vm9338_vm9, %v9337_v27 }
 0x861   :  { %8078 = vmatmul.mubr.bf16.gmra.mrb[216].mxu0 %v11752_v1 }
 0x862   :  { %8081 = vmatprep.mubr.msk.bf16.mxu0 %vm9338_vm9, %v9337_v27 }
 0x869   :  { %8082 = vmatmul.mubr.bf16.gmra.mrb[8].mxu0 %v11762_v19 }
 0x86a   :  { %8085 = vmatprep.mubr.msk.bf16.mxu0 %vm9338_vm9, %v9337_v27 }
 0x871   :  { %8086 = vmatmul.mubr.bf16.gmra.mrb[224].mxu0 %v11772_v47 }
 0x872   :  { %8089 = vmatprep.mubr.msk.bf16.mxu0 %vm9338_vm9, %v9337_v27 }
 0x879   :  { %8090 = vmatmul.mubr.bf16.gmra.mrb[12].mxu0 %v11782_v52 }
 0x87a   :  { %8093 = vmatprep.mubr.msk.bf16.mxu0 %vm9338_vm9, %v9337_v27 }
 0x881   :  { %8094 = vmatmul.mubr.bf16.gmra.mrb[232].mxu0 %v11792_v29 }
 0x882   :  { %8097 = vmatprep.mubr.msk.bf16.mxu0 %vm9338_vm9, %v9337_v27 }
 0x889   :  { %8098 = vmatmul.mubr.bf16.gmra.mrb[16].mxu0 %v11802_v13 }
 0x88a   :  { %8101 = vmatprep.mubr.msk.bf16.mxu0 %vm9338_vm9, %v9337_v27 }
 0x891   :  { %8102 = vmatmul.mubr.bf16.gmra.mrb[240].mxu0 %v11812_v2 }
 0x892   :  { %8105 = vmatprep.mubr.msk.bf16.mxu0 %vm9338_vm9, %v9337_v27 }
 0x894   :  { %v6029_v49 = vpop.f32.mrb[196].mxu0 }
 0x895   :  { %v7983_v43 = vpop.f32.mrb[197].mxu0 }
 0x896   :  { %v6031_v58 = vpop.f32.mrb[198].mxu0 }
 0x897   :  { %v7984_v18 = vpop.f32.mrb[199].mxu0 }
 0x898   :  { %v6333_v18 = vsel %vm2497_vm5, %v6330_v10, %v6332_v38  ;;  %v9318_v10 = vld [vmem:[%s12228_s9 + $0x130] sm:$0xff]  }
 0x899   :  { %8106 = vmatmul.mubr.bf16.gmra.mrb[20].mxu0 %v11822_v50 }
 0x89a   :  { %8109 = vmatprep.mubr.msk.bf16.mxu0 %vm9338_vm9, %v9337_v27 }
 0x8a1   :  { %8110 = vmatmul.mubr.bf16.gmra.mrb[248].mxu0 %v11832_v21 }
 0x8a2   :  { %8129 = vmatprep.mubr.msk.bf16.mxu0 %vm9338_vm9, %v9337_v27 }
 0x8a4   :  { %v6042_v61 = vpop.f32.mrb[204].mxu0 }
 0x8a5   :  { %v7991_v37 = vpop.f32.mrb[205].mxu0  ;;  %v6334_v61 = vrot.slane %v11792_v29, 4 }
 0x8a6   :  { %v6044_v24 = vpop.f32.mrb[206].mxu0 }
 0x8a7   :  { %v7992_v40 = vpop.f32.mrb[207].mxu0  ;;  %v6335_v16 = vsel %vm2497_vm5, %v6332_v38, %v6334_v61  ;;  %v6336_v24 = vrot.slane %v11802_v13, 4 }
 0x8a9   :  { %8130 = vmatmul.mubr.bf16.vlgmr.msra.gmra.mrb[192].mxu0 %v6317_v28  ;;  %v6337_v28 = vsel %vm2497_vm5, %v6334_v61, %v6336_v24 }
 0x8aa   :  { %8190 = vmatpush3.bf16.msra.mxu0 %v9304_v30  ;;  %8133 = vmatprep.mubr.msk.bf16.mxu0 %vm9338_vm9, %v9337_v27 }
 0x8ab   :  { %8191 = vmatprep.subr.bf16.mxu0 %v9337_v27 }
 0x8ae   :  { %8192 = vmatpush3.bf16.msra.mxu0 %v9305_v57  ;;  %v6338_v57 = vrot.slane %v11812_v2, 4 }
 0x8af   :  { %8193 = vmatprep.subr.bf16.mxu0 %v9337_v27 }
 0x8b0   :  { %v6339_v41 = vsel %vm2497_vm5, %v6336_v24, %v6338_v57 }
 0x8b1   :  { %8134 = vmatmul.mubr.bf16.gmra.mrb[24].mxu0 %v6319_v48 }
 0x8b2   :  { %8137 = vmatprep.mubr.msk.bf16.mxu0 %vm9338_vm9, %v9337_v27  ;;  %8194 = vmatpush3.bf16.msra.mxu0 %v9306_v42  ;;  %v6340_v42 = vrot.slane %v11822_v50, 4 }
 0x8b3   :  { %8195 = vmatprep.subr.bf16.mxu0 %v9337_v27 }
 0x8b4   :  { %v6055_v14 = vpop.f32.mrb[212].mxu0  ;;  %v6341_v48 = vsel %vm2497_vm5, %v6338_v57, %v6340_v42 }
 0x8b5   :  { %v7999_v0 = vpop.f32.mrb[213].mxu0 }
 0x8b6   :  { %v6057_v22 = vpop.f32.mrb[214].mxu0  ;;  %8196 = vmatpush3.bf16.msra.mxu0 %v9307_v31  ;;  %v6342_v31 = vrot.slane %v11832_v21, 4 }
 0x8b7   :  { %v8000_v11 = vpop.f32.mrb[215].mxu0  ;;  %8197 = vmatprep.subr.bf16.mxu0 %v9337_v27 }
 0x8b9   :  { %8138 = vmatmul.mubr.bf16.gmra.mrb[200].mxu0 %v6321_v53  ;;  %v6565_v53 = vrot.slane %v11669_v7, 6 }
 0x8ba   :  { %8141 = vmatprep.mubr.msk.bf16.mxu0 %vm9338_vm9, %v9337_v27  ;;  %8198 = vmatpush3.bf16.msra.mxu0 %v9308_v45  ;;  %v6343_v45 = vsel %vm2497_vm5, %v6340_v42, %v6342_v31 }
 0x8bb   :  { %8199 = vmatprep.subr.bf16.mxu0 %v9337_v27 }
 0x8be   :  { %8200 = vmatpush3.bf16.msra.mxu0 %v9309_v17 }
 0x8bf   :  { %8201 = vmatprep.subr.bf16.mxu0 %v9337_v27 }
 0x8c1   :  { %8142 = vmatmul.mubr.bf16.gmra.mrb[28].mxu0 %v6323_v46  ;;  %v9312_v46 = vld [vmem:[%s12228_s9 + $0x100] sm:$0xff]  }
 0x8c2   :  { %8145 = vmatprep.mubr.msk.bf16.mxu0 %vm9338_vm9, %v9337_v27  ;;  %8202 = vmatpush3.bf16.msra.mxu0 %v9310_v23  ;;  %v6564_v23 = vrot.slane %v11663_v39, 6  ;;  %v6567_v39 = vrot.slane %v11687_v15, 6 }
 0x8c3   :  { %8203 = vmatprep.subr.bf16.mxu0 %v9337_v27 }
 0x8c4   :  { %v6068_v9 = vpop.f32.mrb[220].mxu0 }
 0x8c5   :  { %v8007_v4 = vpop.f32.mrb[221].mxu0  ;;  %v6566_v9 = vsel %vm6563_vm10, %v6564_v23, %v6565_v53 }
 0x8c6   :  { %v6070_v51 = vpop.f32.mrb[222].mxu0  ;;  %8204 = vmatpush3.bf16.msra.mxu0 %v9311_v63  ;;  %v9314_v4 = vld [vmem:[%s12228_s9 + $0x110] sm:$0xff]  }
 0x8c7   :  { %v8008_v20 = vpop.f32.mrb[223].mxu0  ;;  %8265 = vmatprep.subr.bf16.mxu0 %v9337_v27  ;;  %v6568_v51 = vsel %vm6563_vm10, %v6565_v53, %v6567_v39 }
 0x8c8   :  { %v9315_v20 = vld [vmem:[%s12228_s9 + $0x118] sm:$0xff]  }
 0x8c9   :  { %8146 = vmatmul.mubr.bf16.gmra.mrb[208].mxu0 %v6325_v5 }
 0x8ca   :  { %8149 = vmatprep.mubr.msk.bf16.mxu0 %vm9338_vm9, %v9337_v27 }
 0x8d1   :  { %8150 = vmatmul.mubr.bf16.gmra.mrb[32].mxu0 %v6327_v8 }
 0x8d2   :  { %8153 = vmatprep.mubr.msk.bf16.mxu0 %vm9338_vm9, %v9337_v27 }
 0x8d4   :  { %v6081_v56 = vpop.f32.mrb[228].mxu0 }
 0x8d5   :  { %v8015_v33 = vpop.f32.mrb[229].mxu0 }
 0x8d6   :  { %v6083_v26 = vpop.f32.mrb[230].mxu0 }
 0x8d7   :  { %v8016_v62 = vpop.f32.mrb[231].mxu0  ;;  %v6570_v26 = vsel %vm6563_vm10, %v6567_v39, %v6569_v60  ;;  %v6589_v39 = vrot.slane %v11822_v50, 6 }
 0x8d8   :  { %v9317_v62 = vld [vmem:[%s12228_s9 + $0x128] sm:$0xff]  }
 0x8d9   :  { %8154 = vmatmul.mubr.bf16.gmra.mrb[216].mxu0 %v6329_v25  ;;  %v6571_v25 = vrot.slane %v11723_v59, 6 }
 0x8da   :  { %8157 = vmatprep.mubr.msk.bf16.mxu0 %vm9338_vm9, %v9337_v27 }
 0x8e1   :  { %8158 = vmatmul.mubr.bf16.gmra.mrb[36].mxu0 %v6331_v35  ;;  %v6572_v35 = vsel %vm6563_vm10, %v6569_v60, %v6571_v25 }
 0x8e2   :  { %8161 = vmatprep.mubr.msk.bf16.mxu0 %vm9338_vm9, %v9337_v27 }
 0x8e4   :  { %v6094_v54 = vpop.f32.mrb[236].mxu0 }
 0x8e5   :  { %v8023_v49 = vpop.f32.mrb[237].mxu0  ;;  %v9319_v54 = vld [vmem:[%s12228_s9 + $0x138] sm:$0xff]  }
 0x8e6   :  { %v6096_v43 = vpop.f32.mrb[238].mxu0  ;;  %v6573_v49 = vrot.slane %v11741_v12, 6 }
 0x8e7   :  { %v8024_v58 = vpop.f32.mrb[239].mxu0 }
 0x8e8   :  { %v6574_v61 = vsel %vm6563_vm10, %v6571_v25, %v6573_v49 }
 0x8e9   :  { %8162 = vmatmul.mubr.bf16.gmra.mrb[224].mxu0 %v6333_v18 }
 0x8ea   :  { %8165 = vmatprep.mubr.msk.bf16.mxu0 %vm9338_vm9, %v9337_v27 }
 0x8f1   :  { %8166 = vmatmul.mubr.bf16.gmra.mrb[40].mxu0 %v6335_v16  ;;  %v6575_v16 = vrot.slane %v11752_v1, 6 }
 0x8f2   :  { %8169 = vmatprep.mubr.msk.bf16.mxu0 %vm9338_vm9, %v9337_v27 }
 0x8f4   :  { %v6107_v37 = vpop.f32.mrb[244].mxu0 }
 0x8f5   :  { %v8031_v3 = vpop.f32.mrb[245].mxu0  ;;  %v6576_v37 = vsel %vm6563_vm10, %v6573_v49, %v6575_v16 }
 0x8f6   :  { %v6109_v30 = vpop.f32.mrb[246].mxu0  ;;  %v6577_v3 = vrot.slane %v11762_v19, 6 }
 0x8f7   :  { %v8032_v40 = vpop.f32.mrb[247].mxu0 }
 0x8f8   :  { %v6578_v57 = vsel %vm6563_vm10, %v6575_v16, %v6577_v3 }
 0x8f9   :  { %8170 = vmatmul.mubr.bf16.gmra.mrb[232].mxu0 %v6337_v28 }
 0x8fa   :  { %8173 = vmatprep.mubr.msk.bf16.mxu0 %vm9338_vm9, %v9337_v27 }
 0x901   :  { %8174 = vmatmul.mubr.bf16.gmra.mrb[44].mxu0 %v6339_v41  ;;  %v6579_v41 = vrot.slane %v11772_v47, 6 }
 0x902   :  { %8177 = vmatprep.mubr.msk.bf16.mxu0 %vm9338_vm9, %v9337_v27 }
 0x903   :  { %v6580_v42 = vsel %vm6563_vm10, %v6577_v3, %v6579_v41 }
 0x909   :  { %8178 = vmatmul.mubr.bf16.gmra.mrb[240].mxu0 %v6341_v48 }
 0x90a   :  { %8181 = vmatprep.mubr.msk.bf16.mxu0 %vm9338_vm9, %v9337_v27 }
 0x90c   :  { %v6208_v14 = vpop.f32.mrb[252].mxu0 }
 0x90d   :  { %v8059_v55 = vpop.f32.mrb[253].mxu0 }
 0x90e   :  { %v6210_v0 = vpop.f32.mrb[254].mxu0 }
 0x90f   :  { %v8060_v22 = vpop.f32.mrb[255].mxu0 }
 0x911   :  { %8182 = vmatmul.mubr.bf16.gmra.mrb[48].mxu0 %v6343_v45  ;;  %v6583_v45 = vrot.slane %v11792_v29, 6 }
 0x912   :  { %8185 = vmatprep.mubr.msk.bf16.mxu0 %vm9338_vm9, %v9337_v27 }
 0x919   :  { %8186 = vmatmul.mubr.bf16.gmra.mrb[248].mxu0 %v6342_v31  ;;  %v6581_v31 = vrot.slane %v11782_v52, 6 }
 0x91a   :  { %8205 = vmatprep.mubr.msk.bf16.mxu0 %vm9338_vm9, %v9337_v27 }
 0x91b   :  { %v6582_v22 = vsel %vm6563_vm10, %v6579_v41, %v6581_v31 }
 0x91c   :  { %v6221_v11 = vpop.f32.mrb[0].mxu0 }
 0x91d   :  { %v8067_v17 = vpop.f32.mrb[1].mxu0  ;;  %v6584_v11 = vsel %vm6563_vm10, %v6581_v31, %v6583_v45 }
 0x91e   :  { %v6223_v44 = vpop.f32.mrb[2].mxu0  ;;  %v6585_v17 = vrot.slane %v11802_v13, 6 }
 0x91f   :  { %v8068_v63 = vpop.f32.mrb[3].mxu0 }
 0x920   :  { %v6586_v63 = vsel %vm6563_vm10, %v6583_v45, %v6585_v17 }
 0x921   :  { %8206 = vmatmul.mubr.bf16.vlgmr.msra.gmra.mrb[192].mxu0 %v6566_v9  ;;  %v6587_v9 = vrot.slane %v11812_v2, 6 }
 0x922   :  { %8266 = vmatpush3.bf16.msra.mxu0 %v9312_v46  ;;  %8209 = vmatprep.mubr.msk.bf16.mxu0 %vm9338_vm9, %v9337_v27 }
 0x923   :  { %8267 = vmatprep.subr.bf16.mxu0 %v9337_v27 }
 0x926   :  { %8268 = vmatpush3.bf16.msra.mxu0 %v9313_v32  ;;  %v6588_v32 = vsel %vm6563_vm10, %v6585_v17, %v6587_v9  ;;  %v9325_v17 = vld [vmem:[%s12229_s11 + $0x28] sm:$0xff]  }
 0x927   :  { %8269 = vmatprep.subr.bf16.mxu0 %v9337_v27 }
 0x929   :  { %8210 = vmatmul.mubr.bf16.gmra.mrb[52].mxu0 %v6568_v51  ;;  %v6591_v51 = vrot.slane %v11832_v21, 6 }
 0x92a   :  { %8213 = vmatprep.mubr.msk.bf16.mxu0 %vm9338_vm9, %v9337_v27  ;;  %8270 = vmatpush3.bf16.msra.mxu0 %v9314_v4  ;;  %v6590_v4 = vsel %vm6563_vm10, %v6587_v9, %v6589_v39  ;;  %v9326_v9 = vld [vmem:[%s12229_s11 + $0x30] sm:$0xff]  }
 0x92b   :  { %8271 = vmatprep.subr.bf16.mxu0 %v9337_v27 }
 0x92c   :  { %v6234_v5 = vpop.f32.mrb[4].mxu0 }
 0x92d   :  { %v8075_v8 = vpop.f32.mrb[5].mxu0 }
 0x92e   :  { %v6236_v56 = vpop.f32.mrb[6].mxu0  ;;  %8272 = vmatpush3.bf16.msra.mxu0 %v9315_v20 }
 0x92f   :  { %v8076_v33 = vpop.f32.mrb[7].mxu0  ;;  %8273 = vmatprep.subr.bf16.mxu0 %v9337_v27  ;;  %v6592_v56 = vsel %vm6563_vm10, %v6589_v39, %v6591_v51 }
 0x931   :  { %8214 = vmatmul.mubr.bf16.gmra.mrb[200].mxu0 %v6570_v26 }
 0x932   :  { %8217 = vmatprep.mubr.msk.bf16.mxu0 %vm9338_vm9, %v9337_v27  ;;  %8274 = vmatpush3.bf16.msra.mxu0 %v9316_v6 }
 0x933   :  { %8275 = vmatprep.subr.bf16.mxu0 %v9337_v27 }
 0x936   :  { %8276 = vmatpush3.bf16.msra.mxu0 %v9317_v62 }
 0x937   :  { %8277 = vmatprep.subr.bf16.mxu0 %v9337_v27 }
 0x939   :  { %8218 = vmatmul.mubr.bf16.gmra.mrb[56].mxu0 %v6572_v35 }
 0x93a   :  { %8221 = vmatprep.mubr.msk.bf16.mxu0 %vm9338_vm9, %v9337_v27  ;;  %8278 = vmatpush3.bf16.msra.mxu0 %v9318_v10 }
 0x93b   :  { %8279 = vmatprep.subr.bf16.mxu0 %v9337_v27 }
 0x93c   :  { %v6247_v38 = vpop.f32.mrb[8].mxu0 }
 0x93d   :  { %v8083_v43 = vpop.f32.mrb[9].mxu0 }
 0x93e   :  { %v6249_v58 = vpop.f32.mrb[10].mxu0  ;;  %8280 = vmatpush3.bf16.msra.mxu0 %v9319_v54 }
 0x93f   :  { %v8084_v18 = vpop.f32.mrb[11].mxu0 }
 0x941   :  { %8222 = vmatmul.mubr.bf16.gmra.mrb[208].mxu0 %v6574_v61 }
 0x942   :  { %8225 = vmatprep.mubr.msk.bf16.mxu0 %vm9338_vm9, %v9337_v27 }
 0x949   :  { %8226 = vmatmul.mubr.bf16.gmra.mrb[60].mxu0 %v6576_v37 }
 0x94a   :  { %8229 = vmatprep.mubr.msk.bf16.mxu0 %vm9338_vm9, %v9337_v27 }
 0x94c   :  { %v6260_v24 = vpop.f32.mrb[12].mxu0 }
 0x94d   :  { %v8091_v30 = vpop.f32.mrb[13].mxu0  ;;  %v9321_v24 = vld [vmem:[%s12229_s11 + $0x8] sm:$0xff]  }
 0x94e   :  { %v6262_v40 = vpop.f32.mrb[14].mxu0 }
 0x94f   :  { %v8092_v28 = vpop.f32.mrb[15].mxu0 }
 0x950   :  { %v9322_v28 = vld [vmem:[%s12229_s11 + $0x10] sm:$0xff]  }
 0x951   :  { %8230 = vmatmul.mubr.bf16.gmra.mrb[216].mxu0 %v6578_v57 }
 0x952   :  { %8233 = vmatprep.mubr.msk.bf16.mxu0 %vm9338_vm9, %v9337_v27 }
 0x959   :  { %8234 = vmatmul.mubr.bf16.gmra.mrb[64].mxu0 %v6580_v42 }
 0x95a   :  { %8237 = vmatprep.mubr.msk.bf16.mxu0 %vm9338_vm9, %v9337_v27 }
 0x95c   :  { %v6273_v48 = vpop.f32.mrb[16].mxu0 }
 0x95d   :  { %v8099_v14 = vpop.f32.mrb[17].mxu0  ;;  %v9323_v48 = vld [vmem:[%s12229_s11 + $0x18] sm:$0xff]  }
 0x95e   :  { %v6275_v55 = vpop.f32.mrb[18].mxu0 }
 0x95f   :  { %v8100_v0 = vpop.f32.mrb[19].mxu0 }
 0x960   :  { %v9324_v0 = vld [vmem:[%s12229_s11 + $0x20] sm:$0xff]  }
 0x961   :  { %8238 = vmatmul.mubr.bf16.gmra.mrb[224].mxu0 %v6582_v22 }
 0x962   :  { %8241 = vmatprep.mubr.msk.bf16.mxu0 %vm9338_vm9, %v9337_v27 }
 0x969   :  { %8242 = vmatmul.mubr.bf16.gmra.mrb[68].mxu0 %v6584_v11 }
 0x96a   :  { %8245 = vmatprep.mubr.msk.bf16.mxu0 %vm9338_vm9, %v9337_v27 }
 0x96c   :  { %v6286_v53 = vpop.f32.mrb[20].mxu0 }
 0x96d   :  { %v8107_v44 = vpop.f32.mrb[21].mxu0 }
 0x96e   :  { %v6288_v23 = vpop.f32.mrb[22].mxu0 }
 0x96f   :  { %v8108_v46 = vpop.f32.mrb[23].mxu0 }
 0x971   :  { %8246 = vmatmul.mubr.bf16.gmra.mrb[232].mxu0 %v6586_v63 }
 0x972   :  { %8249 = vmatprep.mubr.msk.bf16.mxu0 %vm9338_vm9, %v9337_v27 }
 0x979   :  { %8250 = vmatmul.mubr.bf16.gmra.mrb[72].mxu0 %v6588_v32 }
 0x97a   :  { %8253 = vmatprep.mubr.msk.bf16.mxu0 %vm9338_vm9, %v9337_v27 }
 0x981   :  { %8254 = vmatmul.mubr.bf16.gmra.mrb[240].mxu0 %v6590_v4 }
 0x982   :  { %8257 = vmatprep.mubr.msk.bf16.mxu0 %vm9338_vm9, %v9337_v27 }
 0x984   :  { %v6448_v20 = vpop.f32.mrb[24].mxu0 }
 0x985   :  { %v8135_v5 = vpop.f32.mrb[25].mxu0 }
 0x986   :  { %v6450_v60 = vpop.f32.mrb[26].mxu0 }
 0x987   :  { %v8136_v8 = vpop.f32.mrb[27].mxu0  ;;  %v9327_v60 = vld [vmem:[%s12229_s11 + $0x38] sm:$0xff]  }
 0x989   :  { %8258 = vmatmul.mubr.bf16.gmra.mrb[76].mxu0 %v6592_v56 }
 0x98a   :  { %8261 = vmatprep.mubr.msk.bf16.mxu0 %vm9338_vm9, %v9337_v27 }
 0x991   :  { %8262 = vmatmul.mubr.bf16.gmra.mrb[248].mxu0 %v6591_v51 }
 0x992   :  { %8281 = vmatprep.mubr.msk.bf16.mxu0 %vm9338_vm9, %v9337_v27 }
 0x994   :  { %v6461_v6 = vpop.f32.mrb[28].mxu0 }
 0x995   :  { %v8143_v33 = vpop.f32.mrb[29].mxu0 }
 0x996   :  { %v6463_v26 = vpop.f32.mrb[30].mxu0 }
 0x997   :  { %v8144_v62 = vpop.f32.mrb[31].mxu0 }
 0x999   :  { %8282 = vmatmul.mubr.bf16.vlgmr.msra.gmra.mrb[192].mxu0 %v11669_v7 }
 0x99a   :  { %8285 = vmatprep.mubr.msk.bf16.mxu0 %vm9338_vm9, %v9337_v27 }
 0x9a1   :  { %8286 = vmatmul.mubr.bf16.gmra.mrb[80].mxu0 %v11687_v15 }
 0x9a2   :  { %8289 = vmatprep.mubr.msk.bf16.mxu0 %vm9338_vm9, %v9337_v27 }
 0x9a4   :  { %v6474_v25 = vpop.f32.mrb[32].mxu0 }
 0x9a5   :  { %v8151_v10 = vpop.f32.mrb[33].mxu0 }
 0x9a6   :  { %v6476_v35 = vpop.f32.mrb[34].mxu0 }
 0x9a7   :  { %v8152_v54 = vpop.f32.mrb[35].mxu0 }
 0x9a9   :  { %8290 = vmatmul.mubr.bf16.gmra.mrb[200].mxu0 %v11705_v34 }
 0x9aa   :  { %8293 = vmatprep.mubr.msk.bf16.mxu0 %vm9338_vm9, %v9337_v27 }
 0x9b1   :  { %8294 = vmatmul.mubr.bf16.gmra.mrb[84].mxu0 %v11723_v59 }
 0x9b2   :  { %8297 = vmatprep.mubr.msk.bf16.mxu0 %vm9338_vm9, %v9337_v27 }
 0x9b4   :  { %v6487_v7 = vpop.f32.mrb[36].mxu0 }
 0x9b5   :  { %v8159_v38 = vpop.f32.mrb[37].mxu0 }
 0x9b6   :  { %v6489_v15 = vpop.f32.mrb[38].mxu0 }
 0x9b7   :  { %v8160_v49 = vpop.f32.mrb[39].mxu0 }
 0x9b9   :  { %8298 = vmatmul.mubr.bf16.gmra.mrb[208].mxu0 %v11741_v12 }
 0x9ba   :  { %8301 = vmatprep.mubr.msk.bf16.mxu0 %vm9338_vm9, %v9337_v27 }
 0x9c1   :  { %8302 = vmatmul.mubr.bf16.gmra.mrb[88].mxu0 %v11752_v1 }
 0x9c2   :  { %8305 = vmatprep.mubr.msk.bf16.mxu0 %vm9338_vm9, %v9337_v27 }
 0x9c4   :  { %v6500_v34 = vpop.f32.mrb[40].mxu0 }
 0x9c5   :  { %v8167_v43 = vpop.f32.mrb[41].mxu0 }
 0x9c6   :  { %v6502_v59 = vpop.f32.mrb[42].mxu0 }
 0x9c7   :  { %v8168_v58 = vpop.f32.mrb[43].mxu0 }
 0x9c9   :  { %8306 = vmatmul.mubr.bf16.gmra.mrb[216].mxu0 %v11762_v19 }
 0x9ca   :  { %8309 = vmatprep.mubr.msk.bf16.mxu0 %vm9338_vm9, %v9337_v27 }
 0x9d1   :  { %8310 = vmatmul.mubr.bf16.gmra.mrb[92].mxu0 %v11772_v47 }
 0x9d2   :  { %8313 = vmatprep.mubr.msk.bf16.mxu0 %vm9338_vm9, %v9337_v27 }
 0x9d4   :  { %v6513_v12 = vpop.f32.mrb[44].mxu0 }
 0x9d5   :  { %v8175_v18 = vpop.f32.mrb[45].mxu0 }
 0x9d6   :  { %v6515_v1 = vpop.f32.mrb[46].mxu0 }
 0x9d7   :  { %v8176_v61 = vpop.f32.mrb[47].mxu0 }
 0x9d9   :  { %8314 = vmatmul.mubr.bf16.gmra.mrb[224].mxu0 %v11782_v52  ;;  %v9320_v52 = vld [vmem:[%s12229_s11] sm:$0xff]  }
 0x9da   :  { %8317 = vmatprep.mubr.msk.bf16.mxu0 %vm9338_vm9, %v9337_v27  ;;  %8342 = vmatpush3.bf16.msra.mxu1 %v9320_v52 }
 0x9db   :  { %8343 = vmatprep.subr.bf16.mxu1 %v9337_v27 }
 0x9de   :  { %8344 = vmatpush3.bf16.msra.mxu1 %v9321_v24 }
 0x9df   :  { %8345 = vmatprep.subr.bf16.mxu1 %v9337_v27 }
 0x9e1   :  { %8318 = vmatmul.mubr.bf16.gmra.mrb[96].mxu0 %v11792_v29 }
 0x9e2   :  { %8321 = vmatprep.mubr.msk.bf16.mxu0 %vm9338_vm9, %v9337_v27  ;;  %8346 = vmatpush3.bf16.msra.mxu1 %v9322_v28 }
 0x9e3   :  { %8347 = vmatprep.subr.bf16.mxu1 %v9337_v27 }
 0x9e4   :  { %v6526_v19 = vpop.f32.mrb[48].mxu0 }
 0x9e5   :  { %v8183_v16 = vpop.f32.mrb[49].mxu0 }
 0x9e6   :  { %v6528_v47 = vpop.f32.mrb[50].mxu0  ;;  %8348 = vmatpush3.bf16.msra.mxu1 %v9323_v48 }
 0x9e7   :  { %v8184_v37 = vpop.f32.mrb[51].mxu0  ;;  %8349 = vmatprep.subr.bf16.mxu1 %v9337_v27 }
 0x9e9   :  { %8322 = vmatmul.mubr.bf16.gmra.mrb[232].mxu0 %v11802_v13 }
 0x9ea   :  { %8325 = vmatprep.mubr.msk.bf16.mxu0 %vm9338_vm9, %v9337_v27  ;;  %8350 = vmatpush3.bf16.msra.mxu1 %v9324_v0 }
 0x9eb   :  { %8351 = vmatprep.subr.bf16.mxu1 %v9337_v27 }
 0x9ee   :  { %8352 = vmatpush3.bf16.msra.mxu1 %v9325_v17 }
 0x9ef   :  { %8353 = vmatprep.subr.bf16.mxu1 %v9337_v27 }
 0x9f1   :  { %8326 = vmatmul.mubr.bf16.gmra.mrb[100].mxu0 %v11812_v2  ;;  %v5847_v2 = vpack.c.bf16 %v11828_v36, %v11828_v36 }
 0x9f2   :  { %8329 = vmatprep.mubr.msk.bf16.mxu0 %vm9338_vm9, %v9337_v27  ;;  %8354 = vmatpush3.bf16.msra.mxu1 %v9326_v9 }
 0x9f3   :  { %8355 = vmatprep.subr.bf16.mxu1 %v9337_v27 }
 0x9f6   :  { %8356 = vmatpush3.bf16.msra.mxu1 %v9327_v60 }
 0x9f7   :  { %8361 = vmatprep.subr.bf16.mxu1 %v9337_v27 }
 0x9f9   :  { %8330 = vmatmul.mubr.bf16.gmra.mrb[240].mxu0 %v11822_v50 }
 0x9fa   :  { %8333 = vmatprep.mubr.msk.bf16.mxu0 %vm9338_vm9, %v9337_v27 }
 0x9fc   :  { %v6697_v29 = vpop.f32.mrb[52].mxu0 }
 0x9fd   :  { %v8211_v13 = vpop.f32.mrb[53].mxu0 }
 0x9fe   :  { %v6699_v3 = vpop.f32.mrb[54].mxu0 }
 0x9ff   :  { %v8212_v30 = vpop.f32.mrb[55].mxu0 }
 0xa01   :  { %8334 = vmatmul.mubr.bf16.gmra.mrb[104].mxu0 %v11832_v21 }
 0xa02   :  { %8337 = vmatprep.mubr.msk.bf16.mxu0 %vm9338_vm9, %v9337_v27 }
 0xa09   :  { %8338 = vmatmul.mubr.bf16.gmra.mrb[248].mxu0 %v5847_v2 }
 0xa0c   :  { %v6710_v50 = vpop.f32.mrb[56].mxu0 }
 0xa0d   :  { %v8219_v40 = vpop.f32.mrb[57].mxu0 }
 0xa0e   :  { %v6712_v57 = vpop.f32.mrb[58].mxu0 }
 0xa0f   :  { %v8220_v41 = vpop.f32.mrb[59].mxu0 }
 0xa1c   :  { %v6723_v42 = vpop.f32.mrb[60].mxu0 }
 0xa1d   :  { %v8227_v21 = vpop.f32.mrb[61].mxu0 }
 0xa1e   :  { %v6725_v31 = vpop.f32.mrb[62].mxu0 }
 0xa1f   :  { %v8228_v36 = vpop.f32.mrb[63].mxu0 }
 0xa2c   :  { %v6736_v14 = vpop.f32.mrb[64].mxu0 }
 0xa2d   :  { %v8235_v55 = vpop.f32.mrb[65].mxu0 }
 0xa2e   :  { %v6738_v22 = vpop.f32.mrb[66].mxu0 }
 0xa2f   :  { %v8236_v45 = vpop.f32.mrb[67].mxu0 }
 0xa3c   :  { %v6749_v11 = vpop.f32.mrb[68].mxu0 }
 0xa3d   :  { %v8243_v53 = vpop.f32.mrb[69].mxu0 }
 0xa3e   :  { %v6751_v44 = vpop.f32.mrb[70].mxu0 }
 0xa3f   :  { %v8244_v23 = vpop.f32.mrb[71].mxu0 }
 0xa4c   :  { %v6762_v46 = vpop.f32.mrb[72].mxu0 }
 0xa4d   :  { %v8251_v63 = vpop.f32.mrb[73].mxu0 }
 0xa4e   :  { %v6764_v32 = vpop.f32.mrb[74].mxu0 }
 0xa4f   :  { %v8252_v39 = vpop.f32.mrb[75].mxu0 }
 0xa5c   :  { %v6775_v4 = vpop.f32.mrb[76].mxu0 }
 0xa5d   :  { %v8259_v51 = vpop.f32.mrb[77].mxu0 }
 0xa5e   :  { %v6777_v20 = vpop.f32.mrb[78].mxu0 }
 0xa5f   :  { %v8260_v5 = vpop.f32.mrb[79].mxu0  ;;  %v7809_v20 = vld [vmem:[%s12231_s10] ss:$0 sm:$0xff] }
 0xa6c   :  { %v6894_v8 = vpop.f32.mrb[192].mxu0 }
 0xa6d   :  { %6999 = vst [vmem:[#allocation2] sm:$0x1] %v6894_v8  ;;  %v8283_v56 = vpop.f32.mrb[193].mxu0 }
 0xa6e   :  { %v6897_v6 = vpop.f32.mrb[194].mxu0  ;;  %v9328_v56 = vld [vmem:[%s12230_s13] sm:$0xff]  }
 0xa6f   :  { %v8284_v33 = vpop.f32.mrb[195].mxu0 }
 0xa70   :  { %v9329_v33 = vld [vmem:[%s12230_s13 + $0x8] sm:$0xff]  }
 0xa74   :  { %v6901_v26 = vpop.f32.mrb[80].mxu0 }
 0xa75   :  { %v8287_v62 = vpop.f32.mrb[81].mxu0  ;;  %v9330_v26 = vld [vmem:[%s12230_s13 + $0x10] sm:$0xff]  }
 0xa76   :  { %v6903_v25 = vpop.f32.mrb[82].mxu0  ;;  %v9331_v62 = vld [vmem:[%s12230_s13 + $0x18] sm:$0xff]  }
 0xa77   :  { %v8288_v10 = vpop.f32.mrb[83].mxu0  ;;  %v9332_v25 = vld [vmem:[%s12230_s13 + $0x20] sm:$0xff]  }
 0xa78   :  { %v9333_v10 = vld [vmem:[%s12230_s13 + $0x28] sm:$0xff]  }
 0xa7c   :  { %v6907_v35 = vpop.f32.mrb[200].mxu0 }
 0xa7d   :  { %7000 = vst [vmem:[#allocation2 + $0x1] sm:$0x1] %v6907_v35  ;;  %v8291_v54 = vpop.f32.mrb[201].mxu0  ;;  %v9334_v35 = vld [vmem:[%s12230_s13 + $0x30] sm:$0xff]  }
 0xa7e   :  { %v6910_v7 = vpop.f32.mrb[202].mxu0  ;;  %v9335_v54 = vld [vmem:[%s12230_s13 + $0x38] sm:$0xff]  }
 0xa7f   :  { %v8292_v38 = vpop.f32.mrb[203].mxu0  ;;  %v7810_v7 = vld [vmem:[%s12232_s12] ss:$0 sm:$0xff] }
 0xa84   :  { %v6914_v15 = vpop.f32.mrb[84].mxu0 }
 0xa85   :  { %v8295_v49 = vpop.f32.mrb[85].mxu0 }
 0xa86   :  { %v6916_v34 = vpop.f32.mrb[86].mxu0 }
 0xa87   :  { %v8296_v43 = vpop.f32.mrb[87].mxu0 }
 0xa8c   :  { %v6920_v59 = vpop.f32.mrb[208].mxu0 }
 0xa8d   :  { %7001 = vst [vmem:[#allocation2 + $0x2] sm:$0x1] %v6920_v59  ;;  %v8299_v58 = vpop.f32.mrb[209].mxu0 }
 0xa8e   :  { %v6923_v12 = vpop.f32.mrb[210].mxu0 }
 0xa8f   :  { %v8300_v18 = vpop.f32.mrb[211].mxu0 }
 0xa94   :  { %v6927_v1 = vpop.f32.mrb[88].mxu0 }
 0xa95   :  { %v8303_v61 = vpop.f32.mrb[89].mxu0 }
 0xa96   :  { %v6929_v19 = vpop.f32.mrb[90].mxu0 }
 0xa97   :  { %v8304_v16 = vpop.f32.mrb[91].mxu0 }
 0xa9c   :  { %v6933_v47 = vpop.f32.mrb[216].mxu0 }
 0xa9d   :  { %7002 = vst [vmem:[#allocation2 + $0x3] sm:$0x1] %v6933_v47  ;;  %v8307_v37 = vpop.f32.mrb[217].mxu0 }
 0xa9e   :  { %v6936_v52 = vpop.f32.mrb[218].mxu0 }
 0xa9f   :  { %v8308_v29 = vpop.f32.mrb[219].mxu0 }
 0xaa4   :  { %v6940_v13 = vpop.f32.mrb[92].mxu0 }
 0xaa5   :  { %v8311_v24 = vpop.f32.mrb[93].mxu0 }
 0xaa6   :  { %v6942_v3 = vpop.f32.mrb[94].mxu0 }
 0xaa7   :  { %v8312_v30 = vpop.f32.mrb[95].mxu0 }
 0xaac   :  { %v6946_v2 = vpop.f32.mrb[224].mxu0 }
 0xaad   :  { %7003 = vst [vmem:[#allocation2 + $0x4] sm:$0x1] %v6946_v2  ;;  %v8315_v50 = vpop.f32.mrb[225].mxu0 }
 0xaae   :  { %v6949_v40 = vpop.f32.mrb[226].mxu0 }
 0xaaf   :  { %v8316_v28 = vpop.f32.mrb[227].mxu0 }
 0xab4   :  { %v6953_v57 = vpop.f32.mrb[96].mxu0 }
 0xab5   :  { %v8319_v41 = vpop.f32.mrb[97].mxu0 }
 0xab6   :  { %v6955_v42 = vpop.f32.mrb[98].mxu0 }
 0xab7   :  { %v8320_v21 = vpop.f32.mrb[99].mxu0 }
 0xabc   :  { %v6959_v48 = vpop.f32.mrb[232].mxu0 }
 0xabd   :  { %7004 = vst [vmem:[#allocation2 + $0x5] sm:$0x1] %v6959_v48  ;;  %v8323_v31 = vpop.f32.mrb[233].mxu0 }
 0xabe   :  { %v6962_v36 = vpop.f32.mrb[234].mxu0 }
 0xabf   :  { %v8324_v14 = vpop.f32.mrb[235].mxu0 }
 0xac4   :  { %v6966_v55 = vpop.f32.mrb[100].mxu0 }
 0xac5   :  { %v8327_v0 = vpop.f32.mrb[101].mxu0 }
 0xac6   :  { %v6968_v22 = vpop.f32.mrb[102].mxu0 }
 0xac7   :  { %v8328_v45 = vpop.f32.mrb[103].mxu0 }
 0xacc   :  { %v6972_v11 = vpop.f32.mrb[240].mxu0 }
 0xacd   :  { %7005 = vst [vmem:[#allocation2 + $0x6] sm:$0x1] %v6972_v11  ;;  %v8331_v53 = vpop.f32.mrb[241].mxu0 }
 0xace   :  { %v6975_v17 = vpop.f32.mrb[242].mxu0 }
 0xacf   :  { %v8332_v44 = vpop.f32.mrb[243].mxu0 }
 0xad4   :  { %v6979_v23 = vpop.f32.mrb[104].mxu0 }
 0xad5   :  { %v8335_v46 = vpop.f32.mrb[105].mxu0 }
 0xad6   :  { %v6981_v63 = vpop.f32.mrb[106].mxu0 }
 0xad7   :  { %v8336_v9 = vpop.f32.mrb[107].mxu0 }
 0xadc   :  { %v6985_v32 = vpop.f32.mrb[248].mxu0 }
 0xadd   :  { %7006 = vst [vmem:[#allocation2 + $0x7] sm:$0x1] %v6985_v32  ;;  %v8339_v39 = vpop.f32.mrb[249].mxu0 }
 0xade   :  { %v6988_v4 = vpop.f32.mrb[250].mxu0 }
 0xadf   :  { %v8340_v51 = vpop.f32.mrb[251].mxu0 }
 0xae4   :  { %v7007_v5 = vld [vmem:[#allocation2] sm:$0xff] }
 0xae5   :  { %v7015_v60 = vadd.f32 %v7809_v20, %v7007_v5 }
 0xae7   :  { %v7016_v8 = vmax.f32 %v7015_v60, 0.0 }
 0xae9   :  { %v7017_v6 = vpack.c.bf16 %v7016_v8, %v7016_v8 }
 0xaeb   :  { %8358 = vmatmul.mubr.bf16.vlgmr.msra.gmra.mrb[16].mxu1 %v7017_v6 }
 0xaec   :  { %8362 = vmatpush3.bf16.msra.mxu1 %v9328_v56  ;;  %8377 = vmatprep.mubr.msk.bf16.mxu1 %vm9338_vm9, %v9337_v27 }
 0xaed   :  { %8363 = vmatprep.subr.bf16.mxu1 %v9337_v27 }
 0xaf0   :  { %8364 = vmatpush3.bf16.msra.mxu1 %v9329_v33 }
 0xaf1   :  { %8365 = vmatprep.subr.bf16.mxu1 %v9337_v27 }
 0xaf4   :  { %8366 = vmatpush3.bf16.msra.mxu1 %v9330_v26 }
 0xaf5   :  { %8367 = vmatprep.subr.bf16.mxu1 %v9337_v27 }
 0xaf8   :  { %8368 = vmatpush3.bf16.msra.mxu1 %v9331_v62 }
 0xaf9   :  { %8369 = vmatprep.subr.bf16.mxu1 %v9337_v27 }
 0xafc   :  { %8370 = vmatpush3.bf16.msra.mxu1 %v9332_v25 }
 0xafd   :  { %8371 = vmatprep.subr.bf16.mxu1 %v9337_v27 }
 0xb00   :  { %8372 = vmatpush3.bf16.msra.mxu1 %v9333_v10 }
 0xb01   :  { %8373 = vmatprep.subr.bf16.mxu1 %v9337_v27 }
 0xb04   :  { %8374 = vmatpush3.bf16.msra.mxu1 %v9334_v35 }
 0xb05   :  { %8375 = vmatprep.subr.bf16.mxu1 %v9337_v27  ;;  %v7819_v27 = vld [vmem:[%s12233_s14] ss:$0 sm:$0xff] }
 0xb08   :  { %8376 = vmatpush3.bf16.msra.mxu1 %v9335_v54 }
 0xbbe   :  { %v7123_v38 = vpop.f32.mrb[16].mxu1 }
 0xbbf   :  { %v7124_v15 = vadd.f32 %v7810_v7, %v7123_v38  ;;  %v8359_v49 = vpop.f32.mrb[17].mxu1 }
 0xbc0   :  { %v7126_v34 = vpop.f32.mrb[18].mxu1 }
 0xbc1   :  { %v7129_v43 = vmax.f32 %v7124_v15, 0.0  ;;  %v8360_v59 = vpop.f32.mrb[19].mxu1 }
 0xbc3   :  { %v7130_v58 = vpack.c.bf16 %v7129_v43, %v7129_v43 }
 0xbc5   :  { %8378 = vmatmul.mubr.bf16.vlgmr.msra.gmra.mrb[20].mxu1 %v7130_v58 }
 0xc98   :  { %v7236_v12 = vpop.f32.mrb[20].mxu1 }
 0xc99   :  { %v7237_v18 = vadd.f32 %v7819_v27, %v7236_v12  ;;  %v8379_v1 = vpop.f32.mrb[21].mxu1 }
 0xc9a   :  { %v7239_v61 = vpop.f32.mrb[22].mxu1 }
 0xc9b   :  { %7242 = vst [vmem:[%s12234_s15] sm:$0xff] %v7237_v18  ;;  %v8380_v19 = vpop.f32.mrb[23].mxu1 }

</bundles_post_ra>
